<compile_context>
chip_gen: v6e
topology: v6e:2x2x1
jax: 0.10.0
libtpu: 0.0.40
codegen_flags: <defaults>
</compile_context>

<pallas_src>
import functools
import math

import jax
import jax.numpy as jnp
from jax.experimental import pallas as pl
from jax.experimental.pallas import tpu as pltpu


# --------------------------------------------------------------------------
# Kernel A: per-frame fused
#   input_proj[0] = Conv2d 1x1 + GroupNorm(32, D)
#   class_proj    = Conv3d 1x1x1 (channel matmul)
#   K / V projections of the cross-attention (packed into one matmul)
# --------------------------------------------------------------------------
def _frame_proj_kernel(x_ref, wxc_ref, bxc_ref, g_ref, beta_ref,
                       ocg_ref, ogc_ref, wkv_ref, bkv_ref,
                       src_ref, k_ref, v_ref, *, hidden, eps):
    x = x_ref[0].astype(jnp.bfloat16)                               # (HW, Cin)

    # combined 1x1 conv: [input_proj | class_proj] in a single MXU pass
    y2 = jnp.dot(x, wxc_ref[...], preferred_element_type=jnp.float32) + bxc_ref[...]
    y = y2[:, :hidden]                                              # GN input, f32
    cs = y2[:, hidden:]                                             # class_proj out

    # GroupNorm(32, hidden): two-pass (mean-subtracted) variance -- avoids
    # E[x^2]-E[x]^2 cancellation; group reduce via one-hot matrices (MXU).
    HW = y.shape[0]
    G = ocg_ref.shape[1]
    n = float(HW * (hidden // G))
    ch_sum = jnp.sum(y, axis=0, keepdims=True)                      # (1, C)
    mean_g = jnp.dot(ch_sum, ocg_ref[...], preferred_element_type=jnp.float32) / n
    mean_c = jnp.dot(mean_g, ogc_ref[...], preferred_element_type=jnp.float32)
    yc = y - mean_c
    ch_sq = jnp.sum(yc * yc, axis=0, keepdims=True)                 # (1, C)
    var_g = jnp.dot(ch_sq, ocg_ref[...], preferred_element_type=jnp.float32) / n
    var_c = jnp.dot(var_g, ogc_ref[...], preferred_element_type=jnp.float32)
    yn = yc * jax.lax.rsqrt(var_c + eps)
    src_ref[0] = (yn * g_ref[...] + beta_ref[...]).astype(src_ref.dtype)

    # K / V projection of class_proj output, packed into one (D, 2D) matmul
    kv = jnp.dot(cs.astype(jnp.bfloat16), wkv_ref[...],
                 preferred_element_type=jnp.float32) + bkv_ref[...]
    k_ref[0] = kv[:, :hidden].astype(k_ref.dtype)
    v_ref[0] = kv[:, hidden:].astype(v_ref.dtype)


def frame_projection(x, wxc, bxc, gamma, beta, onehot_cg, onehot_gc,
                     wkv, bkv, *, eps=1e-5):
    # x: (T, HW, Cin) -> src (T, HW, D) f32, k/v (T, HW, D) bf16
    T, HW, Cin = x.shape
    D = wxc.shape[1] // 2
    G = onehot_cg.shape[1]
    shared = lambda i: (0, 0)
    return pl.pallas_call(
        functools.partial(_frame_proj_kernel, hidden=D, eps=eps),
        out_shape=(jax.ShapeDtypeStruct((T, HW, D), jnp.float32),
                   jax.ShapeDtypeStruct((T, HW, D), jnp.bfloat16),
                   jax.ShapeDtypeStruct((T, HW, D), jnp.bfloat16)),
        grid=(T,),
        in_specs=[
            pl.BlockSpec((1, HW, Cin), lambda i: (i, 0, 0)),
            pl.BlockSpec((Cin, 2 * D), shared),   # [input_proj | class_proj] weight
            pl.BlockSpec((1, 2 * D), shared),     # packed bias
            pl.BlockSpec((1, D), shared),         # GN gamma
            pl.BlockSpec((1, D), shared),         # GN beta
            pl.BlockSpec((D, G), shared),         # channel->group one-hot
            pl.BlockSpec((G, D), shared),         # group->channel one-hot
            pl.BlockSpec((D, 2 * D), shared),     # [Wk | Wv]
            pl.BlockSpec((1, 2 * D), shared),     # [bk | bv]
        ],
        out_specs=(pl.BlockSpec((1, HW, D), lambda i: (i, 0, 0)),
                   pl.BlockSpec((1, HW, D), lambda i: (i, 0, 0)),
                   pl.BlockSpec((1, HW, D), lambda i: (i, 0, 0))),
        compiler_params=pltpu.CompilerParams(dimension_semantics=("parallel",)),
    )(x, wxc, bxc, gamma, beta, onehot_cg, onehot_gc, wkv, bkv)


# --------------------------------------------------------------------------
# Kernel B: fused cross-attention + packed output heads, grid over L*B.
#   - K/V and all weight blocks use constant index_maps (resident in VMEM).
#   - out-projection accumulated per head (no scratch, no masked lane stores).
#   - class_fc, class_embed_b and bbox layer-3 evaluated as ONE lane-dense
#     matmul on concat([q_class, hs, h2]) vs a stacked padded weight slab.
# --------------------------------------------------------------------------
def _fused_head_kernel(hs_ref, hsb_ref, k_ref, v_ref,
                       wq_ref, bq_ref, wo_ref, bo_ref,
                       w1_ref, b1_ref, w2_ref, b2_ref,
                       wh_ref, bh_ref, o_ref, *, num_heads, off_bbox):
    hs = hs_ref[0]                                                  # (Q, D) f32
    hs_b = hs.astype(jnp.bfloat16)
    D = hs.shape[-1]
    hd = D // num_heads
    scale = 1.0 / math.sqrt(hd)

    # ---- q projection (PyTorch MHA folds the 1/sqrt(hd) scale into q)
    q = (jnp.dot(hs_b, wq_ref[...], preferred_element_type=jnp.float32)
         + bq_ref[...]) * scale
    q_b = q.astype(jnp.bfloat16)

    # ---- per-head attention; output projection accumulated per head:
    #      concat_h(head_h) @ Wo == sum_h head_h @ Wo[h*hd:(h+1)*hd, :]
    q_class = jnp.zeros(q.shape, jnp.float32)
    for h in range(num_heads):                                      # static unroll
        sl = slice(h * hd, (h + 1) * hd)
        s = jax.lax.dot_general(q_b[:, sl], k_ref[:, sl],
                                (((1,), (1,)), ((), ())),
                                preferred_element_type=jnp.float32)  # (Q, S)
        s = s - jnp.max(s, axis=-1, keepdims=True)                   # softmax in f32
        p = jnp.exp(s)
        p = p * pl.reciprocal(jnp.sum(p, axis=-1, keepdims=True), approx=True)
        head = jnp.dot(p.astype(jnp.bfloat16), v_ref[:, sl],
                       preferred_element_type=jnp.float32)           # (Q, hd)
        q_class = q_class + jnp.dot(head.astype(jnp.bfloat16), wo_ref[sl, :],
                                    preferred_element_type=jnp.float32)
    q_class = q_class + bo_ref[...]

    # ---- bbox MLP hidden layers on hs_box.mean(T) (mean done in-kernel)
    hsb = jnp.mean(hsb_ref[0], axis=0)                              # (Q, D) f32
    h1 = jnp.maximum(
        jnp.dot(hsb.astype(jnp.bfloat16), w1_ref[...],
                preferred_element_type=jnp.float32) + b1_ref[...], 0.0)
    h2 = jnp.maximum(
        jnp.dot(h1.astype(jnp.bfloat16), w2_ref[...],
                preferred_element_type=jnp.float32) + b2_ref[...], 0.0)

    # ---- lane-dense packed heads: [class_fc(q_class) | class_embed_b(hs) | bbox_l3(h2)]
    x_cat = jnp.concatenate(
        [q_class.astype(jnp.bfloat16), hs_b, h2.astype(jnp.bfloat16)], axis=-1)
    slab = jnp.dot(x_cat, wh_ref[...],
                   preferred_element_type=jnp.float32) + bh_ref[...]
    lane = jax.lax.broadcasted_iota(jnp.int32, slab.shape, 1)
    bbox_lane = (lane >= off_bbox) & (lane < off_bbox + 4)
    slab = jnp.where(bbox_lane, jax.nn.sigmoid(slab), slab)
    o_ref[0] = slab.astype(o_ref.dtype)


def fused_attention_head(hs_lb, hsb_lb, k_p, v_p, wq, bq, wo, bo,
                         w1, b1, w2, b2, wh, bh, *, num_heads, off_bbox):
    LB, Q, D = hs_lb.shape
    T = hsb_lb.shape[1]
    S = k_p.shape[0]
    OW = wh.shape[1]
    shared = lambda i: (0, 0)
    # TODO(synk): at real DETR sizes (Q=100, L=6, S=T*H*W in the thousands),
    # tile the S axis flash-style instead of loading full (S, D) K/V blocks
    # (needed to stay within v7x's smaller VMEM).
    return pl.pallas_call(
        functools.partial(_fused_head_kernel, num_heads=num_heads, off_bbox=off_bbox),
        out_shape=jax.ShapeDtypeStruct((LB, Q, OW), jnp.float32),
        grid=(LB,),
        in_specs=[
            pl.BlockSpec((1, Q, D), lambda i: (i, 0, 0)),
            pl.BlockSpec((1, T, Q, D), lambda i: (i, 0, 0, 0)),
            pl.BlockSpec((S, D), shared),      # K (shared across all grid steps)
            pl.BlockSpec((S, D), shared),      # V
            pl.BlockSpec((D, D), shared),      # wq
            pl.BlockSpec((1, D), shared),      # bq
            pl.BlockSpec((D, D), shared),      # wo
            pl.BlockSpec((1, D), shared),      # bo
            pl.BlockSpec((D, D), shared),      # mlp w1
            pl.BlockSpec((1, D), shared),      # mlp b1
            pl.BlockSpec((D, D), shared),      # mlp w2
            pl.BlockSpec((1, D), shared),      # mlp b2
            pl.BlockSpec((3 * D, OW), shared), # stacked [wfc; wcb; wbb] (padded)
            pl.BlockSpec((1, OW), shared),     # packed head bias
        ],
        out_specs=pl.BlockSpec((1, Q, OW), lambda i: (i, 0, 0)),
        compiler_params=pltpu.CompilerParams(
            dimension_semantics=("parallel",),
            vmem_limit_bytes=32 * 1024 * 1024),
    )(hs_lb, hsb_lb, k_p, v_p, wq, bq, wo, bo, w1, b1, w2, b2, wh, bh)


# --------------------------------------------------------------------------
# DETR head forward (ava dataset mode, aux_loss=False, inference)
# --------------------------------------------------------------------------
def detr_head_forward(params, feat, hs, hs_box, *, num_heads=8, gn_groups=32):
    # feat  : (T, Cb, H, W)  -- last backbone feature level, NCHW (T = bs*num_frames, bs=1)
    # hs    : (L, B, Q, D)   -- deformable-transformer decoder output
    # hs_box: (L, B, T, Q, D)
    T, Cb, H, W = feat.shape
    L, B, Q, D = hs.shape
    HW = H * W
    S = T * HW
    LB = L * B
    num_classes = params["fc_w"].shape[1]
    f32, bf16 = jnp.float32, jnp.bfloat16

    # TODO(synk): backbone + deformable transformer are external modules in the
    # reference; `hs`/`hs_box` are supplied as inputs, and `src_proj` (which
    # would feed the transformer) is only returned for inspection.

    # single NCHW -> NHWC transpose; flatten keeps (t, h, w)-major order as in
    # the reference `.view(1, bs, hidden, -1)` flatten of class_proj output.
    x_nhwc = jnp.transpose(feat, (0, 2, 3, 1)).reshape(T, HW, Cb)

    # GroupNorm one-hot reduce matrices (shared across grid steps)
    cg = D // gn_groups
    ch_grp = jnp.arange(D, dtype=jnp.int32) // cg
    grp = jnp.arange(gn_groups, dtype=jnp.int32)
    onehot_cg = (ch_grp[:, None] == grp[None, :]).astype(f32)       # (C, G)
    onehot_gc = jnp.transpose(onehot_cg)                            # (G, C)

    # packed weights: [input_proj | class_proj] and [Wk | Wv]
    wxc = jnp.concatenate([params["inproj_w"], params["cproj_w"]], axis=1).astype(bf16)
    bxc = jnp.concatenate([params["inproj_b"], params["cproj_b"]]).reshape(1, 2 * D)
    wkv = jnp.concatenate([params["wk"], params["wv"]], axis=1).astype(bf16)
    bkv = jnp.concatenate([params["bk"], params["bv"]]).reshape(1, 2 * D)

    # ---- Kernel A: conv1x1 + GroupNorm, class_proj, K/V projections (per frame)
    src_proj, k_p, v_p = frame_projection(
        x_nhwc, wxc, bxc,
        params["inproj_gamma"].reshape(1, D), params["inproj_beta"].reshape(1, D),
        onehot_cg, onehot_gc, wkv, bkv, eps=1e-5)
    k_p = k_p.reshape(S, D)
    v_p = v_p.reshape(S, D)

    # ---- pack the three narrow heads into one lane-dense output slab
    off_fc = 0
    off_cb = num_classes
    off_bb = num_classes + 3
    out_w = ((off_bb + 4 + 127) // 128) * 128
    wfc = jnp.zeros((D, out_w), f32).at[:, off_fc:off_fc + num_classes].set(params["fc_w"])
    wcb = jnp.zeros((D, out_w), f32).at[:, off_cb:off_cb + 3].set(params["cls_b_w"])
    wbb = jnp.zeros((D, out_w), f32).at[:, off_bb:off_bb + 4].set(params["mlp_w3"])
    wh = jnp.concatenate([wfc, wcb, wbb], axis=0).astype(bf16)       # (3D, OW)
    bh = (jnp.zeros((1, out_w), f32)
          .at[0, off_fc:off_fc + num_classes].set(params["fc_b"])
          .at[0, off_cb:off_cb + 3].set(params["cls_b_b"])
          .at[0, off_bb:off_bb + 4].set(params["mlp_b3"]))

    # ---- Kernel B: cross-attention + class_fc + class_embed_b + bbox MLP
    slab = fused_attention_head(
        hs.reshape(LB, Q, D), hs_box.reshape(LB, T, Q, D), k_p, v_p,
        params["wq"].astype(bf16), params["bq"].reshape(1, D),
        params["wo"].astype(bf16), params["bo"].reshape(1, D),
        params["mlp_w1"].astype(bf16), params["mlp_b1"].reshape(1, D),
        params["mlp_w2"].astype(bf16), params["mlp_b2"].reshape(1, D),
        wh, bh, num_heads=num_heads, off_bbox=off_bb)

    slab = slab.reshape(L, B, Q, out_w)
    outputs_class = slab[..., off_fc:off_fc + num_classes]
    outputs_class_b = slab[..., off_cb:off_cb + 3]
    outputs_coord = slab[..., off_bb:off_bb + 4]

    return {
        "pred_logits": outputs_class[-1],
        "pred_boxes": outputs_coord[-1],
        "pred_logits_b": outputs_class_b[-1],
        "src_proj_l0": src_proj,
    }


# --------------------------------------------------------------------------
# Deterministic synthetic parameter initialization
# --------------------------------------------------------------------------
def init_params(key, *, cb, hidden, num_classes):
    ks = jax.random.split(key, 20)

    def w(k, shape, scale=0.02):
        return jax.random.normal(k, shape, jnp.float32) * scale

    p = {}
    p["inproj_w"] = w(ks[0], (cb, hidden))
    p["inproj_b"] = w(ks[1], (hidden,))
    p["inproj_gamma"] = jnp.ones((hidden,), jnp.float32)
    p["inproj_beta"] = jnp.zeros((hidden,), jnp.float32)
    p["cls_b_w"] = w(ks[2], (hidden, 3))
    p["cls_b_b"] = w(ks[3], (3,))
    p["cproj_w"] = w(ks[4], (cb, hidden))
    p["cproj_b"] = w(ks[5], (hidden,))
    p["wq"] = w(ks[6], (hidden, hidden)); p["bq"] = w(ks[7], (hidden,))
    p["wk"] = w(ks[8], (hidden, hidden)); p["bk"] = w(ks[9], (hidden,))
    p["wv"] = w(ks[10], (hidden, hidden)); p["bv"] = w(ks[11], (hidden,))
    p["wo"] = w(ks[12], (hidden, hidden)); p["bo"] = w(ks[13], (hidden,))
    p["fc_w"] = w(ks[14], (hidden, num_classes)); p["fc_b"] = w(ks[15], (num_classes,))
    p["mlp_w1"] = w(ks[16], (hidden, hidden)); p["mlp_b1"] = jnp.zeros((hidden,), jnp.float32)
    p["mlp_w2"] = w(ks[17], (hidden, hidden)); p["mlp_b2"] = jnp.zeros((hidden,), jnp.float32)
    p["mlp_w3"] = w(ks[18], (hidden, 4)); p["mlp_b3"] = jnp.zeros((4,), jnp.float32)
    return p


if __name__ == "__main__":
    key = jax.random.PRNGKey(0)
    k_feat, k_hs, k_hsb, k_par = jax.random.split(key, 4)

    # small shapes: bs=1, num_frames=4, backbone channels=64, H=W=8,
    # decoder layers=2, num_queries=8, hidden_dim=256 (cross_attn hardcodes 256)
    T, Cb, H, W = 4, 64, 8, 8
    L, B, Q, D = 2, 1, 8, 256
    NUM_CLASSES = 16

    feat = jax.random.normal(k_feat, (T, Cb, H, W), jnp.float32)
    hs = jax.random.normal(k_hs, (L, B, Q, D), jnp.float32)
    hs_box = jax.random.normal(k_hsb, (L, B, T, Q, D), jnp.float32)
    params = init_params(k_par, cb=Cb, hidden=D, num_classes=NUM_CLASSES)

    out = jax.jit(detr_head_forward)(params, feat, hs, hs_box)
    jax.block_until_ready(out)

    assert out["pred_logits"].shape == (B, Q, NUM_CLASSES)
    assert out["pred_boxes"].shape == (B, Q, 4)
    assert out["pred_logits_b"].shape == (B, Q, 3)
    assert out["src_proj_l0"].shape == (T, H * W, D)
    print("KERNEL_OK")
</pallas_src>

<mosaic_0001>
module attributes {stable_mosaic.version = 11 : i64} {
  func.func @_frame_proj_kernel(%arg0: i32, %arg1: memref<1x64x64xf32, #tpu.memory_space<vmem>>, %arg2: memref<64x512xbf16, #tpu.memory_space<vmem>>, %arg3: memref<1x512xf32, #tpu.memory_space<vmem>>, %arg4: memref<1x256xf32, #tpu.memory_space<vmem>>, %arg5: memref<1x256xf32, #tpu.memory_space<vmem>>, %arg6: memref<256x32xf32, #tpu.memory_space<vmem>>, %arg7: memref<32x256xf32, #tpu.memory_space<vmem>>, %arg8: memref<256x512xbf16, #tpu.memory_space<vmem>>, %arg9: memref<1x512xf32, #tpu.memory_space<vmem>>, %arg10: memref<1x64x256xf32, #tpu.memory_space<vmem>>, %arg11: memref<1x64x256xbf16, #tpu.memory_space<vmem>>, %arg12: memref<1x64x256xbf16, #tpu.memory_space<vmem>>) attributes {dimension_semantics = [#tpu.dimension_semantics<parallel>], iteration_bounds = array<i64: 4>, scalar_prefetch = 0 : i64, scratch_operands = 0 : i64, tpu.core_type = #tpu.core_type<tc>, window_params = [{transform_indices = @transform_0, window_bounds = array<i64: 1, 64, 64>}, {pipeline_mode = #tpu.pipeline_mode<synchronous>, transform_indices = @transform_1, window_bounds = array<i64: 64, 512>}, {pipeline_mode = #tpu.pipeline_mode<synchronous>, transform_indices = @transform_2, window_bounds = array<i64: 1, 512>}, {pipeline_mode = #tpu.pipeline_mode<synchronous>, transform_indices = @transform_3, window_bounds = array<i64: 1, 256>}, {pipeline_mode = #tpu.pipeline_mode<synchronous>, transform_indices = @transform_4, window_bounds = array<i64: 1, 256>}, {pipeline_mode = #tpu.pipeline_mode<synchronous>, transform_indices = @transform_5, window_bounds = array<i64: 256, 32>}, {pipeline_mode = #tpu.pipeline_mode<synchronous>, transform_indices = @transform_6, window_bounds = array<i64: 32, 256>}, {pipeline_mode = #tpu.pipeline_mode<synchronous>, transform_indices = @transform_7, window_bounds = array<i64: 256, 512>}, {pipeline_mode = #tpu.pipeline_mode<synchronous>, transform_indices = @transform_8, window_bounds = array<i64: 1, 512>}, {transform_indices = @transform_9, window_bounds = array<i64: 1, 64, 256>}, {transform_indices = @transform_10, window_bounds = array<i64: 1, 64, 256>}, {transform_indices = @transform_11, window_bounds = array<i64: 1, 64, 256>}]} {
    %c0 = arith.constant 0 : index
    %c0_0 = arith.constant 0 : index
    %c0_1 = arith.constant 0 : index
    %0 = vector.load %arg1[%c0, %c0_0, %c0_1] : memref<1x64x64xf32, #tpu.memory_space<vmem>>, vector<1x64x64xf32>
    %1 = vector.shape_cast %0 : vector<1x64x64xf32> to vector<64x64xf32>
    %2 = arith.truncf %1 : vector<64x64xf32> to vector<64x64xbf16>
    %c0_2 = arith.constant 0 : index
    %c0_3 = arith.constant 0 : index
    %3 = vector.load %arg2[%c0_2, %c0_3] : memref<64x512xbf16, #tpu.memory_space<vmem>>, vector<64x512xbf16>
    %cst = arith.constant dense<0.000000e+00> : vector<64x512xf32>
    %4 = tpu.matmul %2, %3, %cst {dimension_numbers = #tpu.dot_dimension_numbers<[1], [0], [0], [1], [0, 0, 1, 1], [], []>} : vector<64x64xbf16>, vector<64x512xbf16>, vector<64x512xf32> -> vector<64x512xf32>
    %c0_4 = arith.constant 0 : index
    %c0_5 = arith.constant 0 : index
    %5 = vector.load %arg3[%c0_4, %c0_5] : memref<1x512xf32, #tpu.memory_space<vmem>>, vector<1x512xf32>
    %6 = vector.broadcast %5 : vector<1x512xf32> to vector<64x512xf32>
    %7 = arith.addf %4, %6 : vector<64x512xf32>
    %8 = vector.extract_strided_slice %7 {offsets = [0, 0], sizes = [64, 256], strides = [1, 1]} : vector<64x512xf32> to vector<64x256xf32>
    %9 = vector.extract_strided_slice %7 {offsets = [0, 256], sizes = [64, 256], strides = [1, 1]} : vector<64x512xf32> to vector<64x256xf32>
    %cst_6 = arith.constant dense<0.000000e+00> : vector<256xf32>
    %10 = vector.multi_reduction <add>, %8, %cst_6 [0] : vector<64x256xf32> to vector<256xf32>
    %11 = vector.shape_cast %10 : vector<256xf32> to vector<1x256xf32>
    %c0_7 = arith.constant 0 : index
    %c0_8 = arith.constant 0 : index
    %12 = vector.load %arg6[%c0_7, %c0_8] : memref<256x32xf32, #tpu.memory_space<vmem>>, vector<256x32xf32>
    %cst_9 = arith.constant dense<0.000000e+00> : vector<1x32xf32>
    %13 = tpu.matmul %11, %12, %cst_9 {dimension_numbers = #tpu.dot_dimension_numbers<[1], [0], [0], [1], [0, 0, 1, 1], [], []>} : vector<1x256xf32>, vector<256x32xf32>, vector<1x32xf32> -> vector<1x32xf32>
    %cst_10 = arith.constant 5.120000e+02 : f32
    %14 = vector.broadcast %cst_10 : f32 to vector<1x32xf32>
    %15 = arith.divf %13, %14 : vector<1x32xf32>
    %c0_11 = arith.constant 0 : index
    %c0_12 = arith.constant 0 : index
    %16 = vector.load %arg7[%c0_11, %c0_12] : memref<32x256xf32, #tpu.memory_space<vmem>>, vector<32x256xf32>
    %cst_13 = arith.constant dense<0.000000e+00> : vector<1x256xf32>
    %17 = tpu.matmul %15, %16, %cst_13 {dimension_numbers = #tpu.dot_dimension_numbers<[1], [0], [0], [1], [0, 0, 1, 1], [], []>} : vector<1x32xf32>, vector<32x256xf32>, vector<1x256xf32> -> vector<1x256xf32>
    %18 = vector.broadcast %17 : vector<1x256xf32> to vector<64x256xf32>
    %19 = arith.subf %8, %18 : vector<64x256xf32>
    %20 = arith.mulf %19, %19 : vector<64x256xf32>
    %cst_14 = arith.constant dense<0.000000e+00> : vector<256xf32>
    %21 = vector.multi_reduction <add>, %20, %cst_14 [0] : vector<64x256xf32> to vector<256xf32>
    %22 = vector.shape_cast %21 : vector<256xf32> to vector<1x256xf32>
    %c0_15 = arith.constant 0 : index
    %c0_16 = arith.constant 0 : index
    %23 = vector.load %arg6[%c0_15, %c0_16] : memref<256x32xf32, #tpu.memory_space<vmem>>, vector<256x32xf32>
    %cst_17 = arith.constant dense<0.000000e+00> : vector<1x32xf32>
    %24 = tpu.matmul %22, %23, %cst_17 {dimension_numbers = #tpu.dot_dimension_numbers<[1], [0], [0], [1], [0, 0, 1, 1], [], []>} : vector<1x256xf32>, vector<256x32xf32>, vector<1x32xf32> -> vector<1x32xf32>
    %cst_18 = arith.constant 5.120000e+02 : f32
    %25 = vector.broadcast %cst_18 : f32 to vector<1x32xf32>
    %26 = arith.divf %24, %25 : vector<1x32xf32>
    %c0_19 = arith.constant 0 : index
    %c0_20 = arith.constant 0 : index
    %27 = vector.load %arg7[%c0_19, %c0_20] : memref<32x256xf32, #tpu.memory_space<vmem>>, vector<32x256xf32>
    %cst_21 = arith.constant dense<0.000000e+00> : vector<1x256xf32>
    %28 = tpu.matmul %26, %27, %cst_21 {dimension_numbers = #tpu.dot_dimension_numbers<[1], [0], [0], [1], [0, 0, 1, 1], [], []>} : vector<1x32xf32>, vector<32x256xf32>, vector<1x256xf32> -> vector<1x256xf32>
    %cst_22 = arith.constant 9.99999974E-6 : f32
    %29 = vector.broadcast %cst_22 : f32 to vector<1x256xf32>
    %30 = arith.addf %28, %29 : vector<1x256xf32>
    %31 = math.rsqrt %30 : vector<1x256xf32>
    %32 = vector.broadcast %31 : vector<1x256xf32> to vector<64x256xf32>
    %33 = arith.mulf %19, %32 : vector<64x256xf32>
    %c0_23 = arith.constant 0 : index
    %c0_24 = arith.constant 0 : index
    %34 = vector.load %arg4[%c0_23, %c0_24] : memref<1x256xf32, #tpu.memory_space<vmem>>, vector<1x256xf32>
    %35 = vector.broadcast %34 : vector<1x256xf32> to vector<64x256xf32>
    %36 = arith.mulf %33, %35 : vector<64x256xf32>
    %c0_25 = arith.constant 0 : index
    %c0_26 = arith.constant 0 : index
    %37 = vector.load %arg5[%c0_25, %c0_26] : memref<1x256xf32, #tpu.memory_space<vmem>>, vector<1x256xf32>
    %38 = vector.broadcast %37 : vector<1x256xf32> to vector<64x256xf32>
    %39 = arith.addf %36, %38 : vector<64x256xf32>
    %c0_27 = arith.constant 0 : index
    %c0_28 = arith.constant 0 : index
    %c0_29 = arith.constant 0 : index
    %40 = vector.load %arg10[%c0_27, %c0_28, %c0_29] : memref<1x64x256xf32, #tpu.memory_space<vmem>>, vector<1x64x256xf32>
    %41 = vector.shape_cast %40 : vector<1x64x256xf32> to vector<64x256xf32>
    %42 = vector.shape_cast %39 : vector<64x256xf32> to vector<1x64x256xf32>
    tpu.vector_store %arg10[%c0_27, %c0_28, %c0_29], %42 {strides = array<i32>} : memref<1x64x256xf32, #tpu.memory_space<vmem>>, vector<1x64x256xf32>,
    %43 = arith.truncf %9 : vector<64x256xf32> to vector<64x256xbf16>
    %c0_30 = arith.constant 0 : index
    %c0_31 = arith.constant 0 : index
    %44 = vector.load %arg8[%c0_30, %c0_31] : memref<256x512xbf16, #tpu.memory_space<vmem>>, vector<256x512xbf16>
    %cst_32 = arith.constant dense<0.000000e+00> : vector<64x512xf32>
    %45 = tpu.matmul %43, %44, %cst_32 {dimension_numbers = #tpu.dot_dimension_numbers<[1], [0], [0], [1], [0, 0, 1, 1], [], []>} : vector<64x256xbf16>, vector<256x512xbf16>, vector<64x512xf32> -> vector<64x512xf32>
    %c0_33 = arith.constant 0 : index
    %c0_34 = arith.constant 0 : index
    %46 = vector.load %arg9[%c0_33, %c0_34] : memref<1x512xf32, #tpu.memory_space<vmem>>, vector<1x512xf32>
    %47 = vector.broadcast %46 : vector<1x512xf32> to vector<64x512xf32>
    %48 = arith.addf %45, %47 : vector<64x512xf32>
    %49 = vector.extract_strided_slice %48 {offsets = [0, 0], sizes = [64, 256], strides = [1, 1]} : vector<64x512xf32> to vector<64x256xf32>
    %50 = arith.truncf %49 : vector<64x256xf32> to vector<64x256xbf16>
    %c0_35 = arith.constant 0 : index
    %c0_36 = arith.constant 0 : index
    %c0_37 = arith.constant 0 : index
    %51 = vector.load %arg11[%c0_35, %c0_36, %c0_37] : memref<1x64x256xbf16, #tpu.memory_space<vmem>>, vector<1x64x256xbf16>
    %52 = vector.shape_cast %51 : vector<1x64x256xbf16> to vector<64x256xbf16>
    %53 = vector.shape_cast %50 : vector<64x256xbf16> to vector<1x64x256xbf16>
    tpu.vector_store %arg11[%c0_35, %c0_36, %c0_37], %53 {strides = array<i32>} : memref<1x64x256xbf16, #tpu.memory_space<vmem>>, vector<1x64x256xbf16>,
    %54 = vector.extract_strided_slice %48 {offsets = [0, 256], sizes = [64, 256], strides = [1, 1]} : vector<64x512xf32> to vector<64x256xf32>
    %55 = arith.truncf %54 : vector<64x256xf32> to vector<64x256xbf16>
    %c0_38 = arith.constant 0 : index
    %c0_39 = arith.constant 0 : index
    %c0_40 = arith.constant 0 : index
    %56 = vector.load %arg12[%c0_38, %c0_39, %c0_40] : memref<1x64x256xbf16, #tpu.memory_space<vmem>>, vector<1x64x256xbf16>
    %57 = vector.shape_cast %56 : vector<1x64x256xbf16> to vector<64x256xbf16>
    %58 = vector.shape_cast %55 : vector<64x256xbf16> to vector<1x64x256xbf16>
    tpu.vector_store %arg12[%c0_38, %c0_39, %c0_40], %58 {strides = array<i32>} : memref<1x64x256xbf16, #tpu.memory_space<vmem>>, vector<1x64x256xbf16>,
    return
  }
  func.func @transform_0(%arg0: i32) -> (i32, i32, i32) {
    %c0_i32 = arith.constant 0 : i32
    %c0_i32_0 = arith.constant 0 : i32
    %c0_i32_1 = arith.constant 0 : i32
    return %arg0, %c0_i32, %c0_i32_0 : i32, i32, i32
  }
  func.func @transform_1(%arg0: i32) -> (i32, i32) {
    %c0_i32 = arith.constant 0 : i32
    %c0_i32_0 = arith.constant 0 : i32
    %c0_i32_1 = arith.constant 0 : i32
    return %c0_i32, %c0_i32_0 : i32, i32
  }
  func.func @transform_2(%arg0: i32) -> (i32, i32) {
    %c0_i32 = arith.constant 0 : i32
    %c0_i32_0 = arith.constant 0 : i32
    %c0_i32_1 = arith.constant 0 : i32
    return %c0_i32, %c0_i32_0 : i32, i32
  }
  func.func @transform_3(%arg0: i32) -> (i32, i32) {
    %c0_i32 = arith.constant 0 : i32
    %c0_i32_0 = arith.constant 0 : i32
    %c0_i32_1 = arith.constant 0 : i32
    return %c0_i32, %c0_i32_0 : i32, i32
  }
  func.func @transform_4(%arg0: i32) -> (i32, i32) {
    %c0_i32 = arith.constant 0 : i32
    %c0_i32_0 = arith.constant 0 : i32
    %c0_i32_1 = arith.constant 0 : i32
    return %c0_i32, %c0_i32_0 : i32, i32
  }
  func.func @transform_5(%arg0: i32) -> (i32, i32) {
    %c0_i32 = arith.constant 0 : i32
    %c0_i32_0 = arith.constant 0 : i32
    %c0_i32_1 = arith.constant 0 : i32
    return %c0_i32, %c0_i32_0 : i32, i32
  }
  func.func @transform_6(%arg0: i32) -> (i32, i32) {
    %c0_i32 = arith.constant 0 : i32
    %c0_i32_0 = arith.constant 0 : i32
    %c0_i32_1 = arith.constant 0 : i32
    return %c0_i32, %c0_i32_0 : i32, i32
  }
  func.func @transform_7(%arg0: i32) -> (i32, i32) {
    %c0_i32 = arith.constant 0 : i32
    %c0_i32_0 = arith.constant 0 : i32
    %c0_i32_1 = arith.constant 0 : i32
    return %c0_i32, %c0_i32_0 : i32, i32
  }
  func.func @transform_8(%arg0: i32) -> (i32, i32) {
    %c0_i32 = arith.constant 0 : i32
    %c0_i32_0 = arith.constant 0 : i32
    %c0_i32_1 = arith.constant 0 : i32
    return %c0_i32, %c0_i32_0 : i32, i32
  }
  func.func @transform_9(%arg0: i32) -> (i32, i32, i32) {
    %c0_i32 = arith.constant 0 : i32
    %c0_i32_0 = arith.constant 0 : i32
    %c0_i32_1 = arith.constant 0 : i32
    return %arg0, %c0_i32, %c0_i32_0 : i32, i32, i32
  }
  func.func @transform_10(%arg0: i32) -> (i32, i32, i32) {
    %c0_i32 = arith.constant 0 : i32
    %c0_i32_0 = arith.constant 0 : i32
    %c0_i32_1 = arith.constant 0 : i32
    return %arg0, %c0_i32, %c0_i32_0 : i32, i32, i32
  }
  func.func @transform_11(%arg0: i32) -> (i32, i32, i32) {
    %c0_i32 = arith.constant 0 : i32
    %c0_i32_0 = arith.constant 0 : i32
    %c0_i32_1 = arith.constant 0 : i32
    return %arg0, %c0_i32, %c0_i32_0 : i32, i32, i32
  }
}

module attributes {stable_mosaic.version = 11 : i64} {
  func.func @_fused_head_kernel(%arg0: i32, %arg1: memref<1x8x256xf32, #tpu.memory_space<vmem>>, %arg2: memref<1x4x8x256xf32, #tpu.memory_space<vmem>>, %arg3: memref<256x256xbf16, #tpu.memory_space<vmem>>, %arg4: memref<256x256xbf16, #tpu.memory_space<vmem>>, %arg5: memref<256x256xbf16, #tpu.memory_space<vmem>>, %arg6: memref<1x256xf32, #tpu.memory_space<vmem>>, %arg7: memref<256x256xbf16, #tpu.memory_space<vmem>>, %arg8: memref<1x256xf32, #tpu.memory_space<vmem>>, %arg9: memref<256x256xbf16, #tpu.memory_space<vmem>>, %arg10: memref<1x256xf32, #tpu.memory_space<vmem>>, %arg11: memref<256x256xbf16, #tpu.memory_space<vmem>>, %arg12: memref<1x256xf32, #tpu.memory_space<vmem>>, %arg13: memref<768x128xbf16, #tpu.memory_space<vmem>>, %arg14: memref<1x128xf32, #tpu.memory_space<vmem>>, %arg15: memref<1x8x128xf32, #tpu.memory_space<vmem>>) attributes {dimension_semantics = [#tpu.dimension_semantics<parallel>], iteration_bounds = array<i64: 2>, scalar_prefetch = 0 : i64, scratch_operands = 0 : i64, tpu.core_type = #tpu.core_type<tc>, window_params = [{transform_indices = @transform_0, window_bounds = array<i64: 1, 8, 256>}, {transform_indices = @transform_1, window_bounds = array<i64: 1, 4, 8, 256>}, {pipeline_mode = #tpu.pipeline_mode<synchronous>, transform_indices = @transform_2, window_bounds = array<i64: 256, 256>}, {pipeline_mode = #tpu.pipeline_mode<synchronous>, transform_indices = @transform_3, window_bounds = array<i64: 256, 256>}, {pipeline_mode = #tpu.pipeline_mode<synchronous>, transform_indices = @transform_4, window_bounds = array<i64: 256, 256>}, {pipeline_mode = #tpu.pipeline_mode<synchronous>, transform_indices = @transform_5, window_bounds = array<i64: 1, 256>}, {pipeline_mode = #tpu.pipeline_mode<synchronous>, transform_indices = @transform_6, window_bounds = array<i64: 256, 256>}, {pipeline_mode = #tpu.pipeline_mode<synchronous>, transform_indices = @transform_7, window_bounds = array<i64: 1, 256>}, {pipeline_mode = #tpu.pipeline_mode<synchronous>, transform_indices = @transform_8, window_bounds = array<i64: 256, 256>}, {pipeline_mode = #tpu.pipeline_mode<synchronous>, transform_indices = @transform_9, window_bounds = array<i64: 1, 256>}, {pipeline_mode = #tpu.pipeline_mode<synchronous>, transform_indices = @transform_10, window_bounds = array<i64: 256, 256>}, {pipeline_mode = #tpu.pipeline_mode<synchronous>, transform_indices = @transform_11, window_bounds = array<i64: 1, 256>}, {pipeline_mode = #tpu.pipeline_mode<synchronous>, transform_indices = @transform_12, window_bounds = array<i64: 768, 128>}, {pipeline_mode = #tpu.pipeline_mode<synchronous>, transform_indices = @transform_13, window_bounds = array<i64: 1, 128>}, {transform_indices = @transform_14, window_bounds = array<i64: 1, 8, 128>}]} {
    %c0 = arith.constant 0 : index
    %c0_0 = arith.constant 0 : index
    %c0_1 = arith.constant 0 : index
    %0 = vector.load %arg1[%c0, %c0_0, %c0_1] : memref<1x8x256xf32, #tpu.memory_space<vmem>>, vector<1x8x256xf32>
    %1 = vector.shape_cast %0 : vector<1x8x256xf32> to vector<8x256xf32>
    %2 = arith.truncf %1 : vector<8x256xf32> to vector<8x256xbf16>
    %c0_2 = arith.constant 0 : index
    %c0_3 = arith.constant 0 : index
    %3 = vector.load %arg5[%c0_2, %c0_3] : memref<256x256xbf16, #tpu.memory_space<vmem>>, vector<256x256xbf16>
    %cst = arith.constant dense<0.000000e+00> : vector<8x256xf32>
    %4 = tpu.matmul %2, %3, %cst {dimension_numbers = #tpu.dot_dimension_numbers<[1], [0], [0], [1], [0, 0, 1, 1], [], []>} : vector<8x256xbf16>, vector<256x256xbf16>, vector<8x256xf32> -> vector<8x256xf32>
    %c0_4 = arith.constant 0 : index
    %c0_5 = arith.constant 0 : index
    %5 = vector.load %arg6[%c0_4, %c0_5] : memref<1x256xf32, #tpu.memory_space<vmem>>, vector<1x256xf32>
    %6 = vector.broadcast %5 : vector<1x256xf32> to vector<8x256xf32>
    %7 = arith.addf %4, %6 : vector<8x256xf32>
    %cst_6 = arith.constant 0.176776692 : f32
    %8 = vector.broadcast %cst_6 : f32 to vector<8x256xf32>
    %9 = arith.mulf %7, %8 : vector<8x256xf32>
    %10 = arith.truncf %9 : vector<8x256xf32> to vector<8x256xbf16>
    %cst_7 = arith.constant 0.000000e+00 : f32
    %11 = vector.broadcast %cst_7 : f32 to vector<8x256xf32>
    %12 = vector.extract_strided_slice %10 {offsets = [0, 0], sizes = [8, 32], strides = [1, 1]} : vector<8x256xbf16> to vector<8x32xbf16>
    %c0_8 = arith.constant 0 : index
    %c0_9 = arith.constant 0 : index
    %13 = vector.load %arg3[%c0_8, %c0_9] : memref<256x256xbf16, #tpu.memory_space<vmem>>, vector<256x32xbf16>
    %cst_10 = arith.constant dense<0.000000e+00> : vector<8x256xf32>
    %14 = tpu.matmul %12, %13, %cst_10 {dimension_numbers = #tpu.dot_dimension_numbers<[1], [1], [0], [0], [0, 0, 1, 0], [], []>} : vector<8x32xbf16>, vector<256x32xbf16>, vector<8x256xf32> -> vector<8x256xf32>
    %cst_11 = arith.constant dense<0xFF800000> : vector<8xf32>
    %15 = vector.multi_reduction <maximumf>, %14, %cst_11 [1] : vector<8x256xf32> to vector<8xf32>
    %16 = vector.shape_cast %15 : vector<8xf32> to vector<8x1xf32>
    %17 = vector.broadcast %16 : vector<8x1xf32> to vector<8x256xf32>
    %18 = arith.subf %14, %17 : vector<8x256xf32>
    %19 = math.exp %18 : vector<8x256xf32>
    %cst_12 = arith.constant dense<0.000000e+00> : vector<8xf32>
    %20 = vector.multi_reduction <add>, %19, %cst_12 [1] : vector<8x256xf32> to vector<8xf32>
    %21 = vector.shape_cast %20 : vector<8xf32> to vector<8x1xf32>
    %22 = tpu.reciprocal %21 {approx = true} : vector<8x1xf32> -> vector<8x1xf32>
    %23 = vector.broadcast %22 : vector<8x1xf32> to vector<8x256xf32>
    %24 = arith.mulf %19, %23 : vector<8x256xf32>
    %25 = arith.truncf %24 : vector<8x256xf32> to vector<8x256xbf16>
    %c0_13 = arith.constant 0 : index
    %c0_14 = arith.constant 0 : index
    %26 = vector.load %arg4[%c0_13, %c0_14] : memref<256x256xbf16, #tpu.memory_space<vmem>>, vector<256x32xbf16>
    %cst_15 = arith.constant dense<0.000000e+00> : vector<8x32xf32>
    %27 = tpu.matmul %25, %26, %cst_15 {dimension_numbers = #tpu.dot_dimension_numbers<[1], [0], [0], [1], [0, 0, 1, 1], [], []>} : vector<8x256xbf16>, vector<256x32xbf16>, vector<8x32xf32> -> vector<8x32xf32>
    %28 = arith.truncf %27 : vector<8x32xf32> to vector<8x32xbf16>
    %c0_16 = arith.constant 0 : index
    %c0_17 = arith.constant 0 : index
    %29 = vector.load %arg7[%c0_16, %c0_17] : memref<256x256xbf16, #tpu.memory_space<vmem>>, vector<32x256xbf16>
    %cst_18 = arith.constant dense<0.000000e+00> : vector<8x256xf32>
    %30 = tpu.matmul %28, %29, %cst_18 {dimension_numbers = #tpu.dot_dimension_numbers<[1], [0], [0], [1], [0, 0, 1, 1], [], []>} : vector<8x32xbf16>, vector<32x256xbf16>, vector<8x256xf32> -> vector<8x256xf32>
    %31 = arith.addf %11, %30 : vector<8x256xf32>
    %32 = vector.extract_strided_slice %10 {offsets = [0, 32], sizes = [8, 32], strides = [1, 1]} : vector<8x256xbf16> to vector<8x32xbf16>
    %c0_19 = arith.constant 0 : index
    %c32 = arith.constant 32 : index
    %33 = vector.load %arg3[%c0_19, %c32] : memref<256x256xbf16, #tpu.memory_space<vmem>>, vector<256x32xbf16>
    %cst_20 = arith.constant dense<0.000000e+00> : vector<8x256xf32>
    %34 = tpu.matmul %32, %33, %cst_20 {dimension_numbers = #tpu.dot_dimension_numbers<[1], [1], [0], [0], [0, 0, 1, 0], [], []>} : vector<8x32xbf16>, vector<256x32xbf16>, vector<8x256xf32> -> vector<8x256xf32>
    %cst_21 = arith.constant dense<0xFF800000> : vector<8xf32>
    %35 = vector.multi_reduction <maximumf>, %34, %cst_21 [1] : vector<8x256xf32> to vector<8xf32>
    %36 = vector.shape_cast %35 : vector<8xf32> to vector<8x1xf32>
    %37 = vector.broadcast %36 : vector<8x1xf32> to vector<8x256xf32>
    %38 = arith.subf %34, %37 : vector<8x256xf32>
    %39 = math.exp %38 : vector<8x256xf32>
    %cst_22 = arith.constant dense<0.000000e+00> : vector<8xf32>
    %40 = vector.multi_reduction <add>, %39, %cst_22 [1] : vector<8x256xf32> to vector<8xf32>
    %41 = vector.shape_cast %40 : vector<8xf32> to vector<8x1xf32>
    %42 = tpu.reciprocal %41 {approx = true} : vector<8x1xf32> -> vector<8x1xf32>
    %43 = vector.broadcast %42 : vector<8x1xf32> to vector<8x256xf32>
    %44 = arith.mulf %39, %43 : vector<8x256xf32>
    %45 = arith.truncf %44 : vector<8x256xf32> to vector<8x256xbf16>
    %c0_23 = arith.constant 0 : index
    %c32_24 = arith.constant 32 : index
    %46 = vector.load %arg4[%c0_23, %c32_24] : memref<256x256xbf16, #tpu.memory_space<vmem>>, vector<256x32xbf16>
    %cst_25 = arith.constant dense<0.000000e+00> : vector<8x32xf32>
    %47 = tpu.matmul %45, %46, %cst_25 {dimension_numbers = #tpu.dot_dimension_numbers<[1], [0], [0], [1], [0, 0, 1, 1], [], []>} : vector<8x256xbf16>, vector<256x32xbf16>, vector<8x32xf32> -> vector<8x32xf32>
    %48 = arith.truncf %47 : vector<8x32xf32> to vector<8x32xbf16>
    %c32_26 = arith.constant 32 : index
    %c0_27 = arith.constant 0 : index
    %49 = vector.load %arg7[%c32_26, %c0_27] : memref<256x256xbf16, #tpu.memory_space<vmem>>, vector<32x256xbf16>
    %cst_28 = arith.constant dense<0.000000e+00> : vector<8x256xf32>
    %50 = tpu.matmul %48, %49, %cst_28 {dimension_numbers = #tpu.dot_dimension_numbers<[1], [0], [0], [1], [0, 0, 1, 1], [], []>} : vector<8x32xbf16>, vector<32x256xbf16>, vector<8x256xf32> -> vector<8x256xf32>
    %51 = arith.addf %31, %50 : vector<8x256xf32>
    %52 = vector.extract_strided_slice %10 {offsets = [0, 64], sizes = [8, 32], strides = [1, 1]} : vector<8x256xbf16> to vector<8x32xbf16>
    %c0_29 = arith.constant 0 : index
    %c64 = arith.constant 64 : index
    %53 = vector.load %arg3[%c0_29, %c64] : memref<256x256xbf16, #tpu.memory_space<vmem>>, vector<256x32xbf16>
    %cst_30 = arith.constant dense<0.000000e+00> : vector<8x256xf32>
    %54 = tpu.matmul %52, %53, %cst_30 {dimension_numbers = #tpu.dot_dimension_numbers<[1], [1], [0], [0], [0, 0, 1, 0], [], []>} : vector<8x32xbf16>, vector<256x32xbf16>, vector<8x256xf32> -> vector<8x256xf32>
    %cst_31 = arith.constant dense<0xFF800000> : vector<8xf32>
    %55 = vector.multi_reduction <maximumf>, %54, %cst_31 [1] : vector<8x256xf32> to vector<8xf32>
    %56 = vector.shape_cast %55 : vector<8xf32> to vector<8x1xf32>
    %57 = vector.broadcast %56 : vector<8x1xf32> to vector<8x256xf32>
    %58 = arith.subf %54, %57 : vector<8x256xf32>
    %59 = math.exp %58 : vector<8x256xf32>
    %cst_32 = arith.constant dense<0.000000e+00> : vector<8xf32>
    %60 = vector.multi_reduction <add>, %59, %cst_32 [1] : vector<8x256xf32> to vector<8xf32>
    %61 = vector.shape_cast %60 : vector<8xf32> to vector<8x1xf32>
    %62 = tpu.reciprocal %61 {approx = true} : vector<8x1xf32> -> vector<8x1xf32>
    %63 = vector.broadcast %62 : vector<8x1xf32> to vector<8x256xf32>
    %64 = arith.mulf %59, %63 : vector<8x256xf32>
    %65 = arith.truncf %64 : vector<8x256xf32> to vector<8x256xbf16>
    %c0_33 = arith.constant 0 : index
    %c64_34 = arith.constant 64 : index
    %66 = vector.load %arg4[%c0_33, %c64_34] : memref<256x256xbf16, #tpu.memory_space<vmem>>, vector<256x32xbf16>
    %cst_35 = arith.constant dense<0.000000e+00> : vector<8x32xf32>
    %67 = tpu.matmul %65, %66, %cst_35 {dimension_numbers = #tpu.dot_dimension_numbers<[1], [0], [0], [1], [0, 0, 1, 1], [], []>} : vector<8x256xbf16>, vector<256x32xbf16>, vector<8x32xf32> -> vector<8x32xf32>
    %68 = arith.truncf %67 : vector<8x32xf32> to vector<8x32xbf16>
    %c64_36 = arith.constant 64 : index
    %c0_37 = arith.constant 0 : index
    %69 = vector.load %arg7[%c64_36, %c0_37] : memref<256x256xbf16, #tpu.memory_space<vmem>>, vector<32x256xbf16>
    %cst_38 = arith.constant dense<0.000000e+00> : vector<8x256xf32>
    %70 = tpu.matmul %68, %69, %cst_38 {dimension_numbers = #tpu.dot_dimension_numbers<[1], [0], [0], [1], [0, 0, 1, 1], [], []>} : vector<8x32xbf16>, vector<32x256xbf16>, vector<8x256xf32> -> vector<8x256xf32>
    %71 = arith.addf %51, %70 : vector<8x256xf32>
    %72 = vector.extract_strided_slice %10 {offsets = [0, 96], sizes = [8, 32], strides = [1, 1]} : vector<8x256xbf16> to vector<8x32xbf16>
    %c0_39 = arith.constant 0 : index
    %c96 = arith.constant 96 : index
    %73 = vector.load %arg3[%c0_39, %c96] : memref<256x256xbf16, #tpu.memory_space<vmem>>, vector<256x32xbf16>
    %cst_40 = arith.constant dense<0.000000e+00> : vector<8x256xf32>
    %74 = tpu.matmul %72, %73, %cst_40 {dimension_numbers = #tpu.dot_dimension_numbers<[1], [1], [0], [0], [0, 0, 1, 0], [], []>} : vector<8x32xbf16>, vector<256x32xbf16>, vector<8x256xf32> -> vector<8x256xf32>
    %cst_41 = arith.constant dense<0xFF800000> : vector<8xf32>
    %75 = vector.multi_reduction <maximumf>, %74, %cst_41 [1] : vector<8x256xf32> to vector<8xf32>
    %76 = vector.shape_cast %75 : vector<8xf32> to vector<8x1xf32>
    %77 = vector.broadcast %76 : vector<8x1xf32> to vector<8x256xf32>
    %78 = arith.subf %74, %77 : vector<8x256xf32>
    %79 = math.exp %78 : vector<8x256xf32>
    %cst_42 = arith.constant dense<0.000000e+00> : vector<8xf32>
    %80 = vector.multi_reduction <add>, %79, %cst_42 [1] : vector<8x256xf32> to vector<8xf32>
    %81 = vector.shape_cast %80 : vector<8xf32> to vector<8x1xf32>
    %82 = tpu.reciprocal %81 {approx = true} : vector<8x1xf32> -> vector<8x1xf32>
    %83 = vector.broadcast %82 : vector<8x1xf32> to vector<8x256xf32>
    %84 = arith.mulf %79, %83 : vector<8x256xf32>
    %85 = arith.truncf %84 : vector<8x256xf32> to vector<8x256xbf16>
    %c0_43 = arith.constant 0 : index
    %c96_44 = arith.constant 96 : index
    %86 = vector.load %arg4[%c0_43, %c96_44] : memref<256x256xbf16, #tpu.memory_space<vmem>>, vector<256x32xbf16>
    %cst_45 = arith.constant dense<0.000000e+00> : vector<8x32xf32>
    %87 = tpu.matmul %85, %86, %cst_45 {dimension_numbers = #tpu.dot_dimension_numbers<[1], [0], [0], [1], [0, 0, 1, 1], [], []>} : vector<8x256xbf16>, vector<256x32xbf16>, vector<8x32xf32> -> vector<8x32xf32>
    %88 = arith.truncf %87 : vector<8x32xf32> to vector<8x32xbf16>
    %c96_46 = arith.constant 96 : index
    %c0_47 = arith.constant 0 : index
    %89 = vector.load %arg7[%c96_46, %c0_47] : memref<256x256xbf16, #tpu.memory_space<vmem>>, vector<32x256xbf16>
    %cst_48 = arith.constant dense<0.000000e+00> : vector<8x256xf32>
    %90 = tpu.matmul %88, %89, %cst_48 {dimension_numbers = #tpu.dot_dimension_numbers<[1], [0], [0], [1], [0, 0, 1, 1], [], []>} : vector<8x32xbf16>, vector<32x256xbf16>, vector<8x256xf32> -> vector<8x256xf32>
    %91 = arith.addf %71, %90 : vector<8x256xf32>
    %92 = vector.extract_strided_slice %10 {offsets = [0, 128], sizes = [8, 32], strides = [1, 1]} : vector<8x256xbf16> to vector<8x32xbf16>
    %c0_49 = arith.constant 0 : index
    %c128 = arith.constant 128 : index
    %93 = vector.load %arg3[%c0_49, %c128] : memref<256x256xbf16, #tpu.memory_space<vmem>>, vector<256x32xbf16>
    %cst_50 = arith.constant dense<0.000000e+00> : vector<8x256xf32>
    %94 = tpu.matmul %92, %93, %cst_50 {dimension_numbers = #tpu.dot_dimension_numbers<[1], [1], [0], [0], [0, 0, 1, 0], [], []>} : vector<8x32xbf16>, vector<256x32xbf16>, vector<8x256xf32> -> vector<8x256xf32>
    %cst_51 = arith.constant dense<0xFF800000> : vector<8xf32>
    %95 = vector.multi_reduction <maximumf>, %94, %cst_51 [1] : vector<8x256xf32> to vector<8xf32>
    %96 = vector.shape_cast %95 : vector<8xf32> to vector<8x1xf32>
    %97 = vector.broadcast %96 : vector<8x1xf32> to vector<8x256xf32>
    %98 = arith.subf %94, %97 : vector<8x256xf32>
    %99 = math.exp %98 : vector<8x256xf32>
    %cst_52 = arith.constant dense<0.000000e+00> : vector<8xf32>
    %100 = vector.multi_reduction <add>, %99, %cst_52 [1] : vector<8x256xf32> to vector<8xf32>
    %101 = vector.shape_cast %100 : vector<8xf32> to vector<8x1xf32>
    %102 = tpu.reciprocal %101 {approx = true} : vector<8x1xf32> -> vector<8x1xf32>
    %103 = vector.broadcast %102 : vector<8x1xf32> to vector<8x256xf32>
    %104 = arith.mulf %99, %103 : vector<8x256xf32>
    %105 = arith.truncf %104 : vector<8x256xf32> to vector<8x256xbf16>
    %c0_53 = arith.constant 0 : index
    %c128_54 = arith.constant 128 : index
    %106 = vector.load %arg4[%c0_53, %c128_54] : memref<256x256xbf16, #tpu.memory_space<vmem>>, vector<256x32xbf16>
    %cst_55 = arith.constant dense<0.000000e+00> : vector<8x32xf32>
    %107 = tpu.matmul %105, %106, %cst_55 {dimension_numbers = #tpu.dot_dimension_numbers<[1], [0], [0], [1], [0, 0, 1, 1], [], []>} : vector<8x256xbf16>, vector<256x32xbf16>, vector<8x32xf32> -> vector<8x32xf32>
    %108 = arith.truncf %107 : vector<8x32xf32> to vector<8x32xbf16>
    %c128_56 = arith.constant 128 : index
    %c0_57 = arith.constant 0 : index
    %109 = vector.load %arg7[%c128_56, %c0_57] : memref<256x256xbf16, #tpu.memory_space<vmem>>, vector<32x256xbf16>
    %cst_58 = arith.constant dense<0.000000e+00> : vector<8x256xf32>
    %110 = tpu.matmul %108, %109, %cst_58 {dimension_numbers = #tpu.dot_dimension_numbers<[1], [0], [0], [1], [0, 0, 1, 1], [], []>} : vector<8x32xbf16>, vector<32x256xbf16>, vector<8x256xf32> -> vector<8x256xf32>
    %111 = arith.addf %91, %110 : vector<8x256xf32>
    %112 = vector.extract_strided_slice %10 {offsets = [0, 160], sizes = [8, 32], strides = [1, 1]} : vector<8x256xbf16> to vector<8x32xbf16>
    %c0_59 = arith.constant 0 : index
    %c160 = arith.constant 160 : index
    %113 = vector.load %arg3[%c0_59, %c160] : memref<256x256xbf16, #tpu.memory_space<vmem>>, vector<256x32xbf16>
    %cst_60 = arith.constant dense<0.000000e+00> : vector<8x256xf32>
    %114 = tpu.matmul %112, %113, %cst_60 {dimension_numbers = #tpu.dot_dimension_numbers<[1], [1], [0], [0], [0, 0, 1, 0], [], []>} : vector<8x32xbf16>, vector<256x32xbf16>, vector<8x256xf32> -> vector<8x256xf32>
    %cst_61 = arith.constant dense<0xFF800000> : vector<8xf32>
    %115 = vector.multi_reduction <maximumf>, %114, %cst_61 [1] : vector<8x256xf32> to vector<8xf32>
    %116 = vector.shape_cast %115 : vector<8xf32> to vector<8x1xf32>
    %117 = vector.broadcast %116 : vector<8x1xf32> to vector<8x256xf32>
    %118 = arith.subf %114, %117 : vector<8x256xf32>
    %119 = math.exp %118 : vector<8x256xf32>
    %cst_62 = arith.constant dense<0.000000e+00> : vector<8xf32>
    %120 = vector.multi_reduction <add>, %119, %cst_62 [1] : vector<8x256xf32> to vector<8xf32>
    %121 = vector.shape_cast %120 : vector<8xf32> to vector<8x1xf32>
    %122 = tpu.reciprocal %121 {approx = true} : vector<8x1xf32> -> vector<8x1xf32>
    %123 = vector.broadcast %122 : vector<8x1xf32> to vector<8x256xf32>
    %124 = arith.mulf %119, %123 : vector<8x256xf32>
    %125 = arith.truncf %124 : vector<8x256xf32> to vector<8x256xbf16>
    %c0_63 = arith.constant 0 : index
    %c160_64 = arith.constant 160 : index
    %126 = vector.load %arg4[%c0_63, %c160_64] : memref<256x256xbf16, #tpu.memory_space<vmem>>, vector<256x32xbf16>
    %cst_65 = arith.constant dense<0.000000e+00> : vector<8x32xf32>
    %127 = tpu.matmul %125, %126, %cst_65 {dimension_numbers = #tpu.dot_dimension_numbers<[1], [0], [0], [1], [0, 0, 1, 1], [], []>} : vector<8x256xbf16>, vector<256x32xbf16>, vector<8x32xf32> -> vector<8x32xf32>
    %128 = arith.truncf %127 : vector<8x32xf32> to vector<8x32xbf16>
    %c160_66 = arith.constant 160 : index
    %c0_67 = arith.constant 0 : index
    %129 = vector.load %arg7[%c160_66, %c0_67] : memref<256x256xbf16, #tpu.memory_space<vmem>>, vector<32x256xbf16>
    %cst_68 = arith.constant dense<0.000000e+00> : vector<8x256xf32>
    %130 = tpu.matmul %128, %129, %cst_68 {dimension_numbers = #tpu.dot_dimension_numbers<[1], [0], [0], [1], [0, 0, 1, 1], [], []>} : vector<8x32xbf16>, vector<32x256xbf16>, vector<8x256xf32> -> vector<8x256xf32>
    %131 = arith.addf %111, %130 : vector<8x256xf32>
    %132 = vector.extract_strided_slice %10 {offsets = [0, 192], sizes = [8, 32], strides = [1, 1]} : vector<8x256xbf16> to vector<8x32xbf16>
    %c0_69 = arith.constant 0 : index
    %c192 = arith.constant 192 : index
    %133 = vector.load %arg3[%c0_69, %c192] : memref<256x256xbf16, #tpu.memory_space<vmem>>, vector<256x32xbf16>
    %cst_70 = arith.constant dense<0.000000e+00> : vector<8x256xf32>
    %134 = tpu.matmul %132, %133, %cst_70 {dimension_numbers = #tpu.dot_dimension_numbers<[1], [1], [0], [0], [0, 0, 1, 0], [], []>} : vector<8x32xbf16>, vector<256x32xbf16>, vector<8x256xf32> -> vector<8x256xf32>
    %cst_71 = arith.constant dense<0xFF800000> : vector<8xf32>
    %135 = vector.multi_reduction <maximumf>, %134, %cst_71 [1] : vector<8x256xf32> to vector<8xf32>
    %136 = vector.shape_cast %135 : vector<8xf32> to vector<8x1xf32>
    %137 = vector.broadcast %136 : vector<8x1xf32> to vector<8x256xf32>
    %138 = arith.subf %134, %137 : vector<8x256xf32>
    %139 = math.exp %138 : vector<8x256xf32>
    %cst_72 = arith.constant dense<0.000000e+00> : vector<8xf32>
    %140 = vector.multi_reduction <add>, %139, %cst_72 [1] : vector<8x256xf32> to vector<8xf32>
    %141 = vector.shape_cast %140 : vector<8xf32> to vector<8x1xf32>
    %142 = tpu.reciprocal %141 {approx = true} : vector<8x1xf32> -> vector<8x1xf32>
    %143 = vector.broadcast %142 : vector<8x1xf32> to vector<8x256xf32>
    %144 = arith.mulf %139, %143 : vector<8x256xf32>
    %145 = arith.truncf %144 : vector<8x256xf32> to vector<8x256xbf16>
    %c0_73 = arith.constant 0 : index
    %c192_74 = arith.constant 192 : index
    %146 = vector.load %arg4[%c0_73, %c192_74] : memref<256x256xbf16, #tpu.memory_space<vmem>>, vector<256x32xbf16>
    %cst_75 = arith.constant dense<0.000000e+00> : vector<8x32xf32>
    %147 = tpu.matmul %145, %146, %cst_75 {dimension_numbers = #tpu.dot_dimension_numbers<[1], [0], [0], [1], [0, 0, 1, 1], [], []>} : vector<8x256xbf16>, vector<256x32xbf16>, vector<8x32xf32> -> vector<8x32xf32>
    %148 = arith.truncf %147 : vector<8x32xf32> to vector<8x32xbf16>
    %c192_76 = arith.constant 192 : index
    %c0_77 = arith.constant 0 : index
    %149 = vector.load %arg7[%c192_76, %c0_77] : memref<256x256xbf16, #tpu.memory_space<vmem>>, vector<32x256xbf16>
    %cst_78 = arith.constant dense<0.000000e+00> : vector<8x256xf32>
    %150 = tpu.matmul %148, %149, %cst_78 {dimension_numbers = #tpu.dot_dimension_numbers<[1], [0], [0], [1], [0, 0, 1, 1], [], []>} : vector<8x32xbf16>, vector<32x256xbf16>, vector<8x256xf32> -> vector<8x256xf32>
    %151 = arith.addf %131, %150 : vector<8x256xf32>
    %152 = vector.extract_strided_slice %10 {offsets = [0, 224], sizes = [8, 32], strides = [1, 1]} : vector<8x256xbf16> to vector<8x32xbf16>
    %c0_79 = arith.constant 0 : index
    %c224 = arith.constant 224 : index
    %153 = vector.load %arg3[%c0_79, %c224] : memref<256x256xbf16, #tpu.memory_space<vmem>>, vector<256x32xbf16>
    %cst_80 = arith.constant dense<0.000000e+00> : vector<8x256xf32>
    %154 = tpu.matmul %152, %153, %cst_80 {dimension_numbers = #tpu.dot_dimension_numbers<[1], [1], [0], [0], [0, 0, 1, 0], [], []>} : vector<8x32xbf16>, vector<256x32xbf16>, vector<8x256xf32> -> vector<8x256xf32>
    %cst_81 = arith.constant dense<0xFF800000> : vector<8xf32>
    %155 = vector.multi_reduction <maximumf>, %154, %cst_81 [1] : vector<8x256xf32> to vector<8xf32>
    %156 = vector.shape_cast %155 : vector<8xf32> to vector<8x1xf32>
    %157 = vector.broadcast %156 : vector<8x1xf32> to vector<8x256xf32>
    %158 = arith.subf %154, %157 : vector<8x256xf32>
    %159 = math.exp %158 : vector<8x256xf32>
    %cst_82 = arith.constant dense<0.000000e+00> : vector<8xf32>
    %160 = vector.multi_reduction <add>, %159, %cst_82 [1] : vector<8x256xf32> to vector<8xf32>
    %161 = vector.shape_cast %160 : vector<8xf32> to vector<8x1xf32>
    %162 = tpu.reciprocal %161 {approx = true} : vector<8x1xf32> -> vector<8x1xf32>
    %163 = vector.broadcast %162 : vector<8x1xf32> to vector<8x256xf32>
    %164 = arith.mulf %159, %163 : vector<8x256xf32>
    %165 = arith.truncf %164 : vector<8x256xf32> to vector<8x256xbf16>
    %c0_83 = arith.constant 0 : index
    %c224_84 = arith.constant 224 : index
    %166 = vector.load %arg4[%c0_83, %c224_84] : memref<256x256xbf16, #tpu.memory_space<vmem>>, vector<256x32xbf16>
    %cst_85 = arith.constant dense<0.000000e+00> : vector<8x32xf32>
    %167 = tpu.matmul %165, %166, %cst_85 {dimension_numbers = #tpu.dot_dimension_numbers<[1], [0], [0], [1], [0, 0, 1, 1], [], []>} : vector<8x256xbf16>, vector<256x32xbf16>, vector<8x32xf32> -> vector<8x32xf32>
    %168 = arith.truncf %167 : vector<8x32xf32> to vector<8x32xbf16>
    %c224_86 = arith.constant 224 : index
    %c0_87 = arith.constant 0 : index
    %169 = vector.load %arg7[%c224_86, %c0_87] : memref<256x256xbf16, #tpu.memory_space<vmem>>, vector<32x256xbf16>
    %cst_88 = arith.constant dense<0.000000e+00> : vector<8x256xf32>
    %170 = tpu.matmul %168, %169, %cst_88 {dimension_numbers = #tpu.dot_dimension_numbers<[1], [0], [0], [1], [0, 0, 1, 1], [], []>} : vector<8x32xbf16>, vector<32x256xbf16>, vector<8x256xf32> -> vector<8x256xf32>
    %171 = arith.addf %151, %170 : vector<8x256xf32>
    %c0_89 = arith.constant 0 : index
    %c0_90 = arith.constant 0 : index
    %172 = vector.load %arg8[%c0_89, %c0_90] : memref<1x256xf32, #tpu.memory_space<vmem>>, vector<1x256xf32>
    %173 = vector.broadcast %172 : vector<1x256xf32> to vector<8x256xf32>
    %174 = arith.addf %171, %173 : vector<8x256xf32>
    %c0_91 = arith.constant 0 : index
    %c0_92 = arith.constant 0 : index
    %c0_93 = arith.constant 0 : index
    %c0_94 = arith.constant 0 : index
    %175 = vector.load %arg2[%c0_91, %c0_92, %c0_93, %c0_94] : memref<1x4x8x256xf32, #tpu.memory_space<vmem>>, vector<1x4x8x256xf32>
    %176 = vector.shape_cast %175 : vector<1x4x8x256xf32> to vector<4x8x256xf32>
    %cst_95 = arith.constant dense<0.000000e+00> : vector<8x256xf32>
    %177 = vector.multi_reduction <add>, %176, %cst_95 [0] : vector<4x8x256xf32> to vector<8x256xf32>
    %cst_96 = arith.constant 4.000000e+00 : f32
    %178 = vector.broadcast %cst_96 : f32 to vector<8x256xf32>
    %179 = arith.divf %177, %178 : vector<8x256xf32>
    %180 = arith.truncf %179 : vector<8x256xf32> to vector<8x256xbf16>
    %c0_97 = arith.constant 0 : index
    %c0_98 = arith.constant 0 : index
    %181 = vector.load %arg9[%c0_97, %c0_98] : memref<256x256xbf16, #tpu.memory_space<vmem>>, vector<256x256xbf16>
    %cst_99 = arith.constant dense<0.000000e+00> : vector<8x256xf32>
    %182 = tpu.matmul %180, %181, %cst_99 {dimension_numbers = #tpu.dot_dimension_numbers<[1], [0], [0], [1], [0, 0, 1, 1], [], []>} : vector<8x256xbf16>, vector<256x256xbf16>, vector<8x256xf32> -> vector<8x256xf32>
    %c0_100 = arith.constant 0 : index
    %c0_101 = arith.constant 0 : index
    %183 = vector.load %arg10[%c0_100, %c0_101] : memref<1x256xf32, #tpu.memory_space<vmem>>, vector<1x256xf32>
    %184 = vector.broadcast %183 : vector<1x256xf32> to vector<8x256xf32>
    %185 = arith.addf %182, %184 : vector<8x256xf32>
    %cst_102 = arith.constant 0.000000e+00 : f32
    %186 = vector.broadcast %cst_102 : f32 to vector<8x256xf32>
    %187 = arith.maximumf %185, %186 : vector<8x256xf32>
    %188 = arith.truncf %187 : vector<8x256xf32> to vector<8x256xbf16>
    %c0_103 = arith.constant 0 : index
    %c0_104 = arith.constant 0 : index
    %189 = vector.load %arg11[%c0_103, %c0_104] : memref<256x256xbf16, #tpu.memory_space<vmem>>, vector<256x256xbf16>
    %cst_105 = arith.constant dense<0.000000e+00> : vector<8x256xf32>
    %190 = tpu.matmul %188, %189, %cst_105 {dimension_numbers = #tpu.dot_dimension_numbers<[1], [0], [0], [1], [0, 0, 1, 1], [], []>} : vector<8x256xbf16>, vector<256x256xbf16>, vector<8x256xf32> -> vector<8x256xf32>
    %c0_106 = arith.constant 0 : index
    %c0_107 = arith.constant 0 : index
    %191 = vector.load %arg12[%c0_106, %c0_107] : memref<1x256xf32, #tpu.memory_space<vmem>>, vector<1x256xf32>
    %192 = vector.broadcast %191 : vector<1x256xf32> to vector<8x256xf32>
    %193 = arith.addf %190, %192 : vector<8x256xf32>
    %cst_108 = arith.constant 0.000000e+00 : f32
    %194 = vector.broadcast %cst_108 : f32 to vector<8x256xf32>
    %195 = arith.maximumf %193, %194 : vector<8x256xf32>
    %196 = arith.truncf %174 : vector<8x256xf32> to vector<8x256xbf16>
    %197 = arith.truncf %195 : vector<8x256xf32> to vector<8x256xbf16>
    %198 = tpu.concatenate %196, %2, %197 in 1 : vector<8x256xbf16>, vector<8x256xbf16>, vector<8x256xbf16> -> vector<8x768xbf16>
    %c0_109 = arith.constant 0 : index
    %c0_110 = arith.constant 0 : index
    %199 = vector.load %arg13[%c0_109, %c0_110] : memref<768x128xbf16, #tpu.memory_space<vmem>>, vector<768x128xbf16>
    %cst_111 = arith.constant dense<0.000000e+00> : vector<8x128xf32>
    %200 = tpu.matmul %198, %199, %cst_111 {dimension_numbers = #tpu.dot_dimension_numbers<[1], [0], [0], [1], [0, 0, 1, 1], [], []>} : vector<8x768xbf16>, vector<768x128xbf16>, vector<8x128xf32> -> vector<8x128xf32>
    %c0_112 = arith.constant 0 : index
    %c0_113 = arith.constant 0 : index
    %201 = vector.load %arg14[%c0_112, %c0_113] : memref<1x128xf32, #tpu.memory_space<vmem>>, vector<1x128xf32>
    %202 = vector.broadcast %201 : vector<1x128xf32> to vector<8x128xf32>
    %203 = arith.addf %200, %202 : vector<8x128xf32>
    %204 = tpu.iota {dimensions = array<i32: 1>} : vector<8x128xi32>
    %c19_i32 = arith.constant 19 : i32
    %205 = vector.broadcast %c19_i32 : i32 to vector<8x128xi32>
    %206 = arith.cmpi sge, %204, %205 : vector<8x128xi32>
    %c23_i32 = arith.constant 23 : i32
    %207 = vector.broadcast %c23_i32 : i32 to vector<8x128xi32>
    %208 = arith.cmpi slt, %204, %207 : vector<8x128xi32>
    %209 = arith.andi %206, %208 : vector<8x128xi1>
    %210 = arith.negf %203 : vector<8x128xf32>
    %211 = math.exp %210 : vector<8x128xf32>
    %cst_114 = arith.constant 1.000000e+00 : f32
    %212 = vector.broadcast %cst_114 : f32 to vector<8x128xf32>
    %213 = arith.addf %212, %211 : vector<8x128xf32>
    %214 = arith.divf %212, %213 : vector<8x128xf32>
    %215 = arith.select %209, %214, %203 : vector<8x128xi1>, vector<8x128xf32>
    %c0_115 = arith.constant 0 : index
    %c0_116 = arith.constant 0 : index
    %c0_117 = arith.constant 0 : index
    %216 = vector.load %arg15[%c0_115, %c0_116, %c0_117] : memref<1x8x128xf32, #tpu.memory_space<vmem>>, vector<1x8x128xf32>
    %217 = vector.shape_cast %216 : vector<1x8x128xf32> to vector<8x128xf32>
    %218 = vector.shape_cast %215 : vector<8x128xf32> to vector<1x8x128xf32>
    tpu.vector_store %arg15[%c0_115, %c0_116, %c0_117], %218 {strides = array<i32>} : memref<1x8x128xf32, #tpu.memory_space<vmem>>, vector<1x8x128xf32>,
    return
  }
  func.func @transform_0(%arg0: i32) -> (i32, i32, i32) {
    %c0_i32 = arith.constant 0 : i32
    %c0_i32_0 = arith.constant 0 : i32
    %c0_i32_1 = arith.constant 0 : i32
    return %arg0, %c0_i32, %c0_i32_0 : i32, i32, i32
  }
  func.func @transform_1(%arg0: i32) -> (i32, i32, i32, i32) {
    %c0_i32 = arith.constant 0 : i32
    %c0_i32_0 = arith.constant 0 : i32
    %c0_i32_1 = arith.constant 0 : i32
    %c0_i32_2 = arith.constant 0 : i32
    return %arg0, %c0_i32, %c0_i32_0, %c0_i32_1 : i32, i32, i32, i32
  }
  func.func @transform_2(%arg0: i32) -> (i32, i32) {
    %c0_i32 = arith.constant 0 : i32
    %c0_i32_0 = arith.constant 0 : i32
    %c0_i32_1 = arith.constant 0 : i32
    return %c0_i32, %c0_i32_0 : i32, i32
  }
  func.func @transform_3(%arg0: i32) -> (i32, i32) {
    %c0_i32 = arith.constant 0 : i32
    %c0_i32_0 = arith.constant 0 : i32
    %c0_i32_1 = arith.constant 0 : i32
    return %c0_i32, %c0_i32_0 : i32, i32
  }
  func.func @transform_4(%arg0: i32) -> (i32, i32) {
    %c0_i32 = arith.constant 0 : i32
    %c0_i32_0 = arith.constant 0 : i32
    %c0_i32_1 = arith.constant 0 : i32
    return %c0_i32, %c0_i32_0 : i32, i32
  }
  func.func @transform_5(%arg0: i32) -> (i32, i32) {
    %c0_i32 = arith.constant 0 : i32
    %c0_i32_0 = arith.constant 0 : i32
    %c0_i32_1 = arith.constant 0 : i32
    return %c0_i32, %c0_i32_0 : i32, i32
  }
  func.func @transform_6(%arg0: i32) -> (i32, i32) {
    %c0_i32 = arith.constant 0 : i32
    %c0_i32_0 = arith.constant 0 : i32
    %c0_i32_1 = arith.constant 0 : i32
    return %c0_i32, %c0_i32_0 : i32, i32
  }
  func.func @transform_7(%arg0: i32) -> (i32, i32) {
    %c0_i32 = arith.constant 0 : i32
    %c0_i32_0 = arith.constant 0 : i32
    %c0_i32_1 = arith.constant 0 : i32
    return %c0_i32, %c0_i32_0 : i32, i32
  }
  func.func @transform_8(%arg0: i32) -> (i32, i32) {
    %c0_i32 = arith.constant 0 : i32
    %c0_i32_0 = arith.constant 0 : i32
    %c0_i32_1 = arith.constant 0 : i32
    return %c0_i32, %c0_i32_0 : i32, i32
  }
  func.func @transform_9(%arg0: i32) -> (i32, i32) {
    %c0_i32 = arith.constant 0 : i32
    %c0_i32_0 = arith.constant 0 : i32
    %c0_i32_1 = arith.constant 0 : i32
    return %c0_i32, %c0_i32_0 : i32, i32
  }
  func.func @transform_10(%arg0: i32) -> (i32, i32) {
    %c0_i32 = arith.constant 0 : i32
    %c0_i32_0 = arith.constant 0 : i32
    %c0_i32_1 = arith.constant 0 : i32
    return %c0_i32, %c0_i32_0 : i32, i32
  }
  func.func @transform_11(%arg0: i32) -> (i32, i32) {
    %c0_i32 = arith.constant 0 : i32
    %c0_i32_0 = arith.constant 0 : i32
    %c0_i32_1 = arith.constant 0 : i32
    return %c0_i32, %c0_i32_0 : i32, i32
  }
  func.func @transform_12(%arg0: i32) -> (i32, i32) {
    %c0_i32 = arith.constant 0 : i32
    %c0_i32_0 = arith.constant 0 : i32
    %c0_i32_1 = arith.constant 0 : i32
    return %c0_i32, %c0_i32_0 : i32, i32
  }
  func.func @transform_13(%arg0: i32) -> (i32, i32) {
    %c0_i32 = arith.constant 0 : i32
    %c0_i32_0 = arith.constant 0 : i32
    %c0_i32_1 = arith.constant 0 : i32
    return %c0_i32, %c0_i32_0 : i32, i32
  }
  func.func @transform_14(%arg0: i32) -> (i32, i32, i32) {
    %c0_i32 = arith.constant 0 : i32
    %c0_i32_0 = arith.constant 0 : i32
    %c0_i32_1 = arith.constant 0 : i32
    return %arg0, %c0_i32, %c0_i32_0 : i32, i32, i32
  }
}

</mosaic_0001>

<bundles_post_ra>
// kernel: detr_head_forward.2
= control target key start
LH: loop header
LB: loop body
LE: loop exit
PB: predicated region body
PF: predicated region fallthrough
CT: control target
= control target key end

     0   :  { %s3350_s0 = inlined_call_operand.vmem [shape: f32[4,64,64], index: 0, kind: input, shape index: {}]   ;;  %s3351_s1 = inlined_call_operand.vmem [shape: bf16[64,512], index: 1, kind: input, shape index: {}]   ;;  %s3352_s2 = inlined_call_operand.vmem [shape: f32[1,512], index: 2, kind: input, shape index: {}]   ;;  %s3353_s3 = inlined_call_operand.vmem [shape: f32[1,256], index: 3, kind: input, shape index: {}]   ;;  %s3354_s4 = inlined_call_operand.vmem [shape: f32[1,256], index: 4, kind: input, shape index: {}]   ;;  %s3355_s5 = inlined_call_operand.vmem [shape: f32[256,32], index: 5, kind: input, shape index: {}]   ;;  %s3356_s6 = inlined_call_operand.vmem [shape: f32[32,256], index: 6, kind: input, shape index: {}]   ;;  %s3357_s7 = inlined_call_operand.vmem [shape: bf16[256,512], index: 7, kind: input, shape index: {}]   ;;  %s3358_s8 = inlined_call_operand.vmem [shape: f32[1,512], index: 8, kind: input, shape index: {}]   ;;  %s3359_s9 = inlined_call_operand.hbm [shape: f32[4,64,256], index: 9, kind: output, shape index: {0}]   ;;  %s3360_s10 = inlined_call_operand.vmem [shape: bf16[4,64,256], index: 10, kind: output, shape index: {1}]   ;;  %s3361_s11 = inlined_call_operand.vmem [shape: bf16[4,64,256], index: 11, kind: output, shape index: {2}]  }
   0x1   :  { %3362 = sst [smem:[#allocation6_spill]] %s3350_s0 }
   0x2   :  { %17 = vsyncpa [#allocation3], 0 }
   0x3   :  { %19 = vsyncpa [#allocation3 + $0x1], 0  ;;  %s2542_s17 = smov 0   ;;  %s2544_s18 = smov 0  }
   0x4   :  { %s2546_s19 = smov 0   ;;  %s2548_s20 = smov 0  }
   0x5 LB: > { %s2563_s21 = sadd.s32 4294967295, %s2475_s20   ;;  %s2036_s22 = sadd.s32 4294967294, %s2475_s20   ;;  %s2475_s20 = sphi %s2548_s20, %s3371_s20   ;;  %s2471_s19 = sphi %s2546_s19, %s3370_s19   ;;  %s2467_s18 = sphi %s2544_s18, %s3369_s18   ;;  %s2463_s17 = sphi %s2542_s17, %s3368_s17  }
   0x6   : > { %s2567_s23 = sadd.s32 1, %s2475_s20   ;;  %s226_s24 = sadd.s32 1, %s2471_s19 }
   0x7   : > { %s223_s25 = ssub.s32 %s2475_s20, %s2567_s23  ;;  %p236_p0 = scmp.ne.s32.totalorder %s2471_s19, %s2467_s18 }
   0x8   : > { %p224_p1 = scmp.eq.s32.totalorder %s223_s25, 0  ;;  %p237_p2 = scmp.eq.s32.totalorder %s2563_s21, 3 }
   0x9   : > { %p242_p3 = scmp.ne.s32.totalorder %s2467_s18, %s2463_s17  ;;  %p243_p4 = scmp.eq.s32.totalorder %s2036_s22, 3 }
   0xa   : > { %s2578_s26 = scalar_select %p224_p1, %s2471_s19, %s226_s24  }
   0xb   : > { %p2580_p5 = por %p237_p2, %p236_p0  ;;  %p2584_p6 = por %p243_p4, %p242_p3 }
   0xc   : > { %3363 = sst [smem:[#allocation5_spill]] %s2578_s26  ;;  %p2039_p7 = scmp.ge.s32.totalorder %s2475_s20, 1 }
   0xd   : > { %p345_p8 = scmp.lt.s32.totalorder %s2475_s20, 5 }
   0xf   : > { %p346_p9 = pnand %p2039_p7, %p345_p8 }
  0x10   : > { %p395_p10 = scmp.lt.s32.totalorder (!%p346_p9), %s2563_s21, 3  ;;  %s3366_s0 = sld [smem:[#allocation6_spill]] (!%p346_p9) }
  0x11   : > { %349 = sbr.rel (%p346_p9) target bundleno = 1198 (0x4ae), region = 56  ;;  %s378_s14 = sand.u32 (!%p346_p9), 1, %s2467_s18  }
  0x12   : > { %s2040_s15 = sshll.u32 (!%p346_p9), %s378_s14, 7  ;;  %s2177_s24 = sshll.u32 (!%p346_p9), %s2563_s21, 11 }
  0x13   : > { %s3251_s22 = scalar_lea.vmem (!%p346_p9), [#allocation2], %s2040_s15  ;;  %s3276_s25 = scalar_lea.hbm (!%p346_p9), %s3359_s9, %s2177_s24 }
  0x14   : > { %s3290_s29 = scalar_lea.sflag (!%p346_p9), [#allocation3], %s378_s14  ;;  %s2479_s13 = smov (!%p346_p9), [#allocation2]  }
  0x16   : > { %v2291_v0 = vld [vmem:[%s3351_s1 + $0x64] ss:$16 sps:$4 sm:$0xff]   ;;  %v2293_v1 = vld [vmem:[%s3351_s1 + $0x60] ss:$16 sps:$4 sm:$0xff]   ;;  %v2477_v2 = vmov 0   ;;  %s396_s16 = scalar_select %p395_p10, %s2563_s21, 3  ;;  %v441_v63 = vlaneseq }
  0x17   : > { %586 = vmatprep.mubr.bf16.mxu0 %v2477_v2  ;;  %659 = vmatprep.mubr.bf16.mxu1 %v2477_v2  ;;  %v2294_v3 = vld [vmem:[%s3351_s1 + $0x44] ss:$16 sps:$4 sm:$0xff]   ;;  %v2296_v4 = vld [vmem:[%s3351_s1 + $0x40] ss:$16 sps:$4 sm:$0xff]   ;;  %v2303_v8 = vld [vmem:[%s3351_s1 + $0x6c] ss:$16 sps:$4 sm:$0xff]  }
  0x18   : > { %562 = vmatprep.subr.bf16.mxu0 %v2291_v0  ;;  %v2297_v5 = vld [vmem:[%s3351_s1 + $0x24] ss:$16 sps:$4 sm:$0xff]   ;;  %s2609_s30 = sshll.u32 %s396_s16, 6  ;;  %v2299_v6 = vld [vmem:[%s3351_s1 + $0x20] ss:$16 sps:$4 sm:$0xff]   ;;  %635 = vmatprep.subr.bf16.mxu1 %v2303_v8  ;;  %vm541_vm0 = vcmask 523264  }
  0x19   : > { %563 = vmatpush1.bf16.msra.mxu0 %v2293_v1  ;;  %s2615_s26 = scalar_lea.vmem %s3366_s0, %s2609_s30  ;;  %v2300_v7 = vld [vmem:[%s3351_s1 + $0x4] ss:$16 sps:$4 sm:$0xff]   ;;  %v2302_v9 = vld [vmem:[%s3351_s1] ss:$16 sps:$4 sm:$0xff]   ;;  %v2305_v11 = vld [vmem:[%s3351_s1 + $0x68] ss:$16 sps:$4 sm:$0xff]   ;;  %s3115_s12 = scalar_lea.vmem %s3360_s10, %s2609_s30 }
  0x1a   : > { %564 = vmatprep.subr.bf16.mxu0 %v2294_v3  ;;  %v411_v10 = vld [vmem:[%s2615_s26] sm:$0xff]  ;;  %v412_v12 = vld [vmem:[%s2615_s26 + $0x8] sm:$0xff]  ;;  %636 = vmatpush1.bf16.msra.mxu1 %v2305_v11  ;;  %v413_v16 = vld [vmem:[%s2615_s26 + $0x10] sm:$0xff]  ;;  %vm838_vm1 = vcmask 261120   ;;  %s1918_s0 = sshll.u32 %s3251_s22, 4  ;;  %s3278_s0 = int_to_ptr.vmem [resolvable:$true] %s1918_s0 }
  0x1b   : > { %v2306_v13 = vld [vmem:[%s3351_s1 + $0x4c] ss:$16 sps:$4 sm:$0xff]   ;;  %v2308_v14 = vld [vmem:[%s3351_s1 + $0x48] ss:$16 sps:$4 sm:$0xff]   ;;  %v419_v15 = vpack.c.bf16 %v412_v12, %v411_v10  ;;  %v415_v19 = vld [vmem:[%s2615_s26 + $0x20] sm:$0xff] }
  0x1c   : > { %637 = vmatprep.subr.bf16.mxu1 %v2306_v13  ;;  %v414_v17 = vld [vmem:[%s2615_s26 + $0x18] sm:$0xff]  ;;  %v416_v20 = vld [vmem:[%s2615_s26 + $0x28] sm:$0xff]  ;;  %v417_v22 = vld [vmem:[%s2615_s26 + $0x30] sm:$0xff] }
  0x1d   : > { %565 = vmatpush1.bf16.msra.mxu0 %v2296_v4  ;;  %v420_v18 = vpack.c.bf16 %v414_v17, %v413_v16  ;;  %v421_v21 = vpack.c.bf16 %v416_v20, %v415_v19  ;;  %v418_v23 = vld [vmem:[%s2615_s26 + $0x38] sm:$0xff]  ;;  %v756_v31 = vld [vmem:[%s3355_s5 + $0xf0] sm:$0xff]  ;;  %v755_v33 = vld [vmem:[%s3355_s5 + $0xe8] sm:$0xff]  ;;  %s2419_s26 = sshll.u32 %s2479_s13, 4  ;;  %s2420_s26 = int_to_ptr.vmem [resolvable:$false] %s2419_s26 }
  0x1e   : > { %566 = vmatprep.subr.bf16.mxu0 %v2297_v5  ;;  %638 = vmatpush1.bf16.msra.mxu1 %v2308_v14  ;;  %v2652_v24 = vpack.c.bf16 %v418_v23, %v417_v22  ;;  %v2309_v25 = vld [vmem:[%s3351_s1 + $0x2c] ss:$16 sps:$4 sm:$0xff]   ;;  %v2311_v26 = vld [vmem:[%s3351_s1 + $0x28] ss:$16 sps:$4 sm:$0xff]   ;;  %v740_v32 = vld [vmem:[%s3355_s5 + $0x70] sm:$0xff]  ;;  %s2421_s15 = scalar_lea.vmem %s2420_s26, 4096  ;;  %p2422_p0 = scmp.lt.s32.totalorder %s3278_s0, %s2420_s26 }
  0x1f   : > { %639 = vmatprep.subr.bf16.mxu1 %v2309_v25  ;;  %v2312_v27 = vld [vmem:[%s3351_s1 + $0xc] ss:$16 sps:$4 sm:$0xff]   ;;  %v2314_v28 = vld [vmem:[%s3351_s1 + $0x8] ss:$16 sps:$4 sm:$0xff]   ;;  %v754_v35 = vld [vmem:[%s3355_s5 + $0xe0] sm:$0xff] }
  0x20   : > { %v757_v29 = vld [vmem:[%s3355_s5 + $0xf8] sm:$0xff]  ;;  %v739_v34 = vld [vmem:[%s3355_s5 + $0x68] sm:$0xff]  ;;  %v738_v36 = vld [vmem:[%s3355_s5 + $0x60] sm:$0xff] }
  0x21   : > { %567 = vmatpush1.bf16.msra.mxu0 %v2299_v6  ;;  %v741_v30 = vld [vmem:[%s3355_s5 + $0x78] sm:$0xff]  ;;  %v752_v39 = vld [vmem:[%s3355_s5 + $0xd0] sm:$0xff]  ;;  %v751_v41 = vld [vmem:[%s3355_s5 + $0xc8] sm:$0xff] }
  0x22   : > { %568 = vmatprep.subr.bf16.mxu0 %v2300_v7  ;;  %640 = vmatpush1.bf16.msra.mxu1 %v2311_v26  ;;  %v753_v37 = vld [vmem:[%s3355_s5 + $0xd8] sm:$0xff]  ;;  %v736_v40 = vld [vmem:[%s3355_s5 + $0x50] sm:$0xff]  ;;  %v735_v42 = vld [vmem:[%s3355_s5 + $0x48] sm:$0xff] }
  0x23   : > { %641 = vmatprep.subr.bf16.mxu1 %v2312_v27  ;;  %v737_v38 = vld [vmem:[%s3355_s5 + $0x58] sm:$0xff]  ;;  %v750_v43 = vld [vmem:[%s3355_s5 + $0xc0] sm:$0xff]  ;;  %v748_v47 = vld [vmem:[%s3355_s5 + $0xb0] sm:$0xff] }
  0x24   : > { %v734_v44 = vld [vmem:[%s3355_s5 + $0x40] sm:$0xff]  ;;  %v749_v45 = vld [vmem:[%s3355_s5 + $0xb8] sm:$0xff]  ;;  %v732_v48 = vld [vmem:[%s3355_s5 + $0x30] sm:$0xff] }
  0x25   : > { %569 = vmatpush1.bf16.msra.mxu0 %v2302_v9  ;;  %v733_v46 = vld [vmem:[%s3355_s5 + $0x38] sm:$0xff]  ;;  %v747_v49 = vld [vmem:[%s3355_s5 + $0xa8] sm:$0xff]  ;;  %v746_v51 = vld [vmem:[%s3355_s5 + $0xa0] sm:$0xff] }
  0x26   : > { %642 = vmatpush1.bf16.msra.mxu1 %v2314_v28  ;;  %2213 = vmatprep.subr.mxu0 %v757_v29  ;;  %v731_v50 = vld [vmem:[%s3355_s5 + $0x28] sm:$0xff]  ;;  %v730_v52 = vld [vmem:[%s3355_s5 + $0x20] sm:$0xff]  ;;  %v745_v53 = vld [vmem:[%s3355_s5 + $0x98] sm:$0xff] }
  0x27   : > { %2178 = vmatprep.subr.mxu1 %v757_v29  ;;  %v729_v54 = vld [vmem:[%s3355_s5 + $0x18] sm:$0xff]  ;;  %v744_v55 = vld [vmem:[%s3355_s5 + $0x90] sm:$0xff]  ;;  %v743_v57 = vld [vmem:[%s3355_s5 + $0x88] sm:$0xff] }
  0x28   : > { %2063 = vmatmul.mubr.msk.bf16.vlgmr.msra.gmra.mxu0 %vm541_vm0, %v419_v15  ;;  %v728_v56 = vld [vmem:[%s3355_s5 + $0x10] sm:$0xff]  ;;  %v727_v58 = vld [vmem:[%s3355_s5 + $0x8] sm:$0xff]  ;;  %v742_v59 = vld [vmem:[%s3355_s5 + $0x80] sm:$0xff] }
  0x29   : > { %596 = vmatprep.mubr.bf16.mxu0 %v2477_v2  ;;  %2067 = vmatmul.mubr.msk.bf16.vlgmr.msra.gmra.mxu1 %vm541_vm0, %v419_v15  ;;  %v726_v60 = vld [vmem:[%s3355_s5] sm:$0xff]  ;;  %v837_v61 = vld [vmem:[%s3356_s6 + $0x38] sm:$0xff] }
  0x2a   : > { %669 = vmatprep.mubr.bf16.mxu1 %v2477_v2  ;;  %2179 = vmatpush3.msra.mxu1 %v741_v30  ;;  %v2783_v6 = vld [vmem:[%s3352_s2] sm:$0xf] }
  0x2b   : > { %2214 = vmatpush3.msra.mxu0 %v741_v30  ;;  %2180 = vmatprep.subr.mxu1 %v756_v31 }
  0x2c   : > { %2181 = vmatpush3.msra.mxu1 %v740_v32  ;;  %2215 = vmatprep.subr.mxu0 %v756_v31 }
  0x2d   : > { %2182 = vmatprep.subr.mxu1 %v755_v33  ;;  %2216 = vmatpush3.msra.mxu0 %v740_v32 }
  0x2e   : > { %2183 = vmatpush3.msra.mxu1 %v739_v34  ;;  %2217 = vmatprep.subr.mxu0 %v755_v33 }
  0x2f   : > { %2184 = vmatprep.subr.mxu1 %v754_v35  ;;  %2218 = vmatpush3.msra.mxu0 %v739_v34 }
  0x30   : > { %2064 = vmatmul.mubr.msk.bf16.gmra.mxu0 %vm541_vm0, %v420_v18  ;;  %2185 = vmatpush3.msra.mxu1 %v738_v36 }
  0x31   : > { %606 = vmatprep.mubr.bf16.mxu0 %v2477_v2  ;;  %2068 = vmatmul.mubr.msk.bf16.gmra.mxu1 %vm541_vm0, %v420_v18 }
  0x32   : > { %679 = vmatprep.mubr.bf16.mxu1 %v2477_v2  ;;  %2186 = vmatprep.subr.mxu1 %v753_v37 }
  0x33   : > { %2219 = vmatprep.subr.mxu0 %v754_v35  ;;  %2187 = vmatpush3.msra.mxu1 %v737_v38 }
  0x34   : > { %2220 = vmatpush3.msra.mxu0 %v738_v36  ;;  %2188 = vmatprep.subr.mxu1 %v752_v39 }
  0x35   : > { %2189 = vmatpush3.msra.mxu1 %v736_v40  ;;  %2221 = vmatprep.subr.mxu0 %v753_v37 }
  0x36   : > { %2190 = vmatprep.subr.mxu1 %v751_v41  ;;  %2222 = vmatpush3.msra.mxu0 %v737_v38 }
  0x37   : > { %2191 = vmatpush3.msra.mxu1 %v735_v42  ;;  %2223 = vmatprep.subr.mxu0 %v752_v39 }
  0x38   : > { %2065 = vmatmul.mubr.msk.bf16.gmra.mxu0 %vm541_vm0, %v421_v21  ;;  %2192 = vmatprep.subr.mxu1 %v750_v43 }
  0x39   : > { %616 = vmatprep.mubr.bf16.mxu0 %v2477_v2  ;;  %2069 = vmatmul.mubr.msk.bf16.gmra.mxu1 %vm541_vm0, %v421_v21 }
  0x3a   : > { %689 = vmatprep.mubr.bf16.mxu1 %v2477_v2  ;;  %2193 = vmatpush3.msra.mxu1 %v734_v44  ;;  %v2775_v2 = vshrl.u32 %v441_v63, 7  ;;  %v2843_v63 = vld [vmem:[%s3356_s6 + $0x30] sm:$0xff] }
  0x3b   : > { %2224 = vmatpush3.msra.mxu0 %v736_v40  ;;  %2194 = vmatprep.subr.mxu1 %v749_v45 }
  0x3c   : > { %2225 = vmatprep.subr.mxu0 %v751_v41  ;;  %2195 = vmatpush3.msra.mxu1 %v733_v46  ;;  %v2778_v5 = vsub.s32 0, %v2775_v2  ;;  %v2786_v8 = vsub.s32 1, %v2775_v2 }
  0x3d   : > { %2226 = vmatpush3.msra.mxu0 %v735_v42  ;;  %2196 = vmatprep.subr.mxu1 %v748_v47 }
  0x3e   : > { %2197 = vmatpush3.msra.mxu1 %v732_v48  ;;  %2227 = vmatprep.subr.mxu0 %v750_v43  ;;  %v444_v10 = vrot.slane %v2783_v6, %v2778_v5  ;;  %v448_v12 = vrot.slane %v2783_v6, %v2786_v8 }
  0x3f   : > { %2198 = vmatprep.subr.mxu1 %v747_v49  ;;  %2228 = vmatpush3.msra.mxu0 %v734_v44 }
  0x40   : > { %2066 = vmatmul.mubr.msk.bf16.gmra.mxu0 %vm541_vm0, %v2652_v24  ;;  %2199 = vmatpush3.msra.mxu1 %v731_v50 }
  0x41   : > { %2070 = vmatmul.mubr.msk.bf16.gmra.mxu1 %vm541_vm0, %v2652_v24  ;;  %2229 = vmatprep.subr.mxu0 %v749_v45 }
  0x42   : > { %2200 = vmatprep.subr.mxu1 %v746_v51  ;;  %2230 = vmatpush3.msra.mxu0 %v733_v46 }
  0x43   : > { %2201 = vmatpush3.msra.mxu1 %v730_v52  ;;  %2231 = vmatprep.subr.mxu0 %v748_v47 }
  0x44   : > { %2202 = vmatprep.subr.mxu1 %v745_v53  ;;  %2232 = vmatpush3.msra.mxu0 %v732_v48 }
  0x45   : > { %2203 = vmatpush3.msra.mxu1 %v729_v54  ;;  %2233 = vmatprep.subr.mxu0 %v747_v49 }
  0x46   : > { %2204 = vmatprep.subr.mxu1 %v744_v55  ;;  %2234 = vmatpush3.msra.mxu0 %v731_v50 }
  0x47   : > { %2205 = vmatpush3.msra.mxu1 %v728_v56  ;;  %2235 = vmatprep.subr.mxu0 %v746_v51 }
  0x48   : > { %2206 = vmatprep.subr.mxu1 %v743_v57  ;;  %2236 = vmatpush3.msra.mxu0 %v730_v52 }
  0x49   : > { %2207 = vmatpush3.msra.mxu1 %v727_v58  ;;  %2237 = vmatprep.subr.mxu0 %v745_v53 }
  0x4a   : > { %2208 = vmatprep.subr.mxu1 %v742_v59  ;;  %2238 = vmatpush3.msra.mxu0 %v729_v54 }
  0x4b   : > { %2209 = vmatpush3.msra.mxu1 %v726_v60  ;;  %2239 = vmatprep.subr.mxu0 %v744_v55 }
  0x4c   : > { %2240 = vmatpush3.msra.mxu0 %v728_v56  ;;  %866 = vmatprep.subr.mxu1 %v837_v61 }
  0x4d   : > { %2241 = vmatprep.subr.mxu0 %v743_v57 }
  0x4e   : > { %2242 = vmatpush3.msra.mxu0 %v727_v58 }
  0x4f   : > { %2243 = vmatprep.subr.mxu0 %v742_v59 }
  0x50   : > { %2244 = vmatpush3.msra.mxu0 %v726_v60 }
  0x51   : > { %1077 = vmatprep.subr.mxu0 %v837_v61 }
  0xe8   : > { %v588_v62 = vpop.f32.mrf.mxu0 }
  0xe9   : > { %v2794_v15 = vadd.f32 %v588_v62, %v444_v10 }
  0xea   : > { %v590_v0 = vpop.f32.mrf.mxu0 }
  0xeb   : > { %v2800_v19 = vadd.f32 %v590_v0, %v448_v12  ;;  %v451_v0 = vsub.s32 2, %v2775_v2 }
  0xec   : > { %v592_v1 = vpop.f32.mrf.mxu0 }
  0xed   : > { %v2792_v13 = vadd.f32 %v592_v1, %v444_v10  ;;  %v452_v1 = vrot.slane %v2783_v6, %v451_v0 }
  0xee   : > { %v594_v3 = vpop.f32.mrf.mxu0 }
  0xef   : > { %v2796_v16 = vadd.f32 %v594_v3, %v448_v12  ;;  %v700_v20 = vadd.f32 %v2792_v13, %v2794_v15  ;;  %v661_v3 = vpop.f32.mrf.mxu1 }
  0xf0   : > { %v598_v4 = vpop.f32.mrf.mxu0 }
  0xf1   : > { %v2798_v17 = vadd.f32 %v598_v4, %v444_v10  ;;  %v713_v24 = vadd.f32 %v2796_v16, %v2800_v19  ;;  %v663_v4 = vpop.f32.mrf.mxu1 }
  0xf2   : > { %v600_v7 = vpop.f32.mrf.mxu0 }
  0xf3   : > { %v2804_v21 = vadd.f32 %v600_v7, %v448_v12  ;;  %v701_v25 = vadd.f32 %v700_v20, %v2798_v17  ;;  %v662_v7 = vadd.f32 %v661_v3, %v452_v1  ;;  %v2895_v3 = vld [vmem:[%s3356_s6 + $0x8] sm:$0xff] }
  0xf4   : > { %v602_v9 = vpop.f32.mrf.mxu0 }
  0xf5   : > { %v2806_v22 = vadd.f32 %v602_v9, %v444_v10  ;;  %v714_v29 = vadd.f32 %v713_v24, %v2804_v21  ;;  %v665_v9 = vpop.f32.mrf.mxu1 }
  0xf6   : > { %v604_v11 = vpop.f32.mrf.mxu0 }
  0xf7   : > { %v2811_v26 = vadd.f32 %v604_v11, %v448_v12  ;;  %v702_v30 = vadd.f32 %v701_v25, %v2806_v22  ;;  %v666_v11 = vadd.f32 %v665_v9, %v452_v1  ;;  %v2317_v9 = vld [vmem:[%s3357_s7 + $0xe4] ss:$16 sps:$4 sm:$0xff]  }
  0xf8   : > { %v608_v14 = vpop.f32.mrf.mxu0 }
  0xf9   : > { %v2813_v27 = vadd.f32 %v608_v14, %v444_v10  ;;  %v715_v34 = vadd.f32 %v714_v29, %v2811_v26  ;;  %v2851_v14 = vpack.c.bf16 %v666_v11, %v662_v7  ;;  %v2901_v7 = vld [vmem:[%s3356_s6] sm:$0xff]  ;;  %v2478_v11 = vmov 0.0  }
  0xfa   : > { %v610_v18 = vpop.f32.mrf.mxu0 }
  0xfb   : > { %v2817_v31 = vadd.f32 %v610_v18, %v448_v12  ;;  %v703_v35 = vadd.f32 %v702_v30, %v2813_v27 }
  0xfc   : > { %v612_v23 = vpop.f32.mrf.mxu0 }
  0xfd   : > { %v2819_v32 = vadd.f32 %v612_v23, %v444_v10  ;;  %v716_v39 = vadd.f32 %v715_v34, %v2817_v31 }
  0xfe   : > { %v614_v28 = vpop.f32.mrf.mxu0 }
  0xff   : > { %v2823_v36 = vadd.f32 %v614_v28, %v448_v12  ;;  %v704_v40 = vadd.f32 %v703_v35, %v2819_v32 }
 0x100   : > { %v618_v33 = vpop.f32.mrf.mxu0 }
 0x101   : > { %v2825_v37 = vadd.f32 %v618_v33, %v444_v10  ;;  %v717_v43 = vadd.f32 %v716_v39, %v2823_v36 }
 0x102   : > { %v620_v38 = vpop.f32.mrf.mxu0 }
 0x103   : > { %v2829_v41 = vadd.f32 %v620_v38, %v448_v12  ;;  %v705_v44 = vadd.f32 %v704_v40, %v2825_v37 }
 0x104   : > { %v622_v42 = vpop.f32.mrf.mxu0 }
 0x105   : > { %v2833_v45 = vadd.f32 %v622_v42, %v444_v10  ;;  %v718_v47 = vadd.f32 %v717_v43, %v2829_v41  ;;  %v455_v10 = vsub.s32 3, %v2775_v2 }
 0x106   : > { %v624_v46 = vpop.f32.mrf.mxu0 }
 0x107   : > { %v706_v48 = vadd.f32 %v705_v44, %v2833_v45  ;;  %v2837_v49 = vadd.f32 %v624_v46, %v448_v12  ;;  %v667_v12 = vpop.f32.mrf.mxu1  ;;  %v456_v20 = vrot.slane %v2783_v6, %v455_v10 }
 0x109   : > { %v707_v50 = vrot.slane %v706_v48, 4  ;;  %v719_v51 = vadd.f32 %v718_v47, %v2837_v49  ;;  %v671_v18 = vpop.f32.mrf.mxu1 }
 0x10a   : > { %v672_v24 = vadd.f32 %v671_v18, %v452_v1 }
 0x10b   : > { %v708_v52 = vadd.f32 %v707_v50, %v706_v48  ;;  %v720_v53 = vrot.slane %v719_v51, 4  ;;  %v673_v23 = vpop.f32.mrf.mxu1 }
 0x10c   : > { %v674_v25 = vadd.f32 %v673_v23, %v456_v20  ;;  %v664_v23 = vadd.f32 %v663_v4, %v456_v20  ;;  %v2318_v4 = vld [vmem:[%s3357_s7 + $0xc0] ss:$16 sps:$4 sm:$0xff]  }
 0x10d   : > { %v709_v54 = vrot.slane %v708_v52, 2  ;;  %v721_v55 = vadd.f32 %v720_v53, %v719_v51  ;;  %v675_v28 = vpop.f32.mrf.mxu1 }
 0x10e   : > { %v676_v29 = vadd.f32 %v675_v28, %v452_v1 }
 0x10f   : > { %v710_v56 = vadd.f32 %v709_v54, %v708_v52  ;;  %v722_v57 = vrot.slane %v721_v55, 2  ;;  %v677_v30 = vpop.f32.mrf.mxu1 }
 0x110   : > { %v2856_v33 = vpack.c.bf16 %v676_v29, %v672_v24  ;;  %v678_v34 = vadd.f32 %v677_v30, %v456_v20  ;;  %v668_v24 = vadd.f32 %v667_v12, %v456_v20  ;;  %v2315_v29 = vld [vmem:[%s3357_s7 + $0xe0] ss:$16 sps:$4 sm:$0xff]   ;;  %v2323_v12 = vld [vmem:[%s3357_s7 + $0xa4] ss:$16 sps:$4 sm:$0xff]  }
 0x111   : > { %v723_v58 = vadd.f32 %v722_v57, %v721_v55  ;;  %v711_v59 = vrot.slane %v710_v56, 1  ;;  %v681_v35 = vpop.f32.mrf.mxu1 }
 0x112   : > { %v2858_v38 = vpack.c.bf16 %v678_v34, %v674_v25  ;;  %v682_v40 = vadd.f32 %v681_v35, %v452_v1  ;;  %v2320_v34 = vld [vmem:[%s3357_s7 + $0xc4] ss:$16 sps:$4 sm:$0xff]   ;;  %v2914_v35 = vpack.c.bf16 %v668_v24, %v664_v23  ;;  %v2348_v23 = vld [vmem:[%s3357_s7 + $0x180] ss:$16 sps:$4 sm:$0xff]  }
 0x113   : > { %v724_v60 = vrot.slane %v723_v58, 1  ;;  %v712_v62 = vadd.f32 %v711_v59, %v710_v56  ;;  %v683_v39 = vpop.f32.mrf.mxu1  ;;  %v2353_v24 = vld [vmem:[%s3357_s7 + $0x164] ss:$16 sps:$4 sm:$0xff]  }
 0x114   : > { %v684_v42 = vadd.f32 %v683_v39, %v456_v20  ;;  %v2326_v39 = vld [vmem:[%s3357_s7 + $0x84] ss:$16 sps:$4 sm:$0xff]  }
 0x115   : > { %v725_v61 = vadd.f32 %v724_v60, %v723_v58  ;;  %v685_v43 = vpop.f32.mrf.mxu1  ;;  %v2871_v60 = vld [vmem:[%s3356_s6 + $0x28] sm:$0xff] }
 0x116   : > { %v686_v44 = vadd.f32 %v685_v43, %v452_v1  ;;  %v2327_v43 = vld [vmem:[%s3357_s7 + $0x60] ss:$16 sps:$4 sm:$0xff]  }
 0x117   : > { %822 = vmatprep.mubr.f32.mxu1 %v725_v61  ;;  %v687_v46 = vpop.f32.mrf.mxu1  ;;  %v2877_v61 = vld [vmem:[%s3356_s6 + $0x20] sm:$0xff] }
 0x118   : > { %823 = vmatmul.mubr.f32.vlgmr.msra.gmra.mxu1 %v712_v62  ;;  %v2860_v47 = vpack.c.bf16 %v686_v44, %v682_v40  ;;  %v688_v6 = vadd.f32 %v687_v46, %v456_v20  ;;  %v2883_v62 = vld [vmem:[%s3356_s6 + $0x18] sm:$0xff]  ;;  %v2324_v40 = vld [vmem:[%s3357_s7 + $0x80] ss:$16 sps:$4 sm:$0xff]   ;;  %v2332_v44 = vld [vmem:[%s3357_s7 + $0x44] ss:$16 sps:$4 sm:$0xff]  }
 0x119   : > { %867 = vmatpush1.msra.mxu1 %v2843_v63  ;;  %v691_v48 = vpop.f32.mrf.mxu1  ;;  %906 = vmatprep.mubr.f32.mxu1 %v2478_v11  ;;  %v2330_v46 = vld [vmem:[%s3357_s7 + $0x40] ss:$16 sps:$4 sm:$0xff]  }
 0x11a   : > { %v2862_v50 = vpack.c.bf16 %v688_v6, %v684_v42  ;;  %v692_v52 = vadd.f32 %v691_v48, %v452_v1  ;;  %868 = vmatprep.subr.mxu1 %v2871_v60  ;;  %v2329_v42 = vld [vmem:[%s3357_s7 + $0x64] ss:$16 sps:$4 sm:$0xff]   ;;  %v2333_v48 = vld [vmem:[%s3357_s7 + $0x20] ss:$16 sps:$4 sm:$0xff]  }
 0x11b   : > { %v693_v51 = vpop.f32.mrf.mxu1  ;;  %869 = vmatpush1.msra.mxu1 %v2877_v61  ;;  %v2335_v6 = vld [vmem:[%s3357_s7 + $0x24] ss:$16 sps:$4 sm:$0xff]  }
 0x11c   : > { %v694_v53 = vadd.f32 %v693_v51, %v456_v20  ;;  %870 = vmatprep.subr.mxu1 %v2883_v62  ;;  %v2338_v51 = vld [vmem:[%s3357_s7 + $0x4] ss:$16 sps:$4 sm:$0xff]  }
 0x11d   : > { %v695_v54 = vpop.f32.mrf.mxu1 }
 0x11e   : > { %v696_v55 = vadd.f32 %v695_v54, %v452_v1  ;;  %v2889_v1 = vld [vmem:[%s3356_s6 + $0x10] sm:$0xff] }
 0x11f   : > { %v697_v56 = vpop.f32.mrf.mxu1  ;;  %871 = vmatpush1.msra.mxu1 %v2889_v1  ;;  %v2339_v54 = vld [vmem:[%s3357_s7 + $0x1e0] ss:$16 sps:$4 sm:$0xff]  }
 0x120   : > { %v2864_v57 = vpack.c.bf16 %v696_v55, %v692_v52  ;;  %v698_v58 = vadd.f32 %v697_v56, %v456_v20  ;;  %872 = vmatprep.subr.mxu1 %v2895_v3  ;;  %v2321_v20 = vld [vmem:[%s3357_s7 + $0xa0] ss:$16 sps:$4 sm:$0xff]   ;;  %v2344_v55 = vld [vmem:[%s3357_s7 + $0x1c4] ss:$16 sps:$4 sm:$0xff]  }
 0x121   : > { %873 = vmatpush1.msra.mxu1 %v2901_v7  ;;  %v2336_v52 = vld [vmem:[%s3357_s7] ss:$16 sps:$4 sm:$0xff]  }
 0x122   : > { %v2866_v59 = vpack.c.bf16 %v698_v58, %v694_v53  ;;  %1636 = vmatprep.subr.bf16.mxu1 %v2317_v9  ;;  %v2341_v53 = vld [vmem:[%s3357_s7 + $0x1e4] ss:$16 sps:$4 sm:$0xff]   ;;  %v2342_v56 = vld [vmem:[%s3357_s7 + $0x1c0] ss:$16 sps:$4 sm:$0xff]  }
 0x123   : > { %v2347_v58 = vld [vmem:[%s3357_s7 + $0x1a4] ss:$16 sps:$4 sm:$0xff]   ;;  %v2345_v9 = vld [vmem:[%s3357_s7 + $0x1a0] ss:$16 sps:$4 sm:$0xff]  }
 0x1d8   : > { %v2210_v18 = vpop.f32.mrf.mxu1 }
 0x1da   : > { %v2211_v25 = vpop.f32.mrf.mxu1 }
 0x1db   : > { %v2212_v28 = vadd.f32 %v2211_v25, %v2210_v18  ;;  %v2350_v18 = vld [vmem:[%s3357_s7 + $0x184] ss:$16 sps:$4 sm:$0xff]   ;;  %v2351_v25 = vld [vmem:[%s3357_s7 + $0x160] ss:$16 sps:$4 sm:$0xff]  }
 0x1dd   : > { %v829_v30 = vmul.f32 0.001953125, %v2212_v28  ;;  %v2356_v28 = vld [vmem:[%s3357_s7 + $0x144] ss:$16 sps:$4 sm:$0xff]  }
 0x1df   : > { %2071 = vmatmul.mubr.msk.f32.vlgmr.msra.gmra.mxu1 %vm838_vm1, %v829_v30  ;;  %v2359_v30 = vld [vmem:[%s3357_s7 + $0x124] ss:$16 sps:$4 sm:$0xff]  }
 0x1e0   : > { %1637 = vmatpush1.bf16.msra.mxu1 %v2315_v29  ;;  %1668 = vmatprep.mubr.bf16.mxu1 %v2914_v35  ;;  %v2354_v29 = vld [vmem:[%s3357_s7 + $0x140] ss:$16 sps:$4 sm:$0xff]  }
 0x1e1   : > { %1638 = vmatprep.subr.bf16.mxu1 %v2320_v34  ;;  %v2357_v34 = vld [vmem:[%s3357_s7 + $0x120] ss:$16 sps:$4 sm:$0xff]  }
 0x1e4   : > { %1639 = vmatpush1.bf16.msra.mxu1 %v2318_v4  ;;  %v2362_v4 = vld [vmem:[%s3357_s7 + $0x104] ss:$16 sps:$4 sm:$0xff]  }
 0x1e5   : > { %1640 = vmatprep.subr.bf16.mxu1 %v2323_v12  ;;  %v2360_v12 = vld [vmem:[%s3357_s7 + $0x100] ss:$16 sps:$4 sm:$0xff]  }
 0x1e8   : > { %1641 = vmatpush1.bf16.msra.mxu1 %v2321_v20 }
 0x1e9   : > { %1642 = vmatprep.subr.bf16.mxu1 %v2326_v39 }
 0x1ec   : > { %1643 = vmatpush1.bf16.msra.mxu1 %v2324_v40 }
 0x1ed   : > { %1644 = vmatprep.subr.bf16.mxu1 %v2329_v42 }
 0x1f0   : > { %1645 = vmatpush1.bf16.msra.mxu1 %v2327_v43 }
 0x1f1   : > { %1646 = vmatprep.subr.bf16.mxu1 %v2332_v44 }
 0x1f4   : > { %1647 = vmatpush1.bf16.msra.mxu1 %v2330_v46 }
 0x1f5   : > { %1648 = vmatprep.subr.bf16.mxu1 %v2335_v6 }
 0x1f8   : > { %1649 = vmatpush1.bf16.msra.mxu1 %v2333_v48 }
 0x1f9   : > { %1650 = vmatprep.subr.bf16.mxu1 %v2338_v51 }
 0x1fc   : > { %1651 = vmatpush1.bf16.msra.mxu1 %v2336_v52 }
 0x1fd   : > { %1652 = vmatprep.subr.bf16.mxu1 %v2341_v53 }
 0x200   : > { %1653 = vmatpush2.bf16.msra.mxu1 %v2339_v54 }
 0x201   : > { %1654 = vmatprep.subr.bf16.mxu1 %v2344_v55 }
 0x204   : > { %1655 = vmatpush2.bf16.msra.mxu1 %v2342_v56 }
 0x205   : > { %1656 = vmatprep.subr.bf16.mxu1 %v2347_v58 }
 0x208   : > { %1657 = vmatpush2.bf16.msra.mxu1 %v2345_v9 }
 0x209   : > { %1658 = vmatprep.subr.bf16.mxu1 %v2350_v18 }
 0x20c   : > { %1659 = vmatpush2.bf16.msra.mxu1 %v2348_v23 }
 0x20d   : > { %1660 = vmatprep.subr.bf16.mxu1 %v2353_v24 }
 0x210   : > { %1661 = vmatpush2.bf16.msra.mxu1 %v2351_v25 }
 0x211   : > { %1662 = vmatprep.subr.bf16.mxu1 %v2356_v28 }
 0x214   : > { %1663 = vmatpush2.bf16.msra.mxu1 %v2354_v29 }
 0x215   : > { %1664 = vmatprep.subr.bf16.mxu1 %v2359_v30 }
 0x218   : > { %1665 = vmatpush2.bf16.msra.mxu1 %v2357_v34 }
 0x219   : > { %1666 = vmatprep.subr.bf16.mxu1 %v2362_v4 }
 0x21c   : > { %1667 = vmatpush2.bf16.msra.mxu1 %v2360_v12 }
 0x21f   : > { %1669 = vmatmul.mubr.bf16.vlgmr.msra.gmra.mxu1 %v2851_v14 }
 0x220   : > { %1678 = vmatprep.mubr.bf16.mxu1 %v2858_v38 }
 0x227   : > { %1679 = vmatmul.mubr.bf16.gmra.mxu1 %v2856_v33 }
 0x228   : > { %1688 = vmatprep.mubr.bf16.mxu1 %v2862_v50 }
 0x22f   : > { %1689 = vmatmul.mubr.bf16.gmra.mxu1 %v2860_v47 }
 0x230   : > { %1698 = vmatprep.mubr.bf16.mxu1 %v2866_v59 }
 0x237   : > { %1699 = vmatmul.mubr.bf16.gmra.mxu1 %v2864_v57 }
 0x29f   : > { %v908_v20 = vpop.f32.mrf.mxu1 }
 0x2a0   : > { %v916_v39 = vrot.slane %v908_v20, %v2778_v5 }
 0x2a1   : > { %v910_v40 = vpop.f32.mrf.mxu1 }
 0x2a2   : > { %v920_v42 = vrot.slane %v910_v40, %v2778_v5  ;;  %v3015_v43 = vsub.f32 %v2794_v15, %v916_v39  ;;  %v3018_v44 = vsub.f32 %v2792_v13, %v916_v39  ;;  %v3037_v13 = vsub.f32 %v2798_v17, %v916_v39 }
 0x2a3   : > { %v3055_v17 = vsub.f32 %v2813_v27, %v916_v39  ;;  %v3065_v18 = vsub.f32 %v2819_v32, %v916_v39  ;;  %v3075_v28 = vsub.f32 %v2825_v37, %v916_v39  ;;  %v3084_v12 = vsub.f32 %v2833_v45, %v916_v39 }
 0x2a4   : > { %v3021_v46 = vsub.f32 %v2800_v19, %v920_v42  ;;  %v3024_v6 = vsub.f32 %v2796_v16, %v920_v42  ;;  %v3027_v48 = vsub.f32 %v2804_v21, %v920_v42  ;;  %v3030_v51 = vsub.f32 %v2811_v26, %v920_v42 }
 0x2a5   : > { %v3040_v19 = vsub.f32 %v2817_v31, %v920_v42  ;;  %v3043_v16 = vsub.f32 %v2806_v22, %v916_v39  ;;  %v937_v53 = vmul.f32 %v3015_v43, %v3015_v43  ;;  %v939_v54 = vmul.f32 %v3018_v44, %v3018_v44 }
 0x2a6   : > { %v938_v52 = vmul.f32 %v3021_v46, %v3021_v46  ;;  %v940_v15 = vmul.f32 %v3024_v6, %v3024_v6  ;;  %v942_v21 = vmul.f32 %v3027_v48, %v3027_v48  ;;  %v3052_v55 = vsub.f32 %v2823_v36, %v920_v42 }
 0x2a7   : > { %v944_v22 = vmul.f32 %v3030_v51, %v3030_v51  ;;  %v941_v56 = vmul.f32 %v3037_v13, %v3037_v13  ;;  %v953_v58 = vadd.f32 %v939_v54, %v937_v53  ;;  %v3062_v9 = vsub.f32 %v2829_v41, %v920_v42 }
 0x2a8   : > { %v966_v26 = vadd.f32 %v940_v15, %v938_v52  ;;  %v946_v36 = vmul.f32 %v3040_v19, %v3040_v19  ;;  %v943_v27 = vmul.f32 %v3043_v16, %v3043_v16  ;;  %v3072_v25 = vsub.f32 %v2837_v49, %v920_v42 }
 0x2a9   : > { %v954_v24 = vadd.f32 %v953_v58, %v941_v56  ;;  %v948_v41 = vmul.f32 %v3052_v55, %v3052_v55  ;;  %v945_v32 = vmul.f32 %v3055_v17, %v3055_v17  ;;  %v950_v34 = vmul.f32 %v3062_v9, %v3062_v9 }
 0x2aa   : > { %v967_v31 = vadd.f32 %v966_v26, %v942_v21  ;;  %v947_v49 = vmul.f32 %v3065_v18, %v3065_v18  ;;  %v952_v20 = vmul.f32 %v3072_v25, %v3072_v25  ;;  %v949_v42 = vmul.f32 %v3075_v28, %v3075_v28 }
 0x2ab   : > { %v955_v30 = vadd.f32 %v954_v24, %v943_v27  ;;  %v951_v21 = vmul.f32 %v3084_v12, %v3084_v12 }
 0x2ac   : > { %v968_v23 = vadd.f32 %v967_v31, %v944_v22 }
 0x2ad   : > { %v956_v37 = vadd.f32 %v955_v30, %v945_v32 }
 0x2ae   : > { %v969_v29 = vadd.f32 %v968_v23, %v946_v36 }
 0x2af   : > { %v957_v52 = vadd.f32 %v956_v37, %v947_v49 }
 0x2b0   : > { %v970_v4 = vadd.f32 %v969_v29, %v948_v41  ;;  %v3105_v29 = vld [vmem:[%s3358_s8] sm:$0xf] }
 0x2b1   : > { %v958_v26 = vadd.f32 %v957_v52, %v949_v42 }
 0x2b2   : > { %v971_v40 = vadd.f32 %v970_v4, %v950_v34 }
 0x2b3   : > { %v959_v45 = vadd.f32 %v958_v26, %v951_v21 }
 0x2b4   : > { %v972_v15 = vadd.f32 %v971_v40, %v952_v20 }
 0x2b5   : > { %v960_v54 = vrot.slane %v959_v45, 4 }
 0x2b6   : > { %v973_v53 = vrot.slane %v972_v15, 4 }
 0x2b7   : > { %v961_v31 = vadd.f32 %v960_v54, %v959_v45 }
 0x2b8   : > { %v974_v39 = vadd.f32 %v973_v53, %v972_v15 }
 0x2b9   : > { %v962_v58 = vrot.slane %v961_v31, 2 }
 0x2ba   : > { %v975_v22 = vrot.slane %v974_v39, 2 }
 0x2bb   : > { %v963_v23 = vadd.f32 %v962_v58, %v961_v31 }
 0x2bc   : > { %v976_v56 = vadd.f32 %v975_v22, %v974_v39 }
 0x2bd   : > { %v964_v24 = vrot.slane %v963_v23, 1 }
 0x2be   : > { %v977_v36 = vrot.slane %v976_v56, 1 }
 0x2bf   : > { %v965_v41 = vadd.f32 %v964_v24, %v963_v23 }
 0x2c0   : > { %v978_v27 = vadd.f32 %v977_v36, %v976_v56 }
 0x2c2   : > { %1043 = vmatprep.mubr.f32.mxu0 %v978_v27 }
 0x2c3   : > { %1044 = vmatmul.mubr.f32.vlgmr.msra.gmra.mxu0 %v965_v41 }
 0x2c4   : > { %1078 = vmatpush1.msra.mxu0 %v2843_v63  ;;  %1117 = vmatprep.mubr.f32.mxu0 %v2478_v11  ;;  %v1299_v63 = vrot.slane %v3105_v29, %v2778_v5 }
 0x2c5   : > { %1079 = vmatprep.subr.mxu0 %v2871_v60  ;;  %v1303_v60 = vrot.slane %v3105_v29, %v2786_v8 }
 0x2c6   : > { %1080 = vmatpush1.msra.mxu0 %v2877_v61 }
 0x2c7   : > { %1081 = vmatprep.subr.mxu0 %v2883_v62 }
 0x2c8   : > { %1082 = vmatpush1.msra.mxu0 %v2889_v1 }
 0x2c9   : > { %1083 = vmatprep.subr.mxu0 %v2895_v3 }
 0x2ca   : > { %1084 = vmatpush1.msra.mxu0 %v2901_v7 }
 0x2df   : > { %v1670_v61 = vpop.f32.mrf.mxu1 }
 0x2e0   : > { %v1671_v62 = vadd.f32 %v1670_v61, %v1299_v63 }
 0x2e1   : > { %v1672_v11 = vpop.f32.mrf.mxu1 }
 0x2e2   : > { %v1673_v32 = vadd.f32 %v1672_v11, %v1303_v60 }
 0x2e3   : > { %v1674_v1 = vpop.f32.mrf.mxu1 }
 0x2e4   : > { %v2161_v3 = vpack.c.bf16 %v1673_v32, %v1671_v62  ;;  %v1675_v30 = vadd.f32 %v1674_v1, %v1299_v63 }
 0x2e5   : > { %v1676_v7 = vpop.f32.mrf.mxu1 }
 0x2e6   : > { %1830 = vst [vmem:[%s3115_s12] sm:$0xff] %v2161_v3  ;;  %v1677_v34 = vadd.f32 %v1676_v7, %v1303_v60 }
 0x2e7   : > { %v1680_v4 = vpop.f32.mrf.mxu1 }
 0x2e8   : > { %v2162_v49 = vpack.c.bf16 %v1677_v34, %v1675_v30  ;;  %v1681_v20 = vadd.f32 %v1680_v4, %v1299_v63  ;;  %v2365_v34 = vld [vmem:[%s3357_s7 + $0xec] ss:$16 sps:$4 sm:$0xff]  }
 0x2e9   : > { %v1682_v37 = vpop.f32.mrf.mxu1  ;;  %1709 = vmatprep.subr.bf16.mxu0 %v2365_v34  ;;  %v2408_v34 = vld [vmem:[%s3357_s7 + $0x108] ss:$16 sps:$4 sm:$0xff]  }
 0x2ea   : > { %1831 = vst [vmem:[%s3115_s12 + $0x8] sm:$0xff] %v2162_v49  ;;  %v1683_v40 = vadd.f32 %v1682_v37, %v1303_v60 }
 0x2eb   : > { %v1684_v42 = vpop.f32.mrf.mxu1 }
 0x2ec   : > { %v2163_v52 = vpack.c.bf16 %v1683_v40, %v1681_v20  ;;  %v1685_v21 = vadd.f32 %v1684_v42, %v1299_v63  ;;  %v2363_v20 = vld [vmem:[%s3357_s7 + $0xe8] ss:$16 sps:$4 sm:$0xff]   ;;  %v2371_v42 = vld [vmem:[%s3357_s7 + $0xac] ss:$16 sps:$4 sm:$0xff]  }
 0x2ed   : > { %v1686_v15 = vpop.f32.mrf.mxu1 }
 0x2ee   : > { %1832 = vst [vmem:[%s3115_s12 + $0x10] sm:$0xff] %v2163_v52  ;;  %v1687_v26 = vadd.f32 %v1686_v15, %v1303_v60  ;;  %v2369_v52 = vld [vmem:[%s3357_s7 + $0xa8] ss:$16 sps:$4 sm:$0xff]   ;;  %v2374_v15 = vld [vmem:[%s3357_s7 + $0x8c] ss:$16 sps:$4 sm:$0xff]  }
 0x2ef   : > { %v1690_v53 = vpop.f32.mrf.mxu1 }
 0x2f0   : > { %v2164_v45 = vpack.c.bf16 %v1687_v26, %v1685_v21  ;;  %v1691_v54 = vadd.f32 %v1690_v53, %v1299_v63  ;;  %v2377_v21 = vld [vmem:[%s3357_s7 + $0x6c] ss:$16 sps:$4 sm:$0xff]   ;;  %v2375_v26 = vld [vmem:[%s3357_s7 + $0x68] ss:$16 sps:$4 sm:$0xff]  }
 0x2f1   : > { %v1692_v39 = vpop.f32.mrf.mxu1  ;;  %v2380_v53 = vld [vmem:[%s3357_s7 + $0x4c] ss:$16 sps:$4 sm:$0xff]  }
 0x2f2   : > { %1833 = vst [vmem:[%s3115_s12 + $0x18] sm:$0xff] %v2164_v45  ;;  %v1693_v22 = vadd.f32 %v1692_v39, %v1303_v60  ;;  %v2378_v45 = vld [vmem:[%s3357_s7 + $0x48] ss:$16 sps:$4 sm:$0xff]   ;;  %v2383_v39 = vld [vmem:[%s3357_s7 + $0x2c] ss:$16 sps:$4 sm:$0xff]  }
 0x2f3   : > { %v1694_v31 = vpop.f32.mrf.mxu1 }
 0x2f4   : > { %v2165_v56 = vpack.c.bf16 %v1693_v22, %v1691_v54  ;;  %v1695_v36 = vadd.f32 %v1694_v31, %v1299_v63  ;;  %v2381_v54 = vld [vmem:[%s3357_s7 + $0x28] ss:$16 sps:$4 sm:$0xff]   ;;  %v2386_v22 = vld [vmem:[%s3357_s7 + $0xc] ss:$16 sps:$4 sm:$0xff]  }
 0x2f5   : > { %v1696_v58 = vpop.f32.mrf.mxu1  ;;  %v2384_v31 = vld [vmem:[%s3357_s7 + $0x8] ss:$16 sps:$4 sm:$0xff]  }
 0x2f6   : > { %1834 = vst [vmem:[%s3115_s12 + $0x20] sm:$0xff] %v2165_v56  ;;  %v1697_v23 = vadd.f32 %v1696_v58, %v1303_v60  ;;  %v2389_v56 = vld [vmem:[%s3357_s7 + $0x1ec] ss:$16 sps:$4 sm:$0xff]   ;;  %v2387_v58 = vld [vmem:[%s3357_s7 + $0x1e8] ss:$16 sps:$4 sm:$0xff]  }
 0x2f7   : > { %v1700_v27 = vpop.f32.mrf.mxu1 }
 0x2f8   : > { %v2166_v24 = vpack.c.bf16 %v1697_v23, %v1695_v36  ;;  %v1701_v61 = vadd.f32 %v1700_v27, %v1299_v63  ;;  %v2392_v36 = vld [vmem:[%s3357_s7 + $0x1cc] ss:$16 sps:$4 sm:$0xff]   ;;  %v2390_v23 = vld [vmem:[%s3357_s7 + $0x1c8] ss:$16 sps:$4 sm:$0xff]  }
 0x2f9   : > { %v1702_v41 = vpop.f32.mrf.mxu1  ;;  %v2395_v27 = vld [vmem:[%s3357_s7 + $0x1ac] ss:$16 sps:$4 sm:$0xff]  }
 0x2fa   : > { %1835 = vst [vmem:[%s3115_s12 + $0x28] sm:$0xff] %v2166_v24  ;;  %v1703_v11 = vadd.f32 %v1702_v41, %v1303_v60  ;;  %v2393_v24 = vld [vmem:[%s3357_s7 + $0x1a8] ss:$16 sps:$4 sm:$0xff]   ;;  %v2398_v41 = vld [vmem:[%s3357_s7 + $0x18c] ss:$16 sps:$4 sm:$0xff]  }
 0x2fb   : > { %v1704_v62 = vpop.f32.mrf.mxu1 }
 0x2fc   : > { %v2167_v32 = vpack.c.bf16 %v1703_v11, %v1701_v61  ;;  %v1705_v3 = vadd.f32 %v1704_v62, %v1299_v63  ;;  %v2368_v63 = vld [vmem:[%s3357_s7 + $0xcc] ss:$16 sps:$4 sm:$0xff]   ;;  %v2396_v61 = vld [vmem:[%s3357_s7 + $0x188] ss:$16 sps:$4 sm:$0xff]  }
 0x2fd   : > { %v1706_v1 = vpop.f32.mrf.mxu1  ;;  %v2401_v11 = vld [vmem:[%s3357_s7 + $0x16c] ss:$16 sps:$4 sm:$0xff]   ;;  %v2399_v62 = vld [vmem:[%s3357_s7 + $0x168] ss:$16 sps:$4 sm:$0xff]  }
 0x2fe   : > { %1836 = vst [vmem:[%s3115_s12 + $0x30] sm:$0xff] %v2167_v32  ;;  %v1707_v7 = vadd.f32 %v1706_v1, %v1303_v60  ;;  %v2366_v60 = vld [vmem:[%s3357_s7 + $0xc8] ss:$16 sps:$4 sm:$0xff]   ;;  %v2404_v32 = vld [vmem:[%s3357_s7 + $0x14c] ss:$16 sps:$4 sm:$0xff]  }
 0x2ff   : > { %v2402_v1 = vld [vmem:[%s3357_s7 + $0x148] ss:$16 sps:$4 sm:$0xff]  }
 0x300   : > { %v2168_v30 = vpack.c.bf16 %v1707_v7, %v1705_v3  ;;  %v2407_v3 = vld [vmem:[%s3357_s7 + $0x12c] ss:$16 sps:$4 sm:$0xff]   ;;  %v2405_v7 = vld [vmem:[%s3357_s7 + $0x128] ss:$16 sps:$4 sm:$0xff]  }
 0x302   : > { %1837 = vst [vmem:[%s3115_s12 + $0x38] sm:$0xff] %v2168_v30  ;;  %v2410_v30 = vld [vmem:[%s3357_s7 + $0x10c] ss:$16 sps:$4 sm:$0xff]   ;;  %s2415_s12 = scalar_lea.vmem %s3278_s0, 2048 }
 0x303   : > { %p2416_p11 = scmp.ne.s32.totalorder %s3278_s0, %s2415_s12  ;;  %p2423_p1 = scmp.lt.s32.totalorder %s2421_s15, %s2415_s12 }
 0x305   : > { %p2417_p12 = pnand %p2416_p11, %p2580_p5  ;;  %p2424_p2 = por %p2423_p1, %p2422_p0 }
 0x307   : > { %p2418_p13 = pneg %p2417_p12 }
 0x309   : > { %p2425_p3 = pnand %p2424_p2, %p2418_p13 }
 0x383   : > { %v2245_v4 = vpop.f32.mrf.mxu0 }
 0x385   : > { %v2246_v49 = vpop.f32.mrf.mxu0 }
 0x386   : > { %v2247_v37 = vadd.f32 %v2246_v49, %v2245_v4 }
 0x388   : > { %v1049_v40 = vmul.f32 0.001953125, %v2247_v37 }
 0x38a   : > { %2072 = vmatmul.mubr.msk.f32.vlgmr.msra.gmra.mxu0 %vm838_vm1, %v1049_v40 }
 0x38b   : > { %1710 = vmatpush1.bf16.msra.mxu0 %v2363_v20  ;;  %1741 = vmatprep.mubr.bf16.mxu0 %v2914_v35  ;;  %v2372_v35 = vld [vmem:[%s3357_s7 + $0x88] ss:$16 sps:$4 sm:$0xff]  }
 0x38c   : > { %1711 = vmatprep.subr.bf16.mxu0 %v2368_v63 }
 0x38f   : > { %1712 = vmatpush1.bf16.msra.mxu0 %v2366_v60 }
 0x390   : > { %1713 = vmatprep.subr.bf16.mxu0 %v2371_v42 }
 0x393   : > { %1714 = vmatpush1.bf16.msra.mxu0 %v2369_v52 }
 0x394   : > { %1715 = vmatprep.subr.bf16.mxu0 %v2374_v15 }
 0x397   : > { %1716 = vmatpush1.bf16.msra.mxu0 %v2372_v35 }
 0x398   : > { %1717 = vmatprep.subr.bf16.mxu0 %v2377_v21 }
 0x39b   : > { %1718 = vmatpush1.bf16.msra.mxu0 %v2375_v26 }
 0x39c   : > { %1719 = vmatprep.subr.bf16.mxu0 %v2380_v53 }
 0x39f   : > { %1720 = vmatpush1.bf16.msra.mxu0 %v2378_v45 }
 0x3a0   : > { %1721 = vmatprep.subr.bf16.mxu0 %v2383_v39 }
 0x3a3   : > { %1722 = vmatpush1.bf16.msra.mxu0 %v2381_v54 }
 0x3a4   : > { %1723 = vmatprep.subr.bf16.mxu0 %v2386_v22 }
 0x3a7   : > { %1724 = vmatpush1.bf16.msra.mxu0 %v2384_v31 }
 0x3a8   : > { %1725 = vmatprep.subr.bf16.mxu0 %v2389_v56 }
 0x3ab   : > { %1726 = vmatpush2.bf16.msra.mxu0 %v2387_v58 }
 0x3ac   : > { %1727 = vmatprep.subr.bf16.mxu0 %v2392_v36 }
 0x3af   : > { %1728 = vmatpush2.bf16.msra.mxu0 %v2390_v23 }
 0x3b0   : > { %1729 = vmatprep.subr.bf16.mxu0 %v2395_v27 }
 0x3b3   : > { %1730 = vmatpush2.bf16.msra.mxu0 %v2393_v24 }
 0x3b4   : > { %1731 = vmatprep.subr.bf16.mxu0 %v2398_v41 }
 0x3b7   : > { %1732 = vmatpush2.bf16.msra.mxu0 %v2396_v61 }
 0x3b8   : > { %1733 = vmatprep.subr.bf16.mxu0 %v2401_v11 }
 0x3bb   : > { %1734 = vmatpush2.bf16.msra.mxu0 %v2399_v62 }
 0x3bc   : > { %1735 = vmatprep.subr.bf16.mxu0 %v2404_v32 }
 0x3bf   : > { %1736 = vmatpush2.bf16.msra.mxu0 %v2402_v1 }
 0x3c0   : > { %1737 = vmatprep.subr.bf16.mxu0 %v2407_v3 }
 0x3c3   : > { %1738 = vmatpush2.bf16.msra.mxu0 %v2405_v7 }
 0x3c4   : > { %1739 = vmatprep.subr.bf16.mxu0 %v2410_v30 }
 0x3c7   : > { %1740 = vmatpush2.bf16.msra.mxu0 %v2408_v34 }
 0x3ca   : > { %1742 = vmatmul.mubr.bf16.vlgmr.msra.gmra.mxu0 %v2851_v14  ;;  %v1150_v14 = vld [vmem:[%s3353_s3] sm:$0x3] }
 0x3cb   : > { %1751 = vmatprep.mubr.bf16.mxu0 %v2858_v38 }
 0x3d2   : > { %1752 = vmatmul.mubr.bf16.gmra.mxu0 %v2856_v33  ;;  %v1178_v33 = vld [vmem:[%s3354_s4] sm:$0x3] }
 0x3d3   : > { %1761 = vmatprep.mubr.bf16.mxu0 %v2862_v50  ;;  %v1187_v23 = vrot.slane %v1178_v33, %v2786_v8 }
 0x3da   : > { %1762 = vmatmul.mubr.bf16.gmra.mxu0 %v2860_v47  ;;  %v1155_v47 = vrot.slane %v1150_v14, %v2778_v5 }
 0x3db   : > { %1771 = vmatprep.mubr.bf16.mxu0 %v2866_v59 }
 0x3e2   : > { %1772 = vmatmul.mubr.bf16.gmra.mxu0 %v2864_v57  ;;  %v1183_v57 = vrot.slane %v1178_v33, %v2778_v5 }
 0x44a   : > { %v1119_v4 = vpop.f32.mrf.mxu0 }
 0x44b   : > { %v1120_v49 = vadd.f32 1e-05, %v1119_v4 }
 0x44c   : > { %v1121_v37 = vpop.f32.mrf.mxu0 }
 0x44d   : > { %2411 = vrsqrt.f32 %v1120_v49  ;;  %v1122_v20 = vadd.f32 1e-05, %v1121_v37 }
 0x44f   : > { %2413 = vrsqrt.f32 %v1122_v20 }
 0x45a   : > { %v2412_v38 = vpop.eup %2411 }
 0x45b   : > { %v1129_v50 = vrot.slane %v2412_v38, %v2778_v5 }
 0x45c   : > { %v2414_v39 = vpop.eup %2413 }
 0x45d   : > { %v1134_v59 = vmul.f32 %v1129_v50, %v3015_v43  ;;  %v1136_v40 = vmul.f32 %v1129_v50, %v3018_v44  ;;  %v1138_v63 = vmul.f32 %v1129_v50, %v3037_v13  ;;  %v1140_v60 = vmul.f32 %v1129_v50, %v3043_v16 }
 0x45e   : > { %v1142_v42 = vmul.f32 %v1129_v50, %v3055_v17  ;;  %v1144_v52 = vmul.f32 %v1129_v50, %v3065_v18  ;;  %v1146_v15 = vmul.f32 %v1129_v50, %v3075_v28  ;;  %v1148_v35 = vmul.f32 %v1129_v50, %v3084_v12 }
 0x45f   : > { %v1162_v21 = vmul.f32 %v1155_v47, %v1134_v59  ;;  %v1164_v26 = vmul.f32 %v1155_v47, %v1136_v40  ;;  %v1166_v53 = vmul.f32 %v1155_v47, %v1138_v63  ;;  %v1168_v45 = vmul.f32 %v1155_v47, %v1140_v60 }
 0x460   : > { %v1170_v43 = vmul.f32 %v1155_v47, %v1142_v42  ;;  %v1172_v54 = vmul.f32 %v1155_v47, %v1144_v52  ;;  %v1174_v44 = vmul.f32 %v1155_v47, %v1146_v15  ;;  %v1176_v22 = vmul.f32 %v1155_v47, %v1148_v35 }
 0x461   : > { %v1190_v13 = vadd.f32 %v1183_v57, %v1162_v21  ;;  %v1192_v31 = vadd.f32 %v1183_v57, %v1164_v26  ;;  %v1194_v16 = vadd.f32 %v1183_v57, %v1166_v53  ;;  %v1196_v56 = vadd.f32 %v1183_v57, %v1168_v45 }
 0x462   : > { %v1198_v17 = vadd.f32 %v1183_v57, %v1170_v43  ;;  %v1200_v58 = vadd.f32 %v1183_v57, %v1172_v54  ;;  %v1202_v18 = vadd.f32 %v1183_v57, %v1174_v44  ;;  %v1204_v36 = vadd.f32 %v1183_v57, %v1176_v22 }
 0x463   : > { %v1159_v28 = vrot.slane %v1150_v14, %v2786_v8  ;;  %1206 = vst [vmem:[%s3251_s22] sm:$0xff] %v1190_v13  ;;  %1208 = vst [vmem:[%s3251_s22 + $0x10] sm:$0xff] %v1192_v31  ;;  %v1133_v12 = vrot.slane %v2414_v39, %v2778_v5 }
 0x464   : > { %1210 = vst [vmem:[%s3251_s22 + $0x20] sm:$0xff] %v1194_v16  ;;  %1212 = vst [vmem:[%s3251_s22 + $0x30] sm:$0xff] %v1196_v56 }
 0x465   : > { %1214 = vst [vmem:[%s3251_s22 + $0x40] sm:$0xff] %v1198_v17  ;;  %1216 = vst [vmem:[%s3251_s22 + $0x50] sm:$0xff] %v1200_v58  ;;  %v1135_v27 = vmul.f32 %v1133_v12, %v3021_v46  ;;  %v1137_v24 = vmul.f32 %v1133_v12, %v3024_v6  ;;  %v1139_v41 = vmul.f32 %v1133_v12, %v3027_v48 }
 0x466   : > { %1218 = vst [vmem:[%s3251_s22 + $0x60] sm:$0xff] %v1202_v18  ;;  %1220 = vst [vmem:[%s3251_s22 + $0x70] sm:$0xff] %v1204_v36  ;;  %v1141_v61 = vmul.f32 %v1133_v12, %v3030_v51  ;;  %v1143_v11 = vmul.f32 %v1133_v12, %v3040_v19  ;;  %v1145_v62 = vmul.f32 %v1133_v12, %v3052_v55 }
 0x467   : > { %v1147_v5 = vmul.f32 %v1133_v12, %v3062_v9  ;;  %v1149_v8 = vmul.f32 %v1133_v12, %v3072_v25  ;;  %v1163_v32 = vmul.f32 %v1159_v28, %v1135_v27  ;;  %v1165_v1 = vmul.f32 %v1159_v28, %v1137_v24 }
 0x468   : > { %v1167_v3 = vmul.f32 %v1159_v28, %v1139_v41  ;;  %v1169_v46 = vmul.f32 %v1159_v28, %v1141_v61  ;;  %v1171_v6 = vmul.f32 %v1159_v28, %v1143_v11  ;;  %v1173_v48 = vmul.f32 %v1159_v28, %v1145_v62 }
 0x469   : > { %v1175_v51 = vmul.f32 %v1159_v28, %v1147_v5  ;;  %v1177_v19 = vmul.f32 %v1159_v28, %v1149_v8  ;;  %v1191_v55 = vadd.f32 %v1187_v23, %v1163_v32  ;;  %v1193_v9 = vadd.f32 %v1187_v23, %v1165_v1 }
 0x46a   : > { %v1195_v25 = vadd.f32 %v1187_v23, %v1167_v3  ;;  %v1197_v7 = vadd.f32 %v1187_v23, %v1169_v46  ;;  %v1199_v30 = vadd.f32 %v1187_v23, %v1171_v6  ;;  %v1201_v34 = vadd.f32 %v1187_v23, %v1173_v48 }
 0x46b   : > { %v1203_v4 = vadd.f32 %v1187_v23, %v1175_v51  ;;  %v1205_v49 = vadd.f32 %v1187_v23, %v1177_v19  ;;  %1207 = vst [vmem:[%s3251_s22 + $0x8] sm:$0xff] %v1191_v55  ;;  %1209 = vst [vmem:[%s3251_s22 + $0x18] sm:$0xff] %v1193_v9 }
 0x46c   : > { %1211 = vst [vmem:[%s3251_s22 + $0x28] sm:$0xff] %v1195_v25  ;;  %1213 = vst [vmem:[%s3251_s22 + $0x38] sm:$0xff] %v1197_v7 }
 0x46d   : > { %1215 = vst [vmem:[%s3251_s22 + $0x48] sm:$0xff] %v1199_v30  ;;  %1217 = vst [vmem:[%s3251_s22 + $0x58] sm:$0xff] %v1201_v34 }
 0x46e   : > { %1219 = vst [vmem:[%s3251_s22 + $0x68] sm:$0xff] %v1203_v4  ;;  %1221 = vst [vmem:[%s3251_s22 + $0x78] sm:$0xff] %v1205_v49 }
 0x46f   : > { %2428 = shalt.err (!%p2425_p3)
}
 0x470   : > { %s2429_s14 = scalar_lea.hbm %s3276_s25, 2048  ;;  %s2433_s21 = scalar_lea.hbm %s3359_s9, 8192 }
 0x471   : > { %p2430_p4 = scmp.ne.s32.totalorder %s3276_s25, %s2429_s14  ;;  %p2434_p9 = scmp.lt.s32.totalorder %s3276_s25, %s3359_s9 }
 0x472   : > { %p2435_p10 = scmp.lt.s32.totalorder %s2433_s21, %s2429_s14 }
 0x473   : > { %p2431_p7 = pnand %p2430_p4, %p2580_p5 }
 0x474   : > { %p2436_p11 = por %p2435_p10, %p2434_p9 }
 0x475   : > { %p2432_p8 = pneg %p2431_p7 }
 0x477   : > { %p2437_p12 = pnand %p2436_p11, %p2432_p8 }
 0x479   : > { %2440 = shalt.err (!%p2437_p12)
}
 0x47a   : > { %s2480_s12 = smov 256   ;;  %s2481_s26 = smov 16   ;;  %v1307_v37 = vrot.slane %v3105_v29, %v451_v0  ;;  %v1311_v20 = vrot.slane %v3105_v29, %v455_v10 }
 0x47b   : > { %2248 = dma.vmem_to_hbm [thread:$0]  (%p2580_p5), %s3278_s0, 2048, %s3276_s25, %s3290_s29, %s2480_s12, %s2480_s12, %s2481_s26  }
 0x47c   : > { %s3323_s22 = scalar_lea.vmem %s3361_s11, %s2609_s30 }
 0x48a   : > { %v1743_v14 = vpop.f32.mrf.mxu0 }
 0x48b   : > { %v1744_v38 = vadd.f32 %v1743_v14, %v1307_v37 }
 0x48c   : > { %v1745_v33 = vpop.f32.mrf.mxu0 }
 0x48d   : > { %v1746_v47 = vadd.f32 %v1745_v33, %v1311_v20 }
 0x48e   : > { %v1747_v50 = vpop.f32.mrf.mxu0 }
 0x48f   : > { %v2169_v57 = vpack.c.bf16 %v1746_v47, %v1744_v38  ;;  %v1748_v0 = vadd.f32 %v1747_v50, %v1307_v37 }
 0x490   : > { %v1749_v59 = vpop.f32.mrf.mxu0 }
 0x491   : > { %1886 = vst [vmem:[%s3323_s22] sm:$0xff] %v2169_v57  ;;  %v1750_v2 = vadd.f32 %v1749_v59, %v1311_v20 }
 0x492   : > { %v1753_v10 = vpop.f32.mrf.mxu0 }
 0x493   : > { %v2170_v29 = vpack.c.bf16 %v1750_v2, %v1748_v0  ;;  %v1754_v63 = vadd.f32 %v1753_v10, %v1307_v37 }
 0x494   : > { %v1755_v40 = vpop.f32.mrf.mxu0 }
 0x495   : > { %1887 = vst [vmem:[%s3323_s22 + $0x8] sm:$0xff] %v2170_v29  ;;  %v1756_v60 = vadd.f32 %v1755_v40, %v1311_v20 }
 0x496   : > { %v1757_v42 = vpop.f32.mrf.mxu0 }
 0x497   : > { %v2171_v52 = vpack.c.bf16 %v1756_v60, %v1754_v63  ;;  %v1758_v35 = vadd.f32 %v1757_v42, %v1307_v37 }
 0x498   : > { %v1759_v15 = vpop.f32.mrf.mxu0 }
 0x499   : > { %1888 = vst [vmem:[%s3323_s22 + $0x10] sm:$0xff] %v2171_v52  ;;  %v1760_v21 = vadd.f32 %v1759_v15, %v1311_v20 }
 0x49a   : > { %v1763_v26 = vpop.f32.mrf.mxu0 }
 0x49b   : > { %v2172_v53 = vpack.c.bf16 %v1760_v21, %v1758_v35  ;;  %v1764_v39 = vadd.f32 %v1763_v26, %v1307_v37 }
 0x49c   : > { %v1765_v45 = vpop.f32.mrf.mxu0 }
 0x49d   : > { %1889 = vst [vmem:[%s3323_s22 + $0x18] sm:$0xff] %v2172_v53  ;;  %v1766_v43 = vadd.f32 %v1765_v45, %v1311_v20 }
 0x49e   : > { %v1767_v54 = vpop.f32.mrf.mxu0 }
 0x49f   : > { %v2173_v44 = vpack.c.bf16 %v1766_v43, %v1764_v39  ;;  %v1768_v13 = vadd.f32 %v1767_v54, %v1307_v37 }
 0x4a0   : > { %v1769_v22 = vpop.f32.mrf.mxu0 }
 0x4a1   : > { %1890 = vst [vmem:[%s3323_s22 + $0x20] sm:$0xff] %v2173_v44  ;;  %v1770_v31 = vadd.f32 %v1769_v22, %v1311_v20 }
 0x4a2   : > { %v1773_v16 = vpop.f32.mrf.mxu0 }
 0x4a3   : > { %v2174_v56 = vpack.c.bf16 %v1770_v31, %v1768_v13  ;;  %v1774_v58 = vadd.f32 %v1773_v16, %v1307_v37 }
 0x4a4   : > { %v1775_v17 = vpop.f32.mrf.mxu0 }
 0x4a5   : > { %1891 = vst [vmem:[%s3323_s22 + $0x28] sm:$0xff] %v2174_v56  ;;  %v1776_v18 = vadd.f32 %v1775_v17, %v1311_v20 }
 0x4a6   : > { %v1777_v36 = vpop.f32.mrf.mxu0 }
 0x4a7   : > { %v2175_v28 = vpack.c.bf16 %v1776_v18, %v1774_v58  ;;  %v1778_v23 = vadd.f32 %v1777_v36, %v1307_v37 }
 0x4a8   : > { %v1779_v12 = vpop.f32.mrf.mxu0 }
 0x4a9   : > { %1892 = vst [vmem:[%s3323_s22 + $0x30] sm:$0xff] %v2175_v28  ;;  %v1780_v27 = vadd.f32 %v1779_v12, %v1311_v20 }
 0x4ab   : > { %v2176_v24 = vpack.c.bf16 %v1780_v27, %v1778_v23 }
 0x4ad   : > { %1893 = vst [vmem:[%s3323_s22 + $0x38] sm:$0xff] %v2176_v24 }
 0x4ae PF: > { %p2254_p5 = scmp.ge.s32.totalorder %s2475_s20, 2  ;;  %s1939_s27 = sand.u32 1, %s2463_s17  }
 0x4af   : > { %s1940_s30 = scalar_lea.sflag [#allocation3], %s1939_s27 }
 0x4b0   : > { %p2251_p13 = pnand %p2254_p5, %p2584_p6 }
 0x4b2   : > { %p2252_p0 = pneg %p2251_p13 }
 0x4b4   : > { %2458 = dma.done.wait (%p2252_p0), %s1940_s30, 2048  }
 0x4b5   : > { %2460 = vsyncadd (%p2252_p0), %s1940_s30, 4294965248  ;;  %s3367_s0 = sld [smem:[#allocation5_spill]]  ;;  %p22_p1 = scmp.ge.s32.totalorder %s2567_s23, 6  }
 0x4b6   : > { %s3368_s17 = smov %s2467_s18  ;;  %s3369_s18 = smov %s2471_s19 }
 0x4b7   : > { %s3371_s20 = smov %s2567_s23  ;;  %24 = sbr.rel (!%p22_p1) target bundleno = 5 (0x5), region = 115 }
 0x4bb   : > { %s3370_s19 = smov %s3367_s0 }
 0x4bc   :  { %1961 = vsyncpa [#allocation3], 1 }
 0x4bd   :  { %1963 = vsyncpa [#allocation3 + $0x1], 1 }

// kernel: detr_head_forward.3
= control target key start
LH: loop header
LB: loop body
LE: loop exit
PB: predicated region body
PF: predicated region fallthrough
CT: control target
= control target key end

     0   :  { %s5787_s29 = smov 0   ;;  %s7426_s0 = inlined_call_operand.vmem [shape: f32[2,8,256], index: 0, kind: input, shape index: {}]   ;;  %s7427_s1 = inlined_call_operand.vmem [shape: f32[2,4,8,256], index: 1, kind: input, shape index: {}]   ;;  %s7428_s2 = inlined_call_operand.vmem [shape: bf16[256,256], index: 2, kind: input, shape index: {}]   ;;  %s7429_s3 = inlined_call_operand.vmem [shape: bf16[256,256], index: 3, kind: input, shape index: {}]   ;;  %s7430_s4 = inlined_call_operand.vmem [shape: bf16[256,256], index: 4, kind: input, shape index: {}]   ;;  %s7431_s5 = inlined_call_operand.vmem [shape: f32[1,256], index: 5, kind: input, shape index: {}]   ;;  %s7432_s6 = inlined_call_operand.vmem [shape: bf16[256,256], index: 6, kind: input, shape index: {}]   ;;  %s7433_s7 = inlined_call_operand.vmem [shape: f32[1,256], index: 7, kind: input, shape index: {}]   ;;  %s7434_s8 = inlined_call_operand.vmem [shape: bf16[256,256], index: 8, kind: input, shape index: {}]   ;;  %s7435_s9 = inlined_call_operand.vmem [shape: f32[1,256], index: 9, kind: input, shape index: {}]   ;;  %s7436_s10 = inlined_call_operand.vmem [shape: bf16[256,256], index: 10, kind: input, shape index: {}]   ;;  %s7437_s11 = inlined_call_operand.vmem [shape: f32[1,256], index: 11, kind: input, shape index: {}]   ;;  %s7438_s12 = inlined_call_operand.vmem [shape: bf16[768,128], index: 12, kind: input, shape index: {}]   ;;  %s7439_s13 = inlined_call_operand.vmem [shape: f32[1,128], index: 13, kind: input, shape index: {}]   ;;  %s7440_s14 = inlined_call_operand.vmem [shape: f32[2,8,128], index: 14, kind: output, shape index: {}]  }
   0x1 LB: > { %s4593_s30 = sadd.s32 4294967295, %s5706_s29   ;;  %p4597_p0 = scmp.ge.s32.totalorder %s5706_s29, 1  ;;  %s5706_s29 = sphi %s5787_s29, %s24_s29  }
   0x2   : > { %p422_p1 = scmp.lt.s32.totalorder %s5706_s29, 3 }
   0x4   : > { %p423_p2 = pnand %p4597_p0, %p422_p1 }
   0x5   : > { %p472_p3 = scmp.lt.s32.totalorder (!%p423_p2), %s4593_s30, 1  ;;  %s5708_s28 = smov (!%p423_p2), 96  }
   0x6   : > { %426 = sbr.rel (%p423_p2) target bundleno = 6062 (0x17ae), region = 76  ;;  %s5709_s24 = smov (!%p423_p2), 64  }
   0x7   : > { %s5711_s16 = smov (!%p423_p2), 32  }
   0xb   : > { %v5327_v0 = vld [vmem:[%s7430_s4 + $0x74] ss:$8 sps:$4 sm:$0xff]   ;;  %v5329_v1 = vld [vmem:[%s7430_s4 + $0x70] ss:$8 sps:$4 sm:$0xff]   ;;  %v5330_v2 = vld [vmem:[%s7430_s4 + $0x64] ss:$8 sps:$4 sm:$0xff]   ;;  %v525_v62 = vlaneseq }
   0xc   : > { %695 = vmatprep.subr.bf16.mxu0 %v5327_v0  ;;  %v5332_v3 = vld [vmem:[%s7430_s4 + $0x60] ss:$8 sps:$4 sm:$0xff]   ;;  %v5333_v4 = vld [vmem:[%s7430_s4 + $0x54] ss:$8 sps:$4 sm:$0xff]   ;;  %v5335_v5 = vld [vmem:[%s7430_s4 + $0x50] ss:$8 sps:$4 sm:$0xff]  }
   0xd   : > { %696 = vmatpush1.bf16.msra.mxu0 %v5329_v1  ;;  %v5336_v6 = vld [vmem:[%s7430_s4 + $0x44] ss:$8 sps:$4 sm:$0xff]   ;;  %v5338_v7 = vld [vmem:[%s7430_s4 + $0x40] ss:$8 sps:$4 sm:$0xff]   ;;  %s7442_s30 = smov (!%p472_p3, %s4593_s30), 1  ;;  %vm852_vm0 = vcmask 261120  }
   0xe   : > { %697 = vmatprep.subr.bf16.mxu0 %v5330_v2  ;;  %v5339_v8 = vld [vmem:[%s7430_s4 + $0x34] ss:$8 sps:$4 sm:$0xff]   ;;  %v5341_v9 = vld [vmem:[%s7430_s4 + $0x30] ss:$8 sps:$4 sm:$0xff]   ;;  %s4863_s21 = sshll.u32 %s7442_s30, 4  ;;  %v6025_v63 = vshrl.u32 %v525_v62, 7 }
   0xf   : > { %v5342_v10 = vld [vmem:[%s7430_s4 + $0x24] ss:$8 sps:$4 sm:$0xff]   ;;  %s5834_s26 = scalar_lea.vmem %s7426_s0, %s4863_s21  ;;  %v5344_v11 = vld [vmem:[%s7430_s4 + $0x20] ss:$8 sps:$4 sm:$0xff]   ;;  %v5345_v12 = vld [vmem:[%s7430_s4 + $0x14] ss:$8 sps:$4 sm:$0xff]  }
  0x10   : > { %v5347_v13 = vld [vmem:[%s7430_s4 + $0x10] ss:$8 sps:$4 sm:$0xff]   ;;  %v488_v14 = vld [vmem:[%s5834_s26 + $0x8] sm:$0xff]  ;;  %v5351_v23 = vld [vmem:[%s7430_s4 + $0xf4] ss:$8 sps:$4 sm:$0xff]   ;;  %v6028_v0 = vsub.s32 0, %v6025_v63 }
  0x11   : > { %698 = vmatpush1.bf16.msra.mxu0 %v5332_v3  ;;  %v5348_v15 = vld [vmem:[%s7430_s4 + $0x4] ss:$8 sps:$4 sm:$0xff]   ;;  %v5849_v16 = vpack.c.bf16 %v488_v14, %v488_v14  ;;  %v5375_v17 = vld [vmem:[%s7428_s2 + $0x70] ss:$8 sps:$4 sm:$0xff]   ;;  %v5377_v19 = vld [vmem:[%s7428_s2 + $0x60] ss:$8 sps:$4 sm:$0xff]  }
  0x12   : > { %699 = vmatprep.subr.bf16.mxu0 %v5333_v4  ;;  %v5376_v18 = vld [vmem:[%s7428_s2 + $0xf0] ss:$8 sps:$4 sm:$0xff]   ;;  %1152 = vrot.lane.b32.xlu0 %v5375_v17, %s5708_s28  ;;  %v878_v20 = vsel %vm852_vm0, %v5375_v17, 0  ;;  %v5378_v21 = vld [vmem:[%s7428_s2 + $0xe0] ss:$8 sps:$4 sm:$0xff]   ;;  %v875_v28 = vsel %vm852_vm0, %v5377_v19, 0 }
  0x13   : > { %727 = vmatprep.mubr.bf16.mxu0 %v5849_v16  ;;  %5251 = vmatprep.subr.msk.bf16.mxu1 %vm852_vm0, %v5376_v18  ;;  %v5350_v22 = vld [vmem:[%s7430_s4] ss:$8 sps:$4 sm:$0xff]   ;;  %v5353_v24 = vld [vmem:[%s7430_s4 + $0xf0] ss:$8 sps:$4 sm:$0xff]   ;;  %v5354_v26 = vld [vmem:[%s7430_s4 + $0xe4] ss:$8 sps:$4 sm:$0xff]  }
  0x14   : > { %1150 = vrot.lane.b32.xlu1 %v5377_v19, %s5708_s28  ;;  %4866 = vmatpush3.bf16.xpose.msra.mxu1 %v878_v20  ;;  %v5380_v25 = vld [vmem:[%s7428_s2 + $0x50] ss:$8 sps:$4 sm:$0xff]   ;;  %v5894_v29 = vld [vmem:[%s7428_s2 + $0x40] ss:$8 sps:$4 sm:$0xff]   ;;  %v5357_v32 = vld [vmem:[%s7430_s4 + $0xd4] ss:$8 sps:$4 sm:$0xff]  }
  0x15   : > { %700 = vmatpush1.bf16.msra.mxu0 %v5335_v5  ;;  %5252 = vmatprep.subr.msk.bf16.mxu1 %vm852_vm0, %v5378_v21  ;;  %v5379_v27 = vld [vmem:[%s7428_s2 + $0xd0] ss:$8 sps:$4 sm:$0xff]   ;;  %v5381_v30 = vld [vmem:[%s7428_s2 + $0xc0] ss:$8 sps:$4 sm:$0xff]   ;;  %v872_v34 = vsel %vm852_vm0, %v5380_v25, 0  ;;  %v869_v38 = vsel %vm852_vm0, %v5894_v29, 0 }
  0x16   : > { %701 = vmatprep.subr.bf16.mxu0 %v5336_v6  ;;  %1168 = vrot.lane.b32.xlu0 %v5376_v18, %s5708_s28  ;;  %v5356_v31 = vld [vmem:[%s7430_s4 + $0xe0] ss:$8 sps:$4 sm:$0xff]   ;;  %v5359_v33 = vld [vmem:[%s7430_s4 + $0xd0] ss:$8 sps:$4 sm:$0xff]   ;;  %v5360_v36 = vld [vmem:[%s7430_s4 + $0xc4] ss:$8 sps:$4 sm:$0xff]  }
  0x17   : > { %v5916_v35 = vld [vmem:[%s7428_s2 + $0x30] ss:$8 sps:$4 sm:$0xff]   ;;  %v5932_v39 = vld [vmem:[%s7428_s2 + $0xa0] ss:$8 sps:$4 sm:$0xff]   ;;  %v5363_v42 = vld [vmem:[%s7430_s4 + $0xb4] ss:$8 sps:$4 sm:$0xff]  }
  0x18   : > { %1166 = vrot.lane.b32.xlu1 %v5378_v21, %s5708_s28  ;;  %v5925_v37 = vld [vmem:[%s7428_s2 + $0xb0] ss:$8 sps:$4 sm:$0xff]   ;;  %v5937_v40 = vld [vmem:[%s7428_s2 + $0x20] ss:$8 sps:$4 sm:$0xff]   ;;  %v5366_v46 = vld [vmem:[%s7430_s4 + $0xa4] ss:$8 sps:$4 sm:$0xff]  }
  0x19   : > { %702 = vmatpush1.bf16.msra.mxu0 %v5338_v7  ;;  %v5362_v41 = vld [vmem:[%s7430_s4 + $0xc0] ss:$8 sps:$4 sm:$0xff]   ;;  %v5953_v43 = vld [vmem:[%s7428_s2 + $0x10] ss:$8 sps:$4 sm:$0xff]   ;;  %v5369_v50 = vld [vmem:[%s7430_s4 + $0x94] ss:$8 sps:$4 sm:$0xff]  }
  0x1a   : > { %703 = vmatprep.subr.bf16.mxu0 %v5339_v8  ;;  %1148 = vrot.lane.b32.xlu0 %v5380_v25, %s5708_s28  ;;  %v5958_v44 = vld [vmem:[%s7428_s2 + $0x90] ss:$8 sps:$4 sm:$0xff]   ;;  %v5973_v47 = vld [vmem:[%s7428_s2] ss:$8 sps:$4 sm:$0xff]   ;;  %v866_v51 = vsel %vm852_vm0, %v5916_v35, 0  ;;  %v863_v57 = vsel %vm852_vm0, %v5937_v40, 0 }
  0x1b   : > { %v5365_v45 = vld [vmem:[%s7430_s4 + $0xb0] ss:$8 sps:$4 sm:$0xff]   ;;  %v5978_v48 = vld [vmem:[%s7428_s2 + $0x80] ss:$8 sps:$4 sm:$0xff]   ;;  %v5372_v53 = vld [vmem:[%s7430_s4 + $0x84] ss:$8 sps:$4 sm:$0xff]  }
  0x1c   : > { %4868 = vmatpush3.bf16.xpose.msra.mxu1 %v875_v28  ;;  %1164 = vrot.lane.b32.xlu1 %v5379_v27, %s5708_s28  ;;  %v5368_v49 = vld [vmem:[%s7430_s4 + $0xa0] ss:$8 sps:$4 sm:$0xff]   ;;  %v5371_v52 = vld [vmem:[%s7430_s4 + $0x90] ss:$8 sps:$4 sm:$0xff]   ;;  %v860_v58 = vsel %vm852_vm0, %v5953_v43, 0  ;;  %v857_v59 = vsel %vm852_vm0, %v5973_v47, 0 }
  0x1d   : > { %704 = vmatpush1.bf16.msra.mxu0 %v5341_v9  ;;  %5253 = vmatprep.subr.msk.bf16.mxu1 %vm852_vm0, %v5379_v27  ;;  %v5374_v54 = vld [vmem:[%s7430_s4 + $0x80] ss:$8 sps:$4 sm:$0xff]   ;;  %s4864_s27 = sshll.u32 %s7442_s30, 6  ;;  %s4602_s25 = sshll.u32 %s7442_s30, 3 }
  0x1e   : > { %705 = vmatprep.subr.bf16.mxu0 %v5342_v10  ;;  %1146 = vrot.lane.b32.xlu0 %v5894_v29, %s5708_s28  ;;  %v487_v55 = vld [vmem:[%s5834_s26] sm:$0xff]  ;;  %s7052_s15 = scalar_lea.vmem %s7427_s1, %s4864_s27  ;;  %s485_s26 = scalar_lea.vmem %s7440_s14, %s4602_s25 }
  0x1f   : > { %v6010_v56 = vpack.c.bf16 %v487_v55, %v487_v55  ;;  %v523_v1 = vld [vmem:[%s7431_s5] sm:$0x3] }
  0x20   : > { %1162 = vrot.lane.b32.xlu1 %v5381_v30, %s5708_s28  ;;  %v528_v2 = vrot.slane %v523_v1, %v6028_v0  ;;  %v6114_v55 = vld [vmem:[%s7429_s3 + $0x40] ss:$8 sps:$4 sm:$0xff]  }
  0x21   : > { %706 = vmatpush1.bf16.msra.mxu0 %v5344_v11  ;;  %v6151_v1 = vld [vmem:[%s7429_s3] ss:$8 sps:$4 sm:$0xff]  }
  0x22   : > { %707 = vmatprep.subr.bf16.mxu0 %v5345_v12  ;;  %1144 = vrot.lane.b32.xlu0 %v5916_v35, %s5708_s28 }
  0x24   : > { %4870 = vmatpush3.bf16.xpose.msra.mxu1 %v872_v34  ;;  %1160 = vrot.lane.b32.xlu1 %v5925_v37, %s5708_s28  ;;  %v6062_v34 = vld [vmem:[%s7429_s3 + $0x70] ss:$8 sps:$4 sm:$0xff]  }
  0x25   : > { %708 = vmatpush1.bf16.msra.mxu0 %v5347_v13  ;;  %5254 = vmatprep.subr.msk.bf16.mxu1 %vm852_vm0, %v5381_v30 }
  0x26   : > { %709 = vmatprep.subr.bf16.mxu0 %v5348_v15  ;;  %1142 = vrot.lane.b32.xlu0 %v5937_v40, %s5708_s28 }
  0x28   : > { %1158 = vrot.lane.b32.xlu1 %v5932_v39, %s5708_s28 }
  0x29   : > { %710 = vmatpush1.bf16.msra.mxu0 %v5350_v22 }
  0x2a   : > { %711 = vmatprep.subr.bf16.mxu0 %v5351_v23  ;;  %1140 = vrot.lane.b32.xlu0 %v5953_v43, %s5708_s28 }
  0x2c   : > { %4872 = vmatpush3.bf16.xpose.msra.mxu1 %v869_v38  ;;  %1156 = vrot.lane.b32.xlu1 %v5958_v44, %s5708_s28  ;;  %v6076_v38 = vld [vmem:[%s7429_s3 + $0x60] ss:$8 sps:$4 sm:$0xff]  }
  0x2d   : > { %712 = vmatpush2.bf16.msra.mxu0 %v5353_v24  ;;  %5255 = vmatprep.subr.msk.bf16.mxu1 %vm852_vm0, %v5925_v37 }
  0x2e   : > { %713 = vmatprep.subr.bf16.mxu0 %v5354_v26  ;;  %1138 = vrot.lane.b32.xlu0 %v5973_v47, %s5708_s28 }
  0x30   : > { %1154 = vrot.lane.b32.xlu1 %v5978_v48, %s5708_s28 }
  0x31   : > { %714 = vmatpush2.bf16.msra.mxu0 %v5356_v31 }
  0x32   : > { %715 = vmatprep.subr.bf16.mxu0 %v5357_v32 }
  0x34   : > { %4874 = vmatpush3.bf16.xpose.msra.mxu1 %v866_v51  ;;  %v6085_v51 = vld [vmem:[%s7429_s3 + $0xf0] ss:$8 sps:$4 sm:$0xff]  }
  0x35   : > { %716 = vmatpush2.bf16.msra.mxu0 %v5359_v33  ;;  %5256 = vmatprep.subr.msk.bf16.mxu1 %vm852_vm0, %v5932_v39 }
  0x36   : > { %717 = vmatprep.subr.bf16.mxu0 %v5360_v36  ;;  %v6069_v36 = vld [vmem:[%s7429_s3 + $0xe0] ss:$8 sps:$4 sm:$0xff]  }
  0x39   : > { %718 = vmatpush2.bf16.msra.mxu0 %v5362_v41 }
  0x3a   : > { %719 = vmatprep.subr.bf16.mxu0 %v5363_v42 }
  0x3c   : > { %4876 = vmatpush3.bf16.xpose.msra.mxu1 %v863_v57  ;;  %v6119_v57 = vld [vmem:[%s7429_s3 + $0xb0] ss:$8 sps:$4 sm:$0xff]  }
  0x3d   : > { %720 = vmatpush2.bf16.msra.mxu0 %v5365_v45  ;;  %5257 = vmatprep.subr.msk.bf16.mxu1 %vm852_vm0, %v5958_v44 }
  0x3e   : > { %721 = vmatprep.subr.bf16.mxu0 %v5366_v46 }
  0x41   : > { %722 = vmatpush2.bf16.msra.mxu0 %v5368_v49 }
  0x42   : > { %723 = vmatprep.subr.bf16.mxu0 %v5369_v50 }
  0x44   : > { %4878 = vmatpush3.bf16.xpose.msra.mxu1 %v860_v58  ;;  %v6126_v58 = vld [vmem:[%s7429_s3 + $0x30] ss:$8 sps:$4 sm:$0xff]  }
  0x45   : > { %724 = vmatpush2.bf16.msra.mxu0 %v5371_v52  ;;  %5258 = vmatprep.subr.msk.bf16.mxu1 %vm852_vm0, %v5978_v48  ;;  %v6095_v52 = vld [vmem:[%s7429_s3 + $0xd0] ss:$8 sps:$4 sm:$0xff]  }
  0x46   : > { %725 = vmatprep.subr.bf16.mxu0 %v5372_v53  ;;  %v6102_v53 = vld [vmem:[%s7429_s3 + $0x50] ss:$8 sps:$4 sm:$0xff]  }
  0x49   : > { %726 = vmatpush2.bf16.msra.mxu0 %v5374_v54  ;;  %v6107_v54 = vld [vmem:[%s7429_s3 + $0xc0] ss:$8 sps:$4 sm:$0xff]  }
  0x4a   : > { %4883 = vmatprep.subr.bf16.mxu0 %v6085_v51 }
  0x4c   : > { %728 = vmatmul.mubr.bf16.vlgmr.msra.gmra.mxu0 %v6010_v56  ;;  %4880 = vmatpush3.bf16.xpose.msra.mxu1 %v857_v59  ;;  %v6132_v59 = vld [vmem:[%s7429_s3 + $0xa0] ss:$8 sps:$4 sm:$0xff]  }
  0x4d   : > { %4884 = vmatpush3.bf16.msra.mxu0 %v6062_v34 }
  0x4e   : > { %4885 = vmatprep.subr.bf16.mxu0 %v6069_v36 }
  0x51   : > { %4886 = vmatpush3.bf16.msra.mxu0 %v6076_v38 }
  0x52   : > { %4887 = vmatprep.subr.bf16.mxu0 %v6095_v52 }
  0x55   : > { %4888 = vmatpush3.bf16.msra.mxu0 %v6102_v53 }
  0x56   : > { %4889 = vmatprep.subr.bf16.mxu0 %v6107_v54 }
  0x59   : > { %4890 = vmatpush3.bf16.msra.mxu0 %v6114_v55 }
  0x5a   : > { %4891 = vmatprep.subr.bf16.mxu0 %v6119_v57 }
  0x5d   : > { %4892 = vmatpush3.bf16.msra.mxu0 %v6126_v58 }
  0x5e   : > { %4893 = vmatprep.subr.bf16.mxu0 %v6132_v59 }
  0x84   : > { %v1153_v60 = vpop.permute.xlu0 %1152 }
  0x85   : > { %v1195_v11 = vsel %vm852_vm0, %v1153_v60, 0  ;;  %v6137_v60 = vld [vmem:[%s7429_s3 + $0x20] ss:$8 sps:$4 sm:$0xff]  }
  0x86   : > { %v1151_v5 = vpop.permute.xlu1 %1150  ;;  %4894 = vmatpush3.bf16.msra.mxu0 %v6137_v60 }
  0x87   : > { %v1192_v13 = vsel %vm852_vm0, %v1151_v5, 0 }
  0x88   : > { %v1169_v61 = vpop.permute.xlu0 %1168 }
  0x89   : > { %5259 = vmatprep.subr.msk.bf16.mxu1 %vm852_vm0, %v1169_v61  ;;  %v6142_v61 = vld [vmem:[%s7429_s3 + $0x90] ss:$8 sps:$4 sm:$0xff]  }
  0x8a   : > { %v1167_v12 = vpop.permute.xlu1 %1166  ;;  %4895 = vmatprep.subr.bf16.mxu0 %v6142_v61 }
  0x8c   : > { %v1149_v15 = vpop.permute.xlu0 %1148 }
  0x8d   : > { %v1189_v17 = vsel %vm852_vm0, %v1149_v15, 0 }
  0x8e   : > { %v1165_v14 = vpop.permute.xlu1 %1164 }
  0x90   : > { %v1147_v19 = vpop.permute.xlu0 %1146 }
  0x91   : > { %v1186_v20 = vsel %vm852_vm0, %v1147_v19, 0 }
  0x92   : > { %v1163_v18 = vpop.permute.xlu1 %1162 }
  0x94   : > { %v1145_v22 = vpop.permute.xlu0 %1144 }
  0x95   : > { %v1183_v23 = vsel %vm852_vm0, %v1145_v22, 0  ;;  %v6205_v22 = vld [vmem:[%s7428_s2 + $0x60] ss:$8 sps:$4 sm:$0xff]  }
  0x96   : > { %v1161_v21 = vpop.permute.xlu1 %1160 }
  0x98   : > { %v1143_v25 = vpop.permute.xlu0 %1142 }
  0x99   : > { %v1180_v26 = vsel %vm852_vm0, %v1143_v25, 0 }
  0x9a   : > { %v1159_v24 = vpop.permute.xlu1 %1158 }
  0x9c   : > { %v1141_v28 = vpop.permute.xlu0 %1140 }
  0x9d   : > { %v1177_v30 = vsel %vm852_vm0, %v1141_v28, 0 }
  0x9e   : > { %v1157_v27 = vpop.permute.xlu1 %1156 }
  0xa0   : > { %v1139_v32 = vpop.permute.xlu0 %1138 }
  0xa1   : > { %v1174_v33 = vsel %vm852_vm0, %v1139_v32, 0 }
  0xa2   : > { %v1155_v31 = vpop.permute.xlu1 %1154 }
 0x10c   : > { %v729_v3 = vpop.f32.mrf.mxu0 }
 0x10d   : > { %v730_v4 = vadd.f32 %v729_v3, %v528_v2  ;;  %v6157_v2 = vld [vmem:[%s7429_s3 + $0x10] ss:$8 sps:$4 sm:$0xff]   ;;  %v6162_v3 = vld [vmem:[%s7429_s3 + $0x80] ss:$8 sps:$4 sm:$0xff]  }
 0x10e   : > { %v6034_v6 = vpop.f32.mrf.mxu0  ;;  %4896 = vmatpush3.bf16.msra.mxu0 %v6157_v2 }
 0x10f   : > { %v736_v7 = vmul.f32 0.17677669, %v730_v4  ;;  %4897 = vmatprep.subr.bf16.mxu0 %v6162_v3 }
 0x110   : > { %v733_v8 = vpop.f32.mrf.mxu0 }
 0x111   : > { %v6036_v9 = vpack.c.bf16 %v736_v7, %v736_v7 }
 0x112   : > { %v734_v10 = vpop.f32.mrf.mxu0  ;;  %4898 = vmatpush3.bf16.msra.mxu0 %v6151_v1 }
 0x113   : > { %1136 = vrot.lane.b32.xlu0 %v6036_v9, %s5708_s28  ;;  %4881 = vmatprep.mubr.msk.bf16.mxu1 %vm852_vm0, %v6036_v9 }
 0x114   : > { %4882 = vmatmul.mubr.msk.bf16.vlgmr.msra.gmra.mxu1 %vm852_vm0, %v6036_v9 }
 0x115   : > { %4906 = vmatpush3.bf16.xpose.msra.mxu1 %v1195_v11 }
 0x116   : > { %5260 = vmatprep.subr.msk.bf16.mxu1 %vm852_vm0, %v1167_v12 }
 0x117   : > { %1293 = vrot.lane.b32.xlu0 %v6062_v34, %s5708_s28 }
 0x11b   : > { %1307 = vrot.lane.b32.xlu0 %v6069_v36, %s5708_s28 }
 0x11d   : > { %4908 = vmatpush3.bf16.xpose.msra.mxu1 %v1192_v13 }
 0x11e   : > { %5261 = vmatprep.subr.msk.bf16.mxu1 %vm852_vm0, %v1165_v14 }
 0x11f   : > { %1291 = vrot.lane.b32.xlu0 %v6076_v38, %s5708_s28 }
 0x125   : > { %4910 = vmatpush3.bf16.xpose.msra.mxu1 %v1189_v17 }
 0x126   : > { %5262 = vmatprep.subr.msk.bf16.mxu1 %vm852_vm0, %v1163_v18 }
 0x12d   : > { %4912 = vmatpush3.bf16.xpose.msra.mxu1 %v1186_v20 }
 0x12e   : > { %5263 = vmatprep.subr.msk.bf16.mxu1 %vm852_vm0, %v1161_v21  ;;  %v6198_v21 = vld [vmem:[%s7428_s2 + $0x70] ss:$8 sps:$4 sm:$0xff]  }
 0x135   : > { %4914 = vmatpush3.bf16.xpose.msra.mxu1 %v1183_v23  ;;  %v6212_v23 = vld [vmem:[%s7428_s2 + $0x50] ss:$8 sps:$4 sm:$0xff]  }
 0x136   : > { %5264 = vmatprep.subr.msk.bf16.mxu1 %vm852_vm0, %v1159_v24 }
 0x13d   : > { %4916 = vmatpush3.bf16.xpose.msra.mxu1 %v1180_v26 }
 0x13e   : > { %5265 = vmatprep.subr.msk.bf16.mxu1 %vm852_vm0, %v1157_v27 }
 0x145   : > { %4918 = vmatpush3.bf16.xpose.msra.mxu1 %v1177_v30 }
 0x146   : > { %5266 = vmatprep.subr.msk.bf16.mxu1 %vm852_vm0, %v1155_v31 }
 0x14d   : > { %4920 = vmatpush3.bf16.xpose.msra.mxu1 %v1174_v33 }
 0x185   : > { %v1137_v41 = vpop.permute.xlu0 %1136 }
 0x186   : > { %4921 = vmatprep.mubr.msk.bf16.mxu1 %vm852_vm0, %v1137_v41 }
 0x187   : > { %4922 = vmatmul.mubr.msk.bf16.vlgmr.msra.gmra.mxu1 %vm852_vm0, %v1137_v41  ;;  %v6265_v41 = vld [vmem:[%s7428_s2 + $0xd0] ss:$8 sps:$4 sm:$0xff]  }
 0x189   : > { %v1294_v24 = vpop.permute.xlu0 %1293 }
 0x18d   : > { %v1308_v25 = vpop.permute.xlu0 %1307 }
 0x191   : > { %v1292_v26 = vpop.permute.xlu0 %1291 }
 0x1d4   : > { %v938_v42 = vpop.f32.mrf.mxu1 }
 0x1d6   : > { %v940_v45 = vpop.f32.mrf.mxu1 }
 0x1d7   : > { %v945_v46 = vmax.f32 %v938_v42, %v940_v45 }
 0x1d8   : > { %v942_v49 = vpop.f32.mrf.mxu1 }
 0x1d9   : > { %946 = vmax.xlane.f32.xlu1 %v945_v46 }
 0x1da   : > { %v943_v50 = vpop.f32.mrf.mxu1 }
 0x1ea   : > { %1309 = vrot.lane.b32.xlu1 %v6085_v51, %s5708_s28 }
 0x1ee   : > { %1299 = vrot.lane.b32.xlu1 %v6132_v59, %s5708_s28 }
 0x1f2   : > { %1279 = vrot.lane.b32.xlu1 %v6151_v1, %s5708_s28 }
 0x247   : > { %v1255_v4 = vpop.f32.mrf.mxu1 }
 0x249   : > { %v1257_v5 = vpop.f32.mrf.mxu1 }
 0x24a   : > { %v1262_v7 = vmax.f32 %v1255_v4, %v1257_v5 }
 0x24b   : > { %v1259_v8 = vpop.f32.mrf.mxu1 }
 0x24c   : > { %1263 = vmax.xlane.f32.xlu0 %v1262_v7 }
 0x24d   : > { %v1260_v10 = vpop.f32.mrf.mxu1 }
 0x262   : > { %1305 = vrot.lane.b32.xlu0 %v6095_v52, %s5708_s28  ;;  %v947_v11 = vpop.xlane.xlu1 %946 }
 0x263   : > { %v948_v12 = vsub.f32 %v938_v42, %v947_v11  ;;  %v949_v13 = vsub.f32 %v940_v45, %v947_v11  ;;  %v6272_v45 = vld [vmem:[%s7428_s2 + $0xc0] ss:$8 sps:$4 sm:$0xff]  }
 0x265   : > { %v950_v14 = vmul.f32 1.442695, %v948_v12  ;;  %v952_v15 = vmul.f32 1.442695, %v949_v13 }
 0x266   : > { %1289 = vrot.lane.b32.xlu0 %v6102_v53, %s5708_s28  ;;  %v1310_v20 = vpop.permute.xlu1 %1309 }
 0x267   : > { %5631 = vpow2.f32 %v950_v14  ;;  %4923 = vmatprep.subr.bf16.mxu0 %v1310_v20  ;;  %v5409_v20 = vld [vmem:[%s7432_s6 + $0x34] ss:$8 sps:$4 sm:$0xff]  }
 0x268   : > { %5633 = vpow2.f32 %v952_v15  ;;  %1407 = vmatprep.subr.bf16.mxu1 %v5409_v20 }
 0x274   : > { %v6173_v17 = vpop.eup %5631 }
 0x275   : > { %v6175_v18 = vpop.eup %5633 }
 0x276   : > { %v954_v19 = vadd.f32 %v6175_v18, %v6173_v17 }
 0x285   : > { %955 = vadd.xlane.f32.xlu0 %v954_v19  ;;  %v5407_v19 = vld [vmem:[%s7432_s6 + $0x30] ss:$8 sps:$4 sm:$0xff]  }
 0x286   : > { %1408 = vmatpush1.bf16.msra.mxu1 %v5407_v19 }
 0x29b   : > { %1303 = vrot.lane.b32.xlu0 %v6107_v54, %s5708_s28 }
 0x29f   : > { %1287 = vrot.lane.b32.xlu0 %v6114_v55, %s5708_s28 }
 0x2a3   : > { %1301 = vrot.lane.b32.xlu0 %v6119_v57, %s5708_s28 }
 0x2a7   : > { %1285 = vrot.lane.b32.xlu0 %v6126_v58, %s5708_s28 }
 0x2ab   : > { %1283 = vrot.lane.b32.xlu0 %v6137_v60, %s5708_s28 }
 0x2af   : > { %1297 = vrot.lane.b32.xlu0 %v6142_v61, %s5708_s28 }
 0x2b3   : > { %1281 = vrot.lane.b32.xlu0 %v6157_v2, %s5708_s28 }
 0x2b7   : > { %1295 = vrot.lane.b32.xlu0 %v6162_v3, %s5708_s28 }
 0x2bb   : > { %1516 = vrot.lane.b32.xlu0 %v6198_v21, %s5709_s24 }
 0x2bf   : > { %1514 = vrot.lane.b32.xlu0 %v6205_v22, %s5709_s24 }
 0x2c3   : > { %1512 = vrot.lane.b32.xlu0 %v6212_v23, %s5709_s24 }
 0x2c7   : > { %1510 = vrot.lane.b32.xlu0 %v5894_v29, %s5709_s24 }
 0x2cb   : > { %1508 = vrot.lane.b32.xlu0 %v5916_v35, %s5709_s24 }
 0x2cf   : > { %1506 = vrot.lane.b32.xlu0 %v5937_v40, %s5709_s24 }
 0x2d3   : > { %1504 = vrot.lane.b32.xlu0 %v5953_v43, %s5709_s24  ;;  %v6251_v43 = vld [vmem:[%s7428_s2 + $0xf0] ss:$8 sps:$4 sm:$0xff]  }
 0x2d5   : > { %v1264_v27 = vpop.xlane.xlu0 %1263 }
 0x2d6   : > { %v1265_v28 = vsub.f32 %v1255_v4, %v1264_v27  ;;  %v1266_v30 = vsub.f32 %v1257_v5, %v1264_v27 }
 0x2d7   : > { %1502 = vrot.lane.b32.xlu0 %v5973_v47, %s5709_s24  ;;  %v6258_v47 = vld [vmem:[%s7428_s2 + $0xe0] ss:$8 sps:$4 sm:$0xff]  }
 0x2d8   : > { %v1267_v31 = vmul.f32 1.442695, %v1265_v28  ;;  %v1269_v32 = vmul.f32 1.442695, %v1266_v30 }
 0x2d9   : > { %v1306_v33 = vpop.permute.xlu0 %1305 }
 0x2da   : > { %5635 = vpow2.f32 %v1267_v31 }
 0x2db   : > { %5637 = vpow2.f32 %v1269_v32  ;;  %1500 = vrot.lane.b32.xlu0 %v6036_v9, %s5709_s24 }
 0x2dd   : > { %v1290_v42 = vpop.permute.xlu0 %1289 }
 0x2df   : > { %1673 = vrot.lane.b32.xlu0 %v6085_v51, %s5709_s24 }
 0x2e3   : > { %1671 = vrot.lane.b32.xlu0 %v6069_v36, %s5709_s24 }
 0x2e7   : > { %v6232_v29 = vpop.eup %5635  ;;  %1653 = vrot.lane.b32.xlu0 %v6102_v53, %s5709_s24 }
 0x2e8   : > { %v6236_v35 = vpop.eup %5637 }
 0x2e9   : > { %v1271_v40 = vadd.f32 %v6236_v35, %v6232_v29 }
 0x2eb   : > { %1272 = vadd.xlane.f32.xlu1 %v1271_v40  ;;  %1651 = vrot.lane.b32.xlu0 %v6114_v55, %s5709_s24 }
 0x2ef   : > { %1649 = vrot.lane.b32.xlu0 %v6126_v58, %s5709_s24 }
 0x2f3   : > { %1647 = vrot.lane.b32.xlu0 %v6137_v60, %s5709_s24 }
 0x2f7   : > { %1645 = vrot.lane.b32.xlu0 %v6157_v2, %s5709_s24 }
 0x2fc   : > { %1532 = vrot.lane.b32.xlu1 %v6251_v43, %s5709_s24 }
 0x300   : > { %1530 = vrot.lane.b32.xlu1 %v6258_v47, %s5709_s24 }
 0x304   : > { %1528 = vrot.lane.b32.xlu1 %v6265_v41, %s5709_s24 }
 0x308   : > { %1526 = vrot.lane.b32.xlu1 %v6272_v45, %s5709_s24 }
 0x30c   : > { %1524 = vrot.lane.b32.xlu1 %v5925_v37, %s5709_s24 }
 0x30e   : > { %v956_v46 = vpop.xlane.xlu0 %955 }
 0x30f   : > { %5639 = vrcp.f32 %v956_v46 }
 0x310   : > { %1522 = vrot.lane.b32.xlu1 %v5932_v39, %s5709_s24 }
 0x312   : > { %v1304_v49 = vpop.permute.xlu0 %1303 }
 0x314   : > { %1520 = vrot.lane.b32.xlu1 %v5958_v44, %s5709_s24 }
 0x316   : > { %v1288_v50 = vpop.permute.xlu0 %1287 }
 0x318   : > { %1518 = vrot.lane.b32.xlu1 %v5978_v48, %s5709_s24  ;;  %v1300_v48 = vpop.permute.xlu1 %1299 }
 0x31a   : > { %v1302_v5 = vpop.permute.xlu0 %1301 }
 0x31c   : > { %v5640_v4 = vpop.eup %5639  ;;  %v1280_v14 = vpop.permute.xlu1 %1279 }
 0x31d   : > { %v959_v7 = vmul.f32 %v5640_v4, %v6175_v18  ;;  %v958_v8 = vmul.f32 %v5640_v4, %v6173_v17 }
 0x31e   : > { %v1286_v11 = vpop.permute.xlu0 %1285 }
 0x31f   : > { %v961_v37 = vpack.c.bf16 %v959_v7, %v959_v7  ;;  %v960_v10 = vpack.c.bf16 %v958_v8, %v958_v8 }
 0x321   : > { %1122 = vmatprep.mubr.bf16.mxu0 %v961_v37 }
 0x322   : > { %1123 = vmatmul.mubr.bf16.vlgmr.msra.gmra.mxu0 %v960_v10  ;;  %v1284_v39 = vpop.permute.xlu0 %1283 }
 0x323   : > { %4924 = vmatpush3.bf16.msra.mxu0 %v1294_v24 }
 0x324   : > { %4925 = vmatprep.subr.bf16.mxu0 %v1308_v25 }
 0x326   : > { %v1298_v44 = vpop.permute.xlu0 %1297 }
 0x327   : > { %4926 = vmatpush3.bf16.msra.mxu0 %v1292_v26 }
 0x328   : > { %4927 = vmatprep.subr.bf16.mxu0 %v1306_v33 }
 0x32a   : > { %v1282_v12 = vpop.permute.xlu0 %1281 }
 0x32b   : > { %4928 = vmatpush3.bf16.msra.mxu0 %v1290_v42 }
 0x32c   : > { %4929 = vmatprep.subr.bf16.mxu0 %v1304_v49 }
 0x32e   : > { %v1296_v13 = vpop.permute.xlu0 %1295 }
 0x32f   : > { %4930 = vmatpush3.bf16.msra.mxu0 %v1288_v50 }
 0x330   : > { %4931 = vmatprep.subr.bf16.mxu0 %v1302_v5 }
 0x332   : > { %v1517_v15 = vpop.permute.xlu0 %1516 }
 0x333   : > { %4932 = vmatpush3.bf16.msra.mxu0 %v1286_v11  ;;  %v1559_v49 = vsel %vm852_vm0, %v1517_v15, 0  ;;  %v5410_v15 = vld [vmem:[%s7432_s6 + $0x20] ss:$8 sps:$4 sm:$0xff]  }
 0x334   : > { %4933 = vmatprep.subr.bf16.mxu0 %v1300_v48 }
 0x336   : > { %v1515_v17 = vpop.permute.xlu0 %1514 }
 0x337   : > { %4934 = vmatpush3.bf16.msra.mxu0 %v1284_v39  ;;  %v1556_v5 = vsel %vm852_vm0, %v1515_v17, 0  ;;  %v5415_v17 = vld [vmem:[%s7432_s6 + $0x14] ss:$8 sps:$4 sm:$0xff]  }
 0x338   : > { %4935 = vmatprep.subr.bf16.mxu0 %v1298_v44 }
 0x33a   : > { %v1513_v18 = vpop.permute.xlu0 %1512 }
 0x33b   : > { %4936 = vmatpush3.bf16.msra.mxu0 %v1282_v12 }
 0x33c   : > { %4937 = vmatprep.subr.bf16.mxu0 %v1296_v13 }
 0x33e   : > { %v1511_v24 = vpop.permute.xlu0 %1510 }
 0x33f   : > { %4938 = vmatpush3.bf16.msra.mxu0 %v1280_v14  ;;  %v1550_v8 = vsel %vm852_vm0, %v1511_v24, 0  ;;  %v5412_v14 = vld [vmem:[%s7432_s6 + $0x24] ss:$8 sps:$4 sm:$0xff]  }
 0x340   : > { %1409 = vmatprep.subr.bf16.mxu1 %v5412_v14 }
 0x341   : > { %1410 = vmatpush1.bf16.msra.mxu1 %v5410_v15 }
 0x342   : > { %v1509_v25 = vpop.permute.xlu0 %1508  ;;  %1471 = vmatprep.subr.bf16.mxu1 %v5415_v17 }
 0x343   : > { %v1547_v10 = vsel %vm852_vm0, %v1509_v25, 0 }
 0x346   : > { %v1507_v27 = vpop.permute.xlu0 %1506 }
 0x347   : > { %v1544_v39 = vsel %vm852_vm0, %v1507_v27, 0 }
 0x34a   : > { %v1505_v30 = vpop.permute.xlu0 %1504 }
 0x34b   : > { %v1541_v48 = vsel %vm852_vm0, %v1505_v30, 0 }
 0x34e   : > { %v1503_v32 = vpop.permute.xlu0 %1502 }
 0x34f   : > { %v1538_v13 = vsel %vm852_vm0, %v1503_v32, 0  ;;  %v5413_v32 = vld [vmem:[%s7432_s6 + $0x10] ss:$8 sps:$4 sm:$0xff]  }
 0x352   : > { %v1501_v4 = vpop.permute.xlu0 %1500 }
 0x374   : > { %v1273_v26 = vpop.xlane.xlu1 %1272 }
 0x375   : > { %5641 = vrcp.f32 %v1273_v26 }
 0x378   : > { %v1533_v28 = vpop.permute.xlu1 %1532 }
 0x379   : > { %5267 = vmatprep.subr.msk.bf16.mxu0 %vm852_vm0, %v1533_v28 }
 0x37c   : > { %v1531_v50 = vpop.permute.xlu1 %1530 }
 0x380   : > { %v1529_v7 = vpop.permute.xlu1 %1528 }
 0x382   : > { %v5642_v31 = vpop.eup %5641 }
 0x383   : > { %v1276_v40 = vmul.f32 %v5642_v31, %v6236_v35  ;;  %v1275_v33 = vmul.f32 %v5642_v31, %v6232_v29  ;;  %v1553_v29 = vsel %vm852_vm0, %v1513_v18, 0  ;;  %v5710_v18 = vmov 0  }
 0x384   : > { %v1527_v35 = vpop.permute.xlu1 %1526  ;;  %1427 = vmatprep.mubr.bf16.mxu1 %v5710_v18 }
 0x385   : > { %v1278_v42 = vpack.c.bf16 %v1276_v40, %v1276_v40  ;;  %v1277_v46 = vpack.c.bf16 %v1275_v33, %v1275_v33  ;;  %v5418_v33 = vld [vmem:[%s7432_s6 + $0x4] ss:$8 sps:$4 sm:$0xff]  }
 0x387   : > { %1359 = vmatprep.mubr.bf16.mxu0 %v1278_v42 }
 0x388   : > { %1360 = vmatmul.mubr.bf16.vlgmr.msra.gmra.mxu0 %v1277_v46  ;;  %v1525_v37 = vpop.permute.xlu1 %1524  ;;  %v5416_v46 = vld [vmem:[%s7432_s6] ss:$8 sps:$4 sm:$0xff]  }
 0x389   : > { %4946 = vmatpush3.bf16.xpose.msra.mxu0 %v1559_v49  ;;  %4961 = vmatprep.mubr.msk.bf16.mxu0 %vm852_vm0, %v1501_v4 }
 0x38a   : > { %5268 = vmatprep.subr.msk.bf16.mxu0 %vm852_vm0, %v1531_v50 }
 0x38c   : > { %v1523_v11 = vpop.permute.xlu1 %1522 }
 0x390   : > { %v1521_v44 = vpop.permute.xlu1 %1520 }
 0x391   : > { %4948 = vmatpush3.bf16.xpose.msra.mxu0 %v1556_v5 }
 0x392   : > { %5269 = vmatprep.subr.msk.bf16.mxu0 %vm852_vm0, %v1529_v7 }
 0x394   : > { %v1519_v12 = vpop.permute.xlu1 %1518 }
 0x399   : > { %4950 = vmatpush3.bf16.xpose.msra.mxu0 %v1553_v29 }
 0x39a   : > { %5270 = vmatprep.subr.msk.bf16.mxu0 %vm852_vm0, %v1527_v35  ;;  %v5690_v35 = vld [vmem:[%s7428_s2 + $0x40] ss:$8 sps:$4 sm:$0xff]  }
 0x3a1   : > { %4952 = vmatpush3.bf16.xpose.msra.mxu0 %v1550_v8  ;;  %v5691_v8 = vld [vmem:[%s7428_s2 + $0x30] ss:$8 sps:$4 sm:$0xff]  }
 0x3a2   : > { %5271 = vmatprep.subr.msk.bf16.mxu0 %vm852_vm0, %v1525_v37  ;;  %v1674_v37 = vpop.permute.xlu0 %1673 }
 0x3a9   : > { %4954 = vmatpush3.bf16.xpose.msra.mxu0 %v1547_v10 }
 0x3aa   : > { %5272 = vmatprep.subr.msk.bf16.mxu0 %vm852_vm0, %v1523_v11  ;;  %v1672_v11 = vpop.permute.xlu0 %1671 }
 0x3ae   : > { %v1654_v14 = vpop.permute.xlu0 %1653 }
 0x3b1   : > { %4956 = vmatpush3.bf16.xpose.msra.mxu0 %v1544_v39 }
 0x3b2   : > { %5273 = vmatprep.subr.msk.bf16.mxu0 %vm852_vm0, %v1521_v44 }
 0x3b9   : > { %4958 = vmatpush3.bf16.xpose.msra.mxu0 %v1541_v48 }
 0x3ba   : > { %5274 = vmatprep.subr.msk.bf16.mxu0 %vm852_vm0, %v1519_v12 }
 0x3c1   : > { %4960 = vmatpush3.bf16.xpose.msra.mxu0 %v1538_v13 }
 0x3c8   : > { %4962 = vmatmul.mubr.msk.bf16.vlgmr.msra.gmra.mxu0 %vm852_vm0, %v1501_v4 }
 0x3e2   : > { %v4899_v19 = vpop.f32.mrf.mxu0 }
 0x3e4   : > { %v4900_v20 = vpop.f32.mrf.mxu0 }
 0x3e5   : > { %v4901_v24 = vadd.f32 %v4900_v20, %v4899_v19  ;;  %v1652_v20 = vpop.permute.xlu0 %1651 }
 0x3e6   : > { %v4902_v25 = vpop.f32.mrf.mxu0 }
 0x3e7   : > { %v1130_v49 = vpack.c.bf16 %v4901_v24, %v4901_v24 }
 0x3e8   : > { %v4903_v26 = vpop.f32.mrf.mxu0 }
 0x3e9   : > { %v1650_v25 = vpop.permute.xlu0 %1649 }
 0x448   : > { %v4939_v27 = vpop.f32.mrf.mxu0 }
 0x44a   : > { %v4940_v28 = vpop.f32.mrf.mxu0 }
 0x44b   : > { %v4941_v30 = vadd.f32 %v4940_v28, %v4939_v27 }
 0x44c   : > { %v4942_v31 = vpop.f32.mrf.mxu0 }
 0x44d   : > { %v1367_v40 = vpack.c.bf16 %v4941_v30, %v4941_v30 }
 0x44e   : > { %v4943_v42 = vpop.f32.mrf.mxu0 }
 0x44f   : > { %4673 = vmatmul.mubr.msk.bf16.vlgmr.msra.gmra.mxu1 %vm852_vm0, %v1367_v40 }
 0x450   : > { %1472 = vmatpush1.bf16.msra.mxu1 %v5413_v32  ;;  %1491 = vmatprep.mubr.bf16.mxu1 %v5710_v18  ;;  %v1648_v32 = vpop.permute.xlu0 %1647 }
 0x451   : > { %1473 = vmatprep.subr.bf16.mxu1 %v5418_v33 }
 0x454   : > { %1474 = vmatpush1.bf16.msra.mxu1 %v5416_v46  ;;  %v1646_v33 = vpop.permute.xlu0 %1645 }
 0x455   : > { %4963 = vmatprep.subr.bf16.mxu1 %v1674_v37 }
 0x457   : > { %4678 = vmatmul.mubr.msk.bf16.vlgmr.msra.gmra.mxu1 %vm852_vm0, %v1130_v49  ;;  %v5695_v49 = vld [vmem:[%s7428_s2 + $0xb0] ss:$8 sps:$4 sm:$0xff]  }
 0x488   : > { %v1619_v50 = vpop.f32.mrf.mxu0 }
 0x48a   : > { %v1621_v4 = vpop.f32.mrf.mxu0 }
 0x48b   : > { %v1626_v5 = vmax.f32 %v1619_v50, %v1621_v4 }
 0x48c   : > { %v1623_v7 = vpop.f32.mrf.mxu0 }
 0x48d   : > { %1627 = vmax.xlane.f32.xlu1 %v1626_v5 }
 0x48e   : > { %v1624_v29 = vpop.f32.mrf.mxu0 }
 0x49e   : > { %1657 = vrot.lane.b32.xlu1 %v6062_v34, %s5709_s24 }
 0x4a2   : > { %1655 = vrot.lane.b32.xlu1 %v6076_v38, %s5709_s24 }
 0x4a6   : > { %1669 = vrot.lane.b32.xlu1 %v6095_v52, %s5709_s24 }
 0x4aa   : > { %1667 = vrot.lane.b32.xlu1 %v6107_v54, %s5709_s24 }
 0x4ae   : > { %1665 = vrot.lane.b32.xlu1 %v6119_v57, %s5709_s24 }
 0x4b2   : > { %1663 = vrot.lane.b32.xlu1 %v6132_v59, %s5709_s24 }
 0x4b6   : > { %1661 = vrot.lane.b32.xlu1 %v6142_v61, %s5709_s24 }
 0x4ba   : > { %1659 = vrot.lane.b32.xlu1 %v6162_v3, %s5709_s24 }
 0x4be   : > { %1818 = vrot.lane.b32.xlu1 %v6198_v21, %s5711_s16  ;;  %v5692_v21 = vld [vmem:[%s7428_s2 + $0x20] ss:$8 sps:$4 sm:$0xff]  }
 0x4c2   : > { %1816 = vrot.lane.b32.xlu1 %v6205_v22, %s5711_s16  ;;  %v5693_v22 = vld [vmem:[%s7428_s2 + $0x10] ss:$8 sps:$4 sm:$0xff]  }
 0x4c6   : > { %1814 = vrot.lane.b32.xlu1 %v6212_v23, %s5711_s16  ;;  %v5694_v23 = vld [vmem:[%s7428_s2] ss:$8 sps:$4 sm:$0xff]  }
 0x4ca   : > { %1812 = vrot.lane.b32.xlu1 %v5690_v35, %s5711_s16 }
 0x4ce   : > { %1810 = vrot.lane.b32.xlu1 %v5691_v8, %s5711_s16 }
 0x4d2   : > { %1808 = vrot.lane.b32.xlu1 %v5692_v21, %s5711_s16  ;;  %v5419_v21 = vld [vmem:[%s7432_s6 + $0x50] ss:$8 sps:$4 sm:$0xff]  }
 0x4d6   : > { %1806 = vrot.lane.b32.xlu1 %v5693_v22, %s5711_s16  ;;  %v5424_v22 = vld [vmem:[%s7432_s6 + $0x44] ss:$8 sps:$4 sm:$0xff]  }
 0x4da   : > { %1804 = vrot.lane.b32.xlu1 %v5694_v23, %s5711_s16  ;;  %v5422_v23 = vld [vmem:[%s7432_s6 + $0x40] ss:$8 sps:$4 sm:$0xff]  }
 0x4de   : > { %1802 = vrot.lane.b32.xlu1 %v6036_v9, %s5711_s16 }
 0x4e2   : > { %1975 = vrot.lane.b32.xlu1 %v6085_v51, %s5711_s16 }
 0x4e6   : > { %1959 = vrot.lane.b32.xlu1 %v6062_v34, %s5711_s16 }
 0x4ea   : > { %1957 = vrot.lane.b32.xlu1 %v6076_v38, %s5711_s16 }
 0x4ee   : > { %1953 = vrot.lane.b32.xlu1 %v6114_v55, %s5711_s16 }
 0x4f2   : > { %1951 = vrot.lane.b32.xlu1 %v6126_v58, %s5711_s16 }
 0x4f6   : > { %1949 = vrot.lane.b32.xlu1 %v6137_v60, %s5711_s16 }
 0x4fa   : > { %1947 = vrot.lane.b32.xlu1 %v6157_v2, %s5711_s16 }
 0x50f   : > { %v1429_v9 = vpop.f32.mrf.mxu1 }
 0x511   : > { %v1431_v51 = vpop.f32.mrf.mxu1 }
 0x513   : > { %v1433_v10 = vpop.f32.mrf.mxu1 }
 0x515   : > { %v1434_v34 = vpop.f32.mrf.mxu1 }
 0x516   : > { %v1628_v39 = vpop.xlane.xlu1 %1627 }
 0x517   : > { %v1629_v44 = vsub.f32 %v1619_v50, %v1628_v39  ;;  %v1630_v38 = vsub.f32 %v1621_v4, %v1628_v39  ;;  %v1493_v48 = vpop.f32.mrf.mxu1  ;;  %v5696_v50 = vld [vmem:[%s7428_s2 + $0xa0] ss:$8 sps:$4 sm:$0xff]  }
 0x518   : > { %v6392_v12 = vadd.f32 %v1493_v48, %v1429_v9 }
 0x519   : > { %v1631_v55 = vmul.f32 1.442695, %v1629_v44  ;;  %v1633_v13 = vmul.f32 1.442695, %v1630_v38  ;;  %v1495_v58 = vpop.f32.mrf.mxu1 }
 0x51a   : > { %v1658_v15 = vpop.permute.xlu1 %1657  ;;  %v6394_v60 = vadd.f32 %v1495_v58, %v1431_v51 }
 0x51b   : > { %5643 = vpow2.f32 %v1631_v55  ;;  %v1497_v2 = vpop.f32.mrf.mxu1  ;;  %4964 = vmatpush3.bf16.msra.mxu1 %v1658_v15 }
 0x51c   : > { %5645 = vpow2.f32 %v1633_v13  ;;  %4965 = vmatprep.subr.bf16.mxu1 %v1672_v11 }
 0x51d   : > { %v1498_v17 = vpop.f32.mrf.mxu1 }
 0x51e   : > { %v1656_v19 = vpop.permute.xlu1 %1655 }
 0x51f   : > { %4966 = vmatpush3.bf16.msra.mxu1 %v1656_v19 }
 0x522   : > { %v1670_v24 = vpop.permute.xlu1 %1669 }
 0x523   : > { %4967 = vmatprep.subr.bf16.mxu1 %v1670_v24 }
 0x524   : > { %4968 = vmatpush3.bf16.msra.mxu1 %v1654_v14 }
 0x526   : > { %v1668_v26 = vpop.permute.xlu1 %1667 }
 0x527   : > { %4969 = vmatprep.subr.bf16.mxu1 %v1668_v26 }
 0x528   : > { %v5644_v27 = vpop.eup %5643  ;;  %4970 = vmatpush3.bf16.msra.mxu1 %v1652_v20 }
 0x529   : > { %v5646_v28 = vpop.eup %5645 }
 0x52a   : > { %v1666_v30 = vpop.permute.xlu1 %1665  ;;  %v1635_v31 = vadd.f32 %v5646_v28, %v5644_v27 }
 0x52b   : > { %4971 = vmatprep.subr.bf16.mxu1 %v1666_v30 }
 0x52c   : > { %1636 = vadd.xlane.f32.xlu0 %v1635_v31  ;;  %4972 = vmatpush3.bf16.msra.mxu1 %v1650_v25 }
 0x52e   : > { %v1664_v40 = vpop.permute.xlu1 %1663 }
 0x52f   : > { %4973 = vmatprep.subr.bf16.mxu1 %v1664_v40 }
 0x530   : > { %4974 = vmatpush3.bf16.msra.mxu1 %v1648_v32 }
 0x532   : > { %v1662_v42 = vpop.permute.xlu1 %1661 }
 0x533   : > { %4975 = vmatprep.subr.bf16.mxu1 %v1662_v42 }
 0x534   : > { %4976 = vmatpush3.bf16.msra.mxu1 %v1646_v33 }
 0x536   : > { %v1660_v46 = vpop.permute.xlu1 %1659 }
 0x537   : > { %4977 = vmatprep.subr.bf16.mxu1 %v1660_v46 }
 0x53a   : > { %v1819_v9 = vpop.permute.xlu1 %1818 }
 0x53b   : > { %v1861_v14 = vsel %vm852_vm0, %v1819_v9, 0 }
 0x53e   : > { %v1817_v51 = vpop.permute.xlu1 %1816 }
 0x53f   : > { %v1858_v20 = vsel %vm852_vm0, %v1817_v51, 0 }
 0x542   : > { %1643 = vrot.lane.b32.xlu0 %v6151_v1, %s5709_s24  ;;  %v1815_v10 = vpop.permute.xlu1 %1814 }
 0x543   : > { %v1855_v25 = vsel %vm852_vm0, %v1815_v10, 0 }
 0x546   : > { %1834 = vrot.lane.b32.xlu0 %v6251_v43, %s5711_s16  ;;  %v5697_v43 = vld [vmem:[%s7428_s2 + $0x90] ss:$8 sps:$4 sm:$0xff]   ;;  %v1813_v11 = vpop.permute.xlu1 %1812 }
 0x54a   : > { %1832 = vrot.lane.b32.xlu0 %v6258_v47, %s5711_s16  ;;  %v5698_v47 = vld [vmem:[%s7428_s2 + $0x80] ss:$8 sps:$4 sm:$0xff]   ;;  %v1811_v34 = vpop.permute.xlu1 %1810 }
 0x54b   : > { %v1849_v30 = vsel %vm852_vm0, %v1811_v34, 0 }
 0x54e   : > { %1830 = vrot.lane.b32.xlu0 %v6265_v41, %s5711_s16  ;;  %v1809_v39 = vpop.permute.xlu1 %1808 }
 0x54f   : > { %v1846_v32 = vsel %vm852_vm0, %v1809_v39, 0 }
 0x552   : > { %1828 = vrot.lane.b32.xlu0 %v6272_v45, %s5711_s16  ;;  %v5421_v45 = vld [vmem:[%s7432_s6 + $0x54] ss:$8 sps:$4 sm:$0xff]   ;;  %v1807_v44 = vpop.permute.xlu1 %1806 }
 0x553   : > { %v1843_v33 = vsel %vm852_vm0, %v1807_v44, 0 }
 0x556   : > { %1826 = vrot.lane.b32.xlu0 %v5695_v49, %s5711_s16  ;;  %v1805_v48 = vpop.permute.xlu1 %1804 }
 0x557   : > { %v1840_v46 = vsel %vm852_vm0, %v1805_v48, 0  ;;  %v5441_v48 = vld [vmem:[%s7432_s6 + $0x70] ss:$8 sps:$4 sm:$0xff]  }
 0x55a   : > { %1824 = vrot.lane.b32.xlu0 %v5696_v50, %s5711_s16  ;;  %v1803_v19 = vpop.permute.xlu1 %1802 }
 0x55e   : > { %1822 = vrot.lane.b32.xlu0 %v5697_v43, %s5711_s16 }
 0x562   : > { %1820 = vrot.lane.b32.xlu0 %v5698_v47, %s5711_s16 }
 0x5b5   : > { %v1637_v41 = vpop.xlane.xlu0 %1636 }
 0x5b6   : > { %5647 = vrcp.f32 %v1637_v41 }
 0x5b9   : > { %v1644_v4 = vpop.permute.xlu0 %1643 }
 0x5ba   : > { %4978 = vmatpush3.bf16.msra.mxu1 %v1644_v4 }
 0x5bb   : > { %1771 = vmatprep.subr.bf16.mxu1 %v5421_v45 }
 0x5bd   : > { %v1835_v37 = vpop.permute.xlu0 %1834 }
 0x5c1   : > { %v1833_v17 = vpop.permute.xlu0 %1832 }
 0x5c3   : > { %v5648_v5 = vpop.eup %5647 }
 0x5c4   : > { %v1640_v7 = vmul.f32 %v5648_v5, %v5646_v28  ;;  %v1639_v29 = vmul.f32 %v5648_v5, %v5644_v27  ;;  %v1852_v27 = vsel %vm852_vm0, %v1813_v11, 0 }
 0x5c5   : > { %v1831_v24 = vpop.permute.xlu0 %1830 }
 0x5c6   : > { %v1642_v35 = vpack.c.bf16 %v1640_v7, %v1640_v7  ;;  %v1641_v8 = vpack.c.bf16 %v1639_v29, %v1639_v29 }
 0x5c8   : > { %1723 = vmatprep.mubr.bf16.mxu1 %v1642_v35 }
 0x5c9   : > { %1724 = vmatmul.mubr.bf16.vlgmr.msra.gmra.mxu1 %v1641_v8  ;;  %v1829_v26 = vpop.permute.xlu0 %1828 }
 0x5ca   : > { %1772 = vmatpush1.bf16.msra.mxu1 %v5419_v21  ;;  %1791 = vmatprep.mubr.bf16.mxu1 %v5710_v18 }
 0x5cb   : > { %1773 = vmatprep.subr.bf16.mxu1 %v5424_v22 }
 0x5cd   : > { %v1827_v28 = vpop.permute.xlu0 %1826 }
 0x5ce   : > { %1774 = vmatpush1.bf16.msra.mxu1 %v5422_v23 }
 0x5cf   : > { %5275 = vmatprep.subr.msk.bf16.mxu1 %vm852_vm0, %v1835_v37 }
 0x5d1   : > { %v1825_v31 = vpop.permute.xlu0 %1824 }
 0x5d5   : > { %v1823_v40 = vpop.permute.xlu0 %1822 }
 0x5d9   : > { %v1821_v42 = vpop.permute.xlu0 %1820 }
 0x689   : > { %v4979_v38 = vpop.f32.mrf.mxu1 }
 0x68b   : > { %v4980_v55 = vpop.f32.mrf.mxu1 }
 0x68c   : > { %v4981_v13 = vadd.f32 %v4980_v55, %v4979_v38  ;;  %v5443_v55 = vld [vmem:[%s7432_s6 + $0x74] ss:$8 sps:$4 sm:$0xff]  }
 0x68d   : > { %v4982_v58 = vpop.f32.mrf.mxu1 }
 0x68e   : > { %v1731_v15 = vpack.c.bf16 %v4981_v13, %v4981_v13  ;;  %v6488_v58 = vld [vmem:[%s7428_s2 + $0xf4] ss:$8 sps:$4 sm:$0xff]  }
 0x68f   : > { %v4983_v2 = vpop.f32.mrf.mxu1 }
 0x690   : > { %4684 = vmatmul.mubr.msk.bf16.vlgmr.msra.gmra.mxu1 %vm852_vm0, %v1731_v15  ;;  %v5699_v15 = vld [vmem:[%s7431_s5] sm:$0x3] }
 0x691   : > { %4986 = vmatpush3.bf16.xpose.msra.mxu1 %v1861_v14  ;;  %5001 = vmatprep.mubr.msk.bf16.mxu1 %vm852_vm0, %v1803_v19  ;;  %v6491_v14 = vsub.s32 1, %v6025_v63 }
 0x692   : > { %5276 = vmatprep.subr.msk.bf16.mxu1 %vm852_vm0, %v1833_v17 }
 0x693   : > { %v532_v2 = vrot.slane %v5699_v15, %v6491_v14 }
 0x695   : > { %v732_v17 = vadd.f32 %v6034_v6, %v532_v2 }
 0x697   : > { %v737_v63 = vmul.f32 0.17677669, %v732_v17 }
 0x699   : > { %4988 = vmatpush3.bf16.xpose.msra.mxu1 %v1858_v20  ;;  %v6503_v20 = vld [vmem:[%s7428_s2 + $0x74] ss:$8 sps:$4 sm:$0xff]   ;;  %v6512_v6 = vpack.c.bf16 %v737_v63, %v737_v63 }
 0x69a   : > { %5277 = vmatprep.subr.msk.bf16.mxu1 %vm852_vm0, %v1831_v24 }
 0x6a1   : > { %4990 = vmatpush3.bf16.xpose.msra.mxu1 %v1855_v25 }
 0x6a2   : > { %5278 = vmatprep.subr.msk.bf16.mxu1 %vm852_vm0, %v1829_v26 }
 0x6a9   : > { %4992 = vmatpush3.bf16.xpose.msra.mxu1 %v1852_v27 }
 0x6aa   : > { %5279 = vmatprep.subr.msk.bf16.mxu1 %vm852_vm0, %v1827_v28  ;;  %v2241_v28 = vsel %vm852_vm0, %v6503_v20, 0 }
 0x6b1   : > { %4994 = vmatpush3.bf16.xpose.msra.mxu1 %v1849_v30  ;;  %v6510_v30 = vld [vmem:[%s7428_s2 + $0xe4] ss:$8 sps:$4 sm:$0xff]  }
 0x6b2   : > { %5280 = vmatprep.subr.msk.bf16.mxu1 %vm852_vm0, %v1825_v31  ;;  %v6521_v31 = vld [vmem:[%s7428_s2 + $0x64] ss:$8 sps:$4 sm:$0xff]  }
 0x6b9   : > { %4996 = vmatpush3.bf16.xpose.msra.mxu1 %v1846_v32  ;;  %v2238_v32 = vsel %vm852_vm0, %v6521_v31, 0 }
 0x6ba   : > { %5281 = vmatprep.subr.msk.bf16.mxu1 %vm852_vm0, %v1823_v40  ;;  %v6528_v40 = vld [vmem:[%s7428_s2 + $0xd4] ss:$8 sps:$4 sm:$0xff]  }
 0x6c1   : > { %4998 = vmatpush3.bf16.xpose.msra.mxu1 %v1843_v33  ;;  %v6535_v33 = vld [vmem:[%s7428_s2 + $0x54] ss:$8 sps:$4 sm:$0xff]  }
 0x6c2   : > { %5282 = vmatprep.subr.msk.bf16.mxu1 %vm852_vm0, %v1821_v42  ;;  %v2235_v42 = vsel %vm852_vm0, %v6535_v33, 0 }
 0x6c9   : > { %5000 = vmatpush3.bf16.xpose.msra.mxu1 %v1840_v46  ;;  %v6542_v46 = vld [vmem:[%s7428_s2 + $0xc4] ss:$8 sps:$4 sm:$0xff]  }
 0x6ca   : > { %2073 = vmatprep.subr.bf16.mxu1 %v5443_v55 }
 0x6d0   : > { %5002 = vmatmul.mubr.msk.bf16.vlgmr.msra.gmra.mxu1 %vm852_vm0, %v1803_v19 }
 0x6d1   : > { %2093 = vmatprep.mubr.bf16.mxu1 %v5710_v18  ;;  %2074 = vmatpush1.bf16.msra.mxu1 %v5441_v48  ;;  %v6666_v48 = vld [vmem:[%s7429_s3 + $0x54] ss:$8 sps:$4 sm:$0xff]  }
 0x750   : > { %v1793_v49 = vpop.f32.mrf.mxu1 }
 0x751   : > { %v6456_v50 = vadd.f32 %v1793_v49, %v6392_v12  ;;  %v1976_v12 = vpop.permute.xlu1 %1975  ;;  %v6549_v49 = vld [vmem:[%s7428_s2 + $0x44] ss:$8 sps:$4 sm:$0xff]  }
 0x752   : > { %v1795_v43 = vpop.f32.mrf.mxu1  ;;  %5003 = vmatprep.subr.bf16.mxu0 %v1976_v12  ;;  %v6591_v12 = vld [vmem:[%s7428_s2 + $0x14] ss:$8 sps:$4 sm:$0xff]  }
 0x753   : > { %v6459_v47 = vadd.f32 %v1795_v43, %v6394_v60  ;;  %v2232_v43 = vsel %vm852_vm0, %v6549_v49, 0 }
 0x754   : > { %v1797_v41 = vpop.f32.mrf.mxu1 }
 0x755   : > { %v6556_v41 = vld [vmem:[%s7428_s2 + $0xb4] ss:$8 sps:$4 sm:$0xff]  }
 0x756   : > { %v1798_v45 = vpop.f32.mrf.mxu1 }
 0x757   : > { %v6563_v45 = vld [vmem:[%s7428_s2 + $0x34] ss:$8 sps:$4 sm:$0xff]  }
 0x790   : > { %v1921_v4 = vpop.f32.mrf.mxu1 }
 0x792   : > { %v1923_v5 = vpop.f32.mrf.mxu1 }
 0x793   : > { %v1928_v7 = vmax.f32 %v1921_v4, %v1923_v5 }
 0x794   : > { %v1925_v29 = vpop.f32.mrf.mxu1 }
 0x795   : > { %1929 = vmax.xlane.f32.xlu0 %v1928_v7  ;;  %v6577_v7 = vld [vmem:[%s7428_s2 + $0x24] ss:$8 sps:$4 sm:$0xff]  }
 0x796   : > { %v1926_v35 = vpop.f32.mrf.mxu1  ;;  %v2226_v29 = vsel %vm852_vm0, %v6577_v7, 0 }
 0x797   : > { %v6584_v35 = vld [vmem:[%s7428_s2 + $0x94] ss:$8 sps:$4 sm:$0xff]  }
 0x7ab   : > { %1973 = vrot.lane.b32.xlu0 %v6069_v36, %s5711_s16  ;;  %v1960_v36 = vpop.permute.xlu1 %1959 }
 0x7ac   : > { %5004 = vmatpush3.bf16.msra.mxu0 %v1960_v36  ;;  %v2223_v36 = vsel %vm852_vm0, %v6591_v12, 0 }
 0x7af   : > { %1971 = vrot.lane.b32.xlu0 %v6095_v52, %s5711_s16  ;;  %v1958_v21 = vpop.permute.xlu1 %1957 }
 0x7b3   : > { %1955 = vrot.lane.b32.xlu0 %v6102_v53, %s5711_s16 }
 0x7b7   : > { %1969 = vrot.lane.b32.xlu0 %v6107_v54, %s5711_s16 }
 0x7bb   : > { %1967 = vrot.lane.b32.xlu0 %v6119_v57, %s5711_s16 }
 0x7bf   : > { %1965 = vrot.lane.b32.xlu0 %v6132_v59, %s5711_s16 }
 0x7c3   : > { %1963 = vrot.lane.b32.xlu0 %v6142_v61, %s5711_s16  ;;  %v1954_v61 = vpop.permute.xlu1 %1953 }
 0x7c7   : > { %1961 = vrot.lane.b32.xlu0 %v6162_v3, %s5711_s16  ;;  %v1952_v23 = vpop.permute.xlu1 %1951 }
 0x7cb   : > { %v1950_v11 = vpop.permute.xlu1 %1949 }
 0x7cf   : > { %v1948_v39 = vpop.permute.xlu1 %1947 }
 0x81e   : > { %v1930_v52 = vpop.xlane.xlu0 %1929 }
 0x81f   : > { %v1931_v53 = vsub.f32 %v1921_v4, %v1930_v52  ;;  %v1932_v60 = vsub.f32 %v1923_v5, %v1930_v52  ;;  %v2229_v4 = vsel %vm852_vm0, %v6563_v45, 0  ;;  %v6570_v5 = vld [vmem:[%s7428_s2 + $0xa4] ss:$8 sps:$4 sm:$0xff]  }
 0x820   : > { %v6598_v52 = vld [vmem:[%s7428_s2 + $0x84] ss:$8 sps:$4 sm:$0xff]  }
 0x821   : > { %v1933_v54 = vmul.f32 1.442695, %v1931_v53  ;;  %v1935_v8 = vmul.f32 1.442695, %v1932_v60  ;;  %v6605_v53 = vld [vmem:[%s7428_s2 + $0x4] ss:$8 sps:$4 sm:$0xff]  }
 0x822   : > { %v1974_v57 = vpop.permute.xlu0 %1973  ;;  %v2220_v60 = vsel %vm852_vm0, %v6605_v53, 0 }
 0x823   : > { %5649 = vpow2.f32 %v1933_v54  ;;  %5005 = vmatprep.subr.bf16.mxu0 %v1974_v57  ;;  %v5446_v54 = vld [vmem:[%s7432_s6 + $0x64] ss:$8 sps:$4 sm:$0xff]  }
 0x824   : > { %5651 = vpow2.f32 %v1935_v8  ;;  %5006 = vmatpush3.bf16.msra.mxu0 %v1958_v21  ;;  %v5444_v8 = vld [vmem:[%s7432_s6 + $0x60] ss:$8 sps:$4 sm:$0xff]   ;;  %2075 = vmatprep.subr.bf16.mxu1 %v5446_v54  ;;  %v6742_v54 = vld [vmem:[%s7429_s3 + $0x84] ss:$8 sps:$4 sm:$0xff]  }
 0x825   : > { %2076 = vmatpush1.bf16.msra.mxu1 %v5444_v8  ;;  %v6750_v8 = vld [vmem:[%s7429_s3 + $0x4] ss:$8 sps:$4 sm:$0xff]  }
 0x826   : > { %v1972_v59 = vpop.permute.xlu0 %1971 }
 0x827   : > { %5007 = vmatprep.subr.bf16.mxu0 %v1972_v59 }
 0x82a   : > { %v1956_v22 = vpop.permute.xlu0 %1955 }
 0x82b   : > { %5008 = vmatpush3.bf16.msra.mxu0 %v1956_v22 }
 0x82e   : > { %v1970_v3 = vpop.permute.xlu0 %1969 }
 0x82f   : > { %5009 = vmatprep.subr.bf16.mxu0 %v1970_v3 }
 0x830   : > { %v5650_v37 = vpop.eup %5649  ;;  %5010 = vmatpush3.bf16.msra.mxu0 %v1954_v61 }
 0x831   : > { %v5652_v9 = vpop.eup %5651 }
 0x832   : > { %v1937_v51 = vadd.f32 %v5652_v9, %v5650_v37  ;;  %v1968_v10 = vpop.permute.xlu0 %1967 }
 0x833   : > { %5011 = vmatprep.subr.bf16.mxu0 %v1968_v10 }
 0x834   : > { %1938 = vadd.xlane.f32.xlu1 %v1937_v51  ;;  %5012 = vmatpush3.bf16.msra.mxu0 %v1952_v23 }
 0x836   : > { %v1966_v34 = vpop.permute.xlu0 %1965 }
 0x837   : > { %5013 = vmatprep.subr.bf16.mxu0 %v1966_v34  ;;  %v6638_v34 = vld [vmem:[%s7429_s3 + $0x74] ss:$8 sps:$4 sm:$0xff]  }
 0x838   : > { %5014 = vmatpush3.bf16.msra.mxu0 %v1950_v11  ;;  %v6633_v11 = vld [vmem:[%s7429_s3 + $0xf4] ss:$8 sps:$4 sm:$0xff]  }
 0x839   : > { %5043 = vmatprep.subr.bf16.mxu1 %v6633_v11 }
 0x83a   : > { %v1964_v44 = vpop.permute.xlu0 %1963 }
 0x83b   : > { %5015 = vmatprep.subr.bf16.mxu0 %v1964_v44  ;;  %v6652_v44 = vld [vmem:[%s7429_s3 + $0x64] ss:$8 sps:$4 sm:$0xff]  }
 0x83c   : > { %5016 = vmatpush3.bf16.msra.mxu0 %v1948_v39  ;;  %v6643_v39 = vld [vmem:[%s7429_s3 + $0xe4] ss:$8 sps:$4 sm:$0xff]  }
 0x83e   : > { %v1962_v38 = vpop.permute.xlu0 %1961 }
 0x83f   : > { %5017 = vmatprep.subr.bf16.mxu0 %v1962_v38  ;;  %v6658_v38 = vld [vmem:[%s7429_s3 + $0xd4] ss:$8 sps:$4 sm:$0xff]  }
 0x845   : > { %1945 = vrot.lane.b32.xlu1 %v6151_v1, %s5711_s16 }
 0x8bd   : > { %v1939_v13 = vpop.xlane.xlu1 %1938 }
 0x8be   : > { %5653 = vrcp.f32 %v1939_v13 }
 0x8c1   : > { %v1946_v1 = vpop.permute.xlu1 %1945 }
 0x8c2   : > { %5018 = vmatpush3.bf16.msra.mxu0 %v1946_v1 }
 0x8c3   : > { %5283 = vmatprep.subr.msk.bf16.mxu0 %vm852_vm0, %v6488_v58 }
 0x8cb   : > { %v5654_v19 = vpop.eup %5653 }
 0x8cc   : > { %v1942_v24 = vmul.f32 %v5654_v19, %v5652_v9  ;;  %v1941_v25 = vmul.f32 %v5654_v19, %v5650_v37 }
 0x8ce   : > { %v1944_v26 = vpack.c.bf16 %v1942_v24, %v1942_v24  ;;  %v1943_v27 = vpack.c.bf16 %v1941_v25, %v1941_v25 }
 0x8d0   : > { %2025 = vmatprep.mubr.bf16.mxu0 %v1944_v26 }
 0x8d1   : > { %2026 = vmatmul.mubr.bf16.vlgmr.msra.gmra.mxu0 %v1943_v27 }
 0x8d2   : > { %5026 = vmatpush3.bf16.xpose.msra.mxu0 %v2241_v28  ;;  %5041 = vmatprep.mubr.msk.bf16.mxu0 %vm852_vm0, %v6512_v6 }
 0x8d3   : > { %5284 = vmatprep.subr.msk.bf16.mxu0 %vm852_vm0, %v6510_v30 }
 0x8da   : > { %5028 = vmatpush3.bf16.xpose.msra.mxu0 %v2238_v32 }
 0x8db   : > { %5285 = vmatprep.subr.msk.bf16.mxu0 %vm852_vm0, %v6528_v40 }
 0x8e2   : > { %5030 = vmatpush3.bf16.xpose.msra.mxu0 %v2235_v42  ;;  %v6699_v42 = vld [vmem:[%s7429_s3 + $0xb4] ss:$8 sps:$4 sm:$0xff]  }
 0x8e3   : > { %5286 = vmatprep.subr.msk.bf16.mxu0 %vm852_vm0, %v6542_v46 }
 0x8ea   : > { %5032 = vmatpush3.bf16.xpose.msra.mxu0 %v2232_v43  ;;  %v6704_v43 = vld [vmem:[%s7429_s3 + $0x34] ss:$8 sps:$4 sm:$0xff]  }
 0x8eb   : > { %5287 = vmatprep.subr.msk.bf16.mxu0 %vm852_vm0, %v6556_v41 }
 0x8f2   : > { %5034 = vmatpush3.bf16.xpose.msra.mxu0 %v2229_v4  ;;  %v6711_v4 = vld [vmem:[%s7429_s3 + $0xa4] ss:$8 sps:$4 sm:$0xff]  }
 0x8f3   : > { %5288 = vmatprep.subr.msk.bf16.mxu0 %vm852_vm0, %v6570_v5 }
 0x8fa   : > { %5036 = vmatpush3.bf16.xpose.msra.mxu0 %v2226_v29  ;;  %v6718_v29 = vld [vmem:[%s7429_s3 + $0x24] ss:$8 sps:$4 sm:$0xff]  }
 0x8fb   : > { %5289 = vmatprep.subr.msk.bf16.mxu0 %vm852_vm0, %v6584_v35 }
 0x902   : > { %5038 = vmatpush3.bf16.xpose.msra.mxu0 %v2223_v36  ;;  %v6726_v36 = vld [vmem:[%s7429_s3 + $0x94] ss:$8 sps:$4 sm:$0xff]  }
 0x903   : > { %5290 = vmatprep.subr.msk.bf16.mxu0 %vm852_vm0, %v6598_v52 }
 0x90a   : > { %5040 = vmatpush3.bf16.xpose.msra.mxu0 %v2220_v60  ;;  %v6734_v60 = vld [vmem:[%s7429_s3 + $0x14] ss:$8 sps:$4 sm:$0xff]  }
 0x911   : > { %5042 = vmatmul.mubr.msk.bf16.vlgmr.msra.gmra.mxu0 %vm852_vm0, %v6512_v6 }
 0x991   : > { %v5019_v21 = vpop.f32.mrf.mxu0 }
 0x993   : > { %v5020_v57 = vpop.f32.mrf.mxu0 }
 0x994   : > { %v5021_v59 = vadd.f32 %v5020_v57, %v5019_v21  ;;  %v5465_v21 = vld [vmem:[%s7432_s6 + $0x94] ss:$8 sps:$4 sm:$0xff]  }
 0x995   : > { %v5022_v61 = vpop.f32.mrf.mxu0 }
 0x996   : > { %v2033_v22 = vpack.c.bf16 %v5021_v59, %v5021_v59 }
 0x997   : > { %v5023_v23 = vpop.f32.mrf.mxu0 }
 0x998   : > { %4690 = vmatmul.mubr.msk.bf16.vlgmr.msra.gmra.mxu1 %vm852_vm0, %v2033_v22 }
 0x999   : > { %5044 = vmatpush3.bf16.msra.mxu1 %v6638_v34 }
 0x99a   : > { %5045 = vmatprep.subr.bf16.mxu1 %v6643_v39 }
 0x99d   : > { %5046 = vmatpush3.bf16.msra.mxu1 %v6652_v44 }
 0x99e   : > { %5047 = vmatprep.subr.bf16.mxu1 %v6658_v38 }
 0x9a1   : > { %5048 = vmatpush3.bf16.msra.mxu1 %v6666_v48 }
 0x9d1   : > { %v2301_v3 = vpop.f32.mrf.mxu0 }
 0x9d3   : > { %v2303_v37 = vpop.f32.mrf.mxu0 }
 0x9d4   : > { %v2308_v9 = vmax.f32 %v2301_v3, %v2303_v37 }
 0x9d5   : > { %v2305_v51 = vpop.f32.mrf.mxu0 }
 0x9d6   : > { %2309 = vmax.xlane.f32.xlu0 %v2308_v9  ;;  %v5468_v9 = vld [vmem:[%s7432_s6 + $0x84] ss:$8 sps:$4 sm:$0xff]   ;;  %v5466_v51 = vld [vmem:[%s7432_s6 + $0x80] ss:$8 sps:$4 sm:$0xff]  }
 0x9d7   : > { %v2306_v10 = vpop.f32.mrf.mxu0 }
 0x9ec   : > { %2581 = vrot.lane.b32.xlu0 %v6503_v20, %s5708_s28 }
 0x9f0   : > { %2579 = vrot.lane.b32.xlu0 %v6521_v31, %s5708_s28 }
 0x9f4   : > { %2577 = vrot.lane.b32.xlu0 %v6535_v33, %s5708_s28 }
 0x9f8   : > { %2575 = vrot.lane.b32.xlu0 %v6549_v49, %s5708_s28 }
 0x9fc   : > { %2573 = vrot.lane.b32.xlu0 %v6563_v45, %s5708_s28 }
 0xa00   : > { %2571 = vrot.lane.b32.xlu0 %v6577_v7, %s5708_s28 }
 0xa04   : > { %2569 = vrot.lane.b32.xlu0 %v6591_v12, %s5708_s28 }
 0xa08   : > { %2567 = vrot.lane.b32.xlu0 %v6605_v53, %s5708_s28 }
 0xa0c   : > { %2565 = vrot.lane.b32.xlu0 %v6512_v6, %s5708_s28 }
 0xa10   : > { %2738 = vrot.lane.b32.xlu0 %v6633_v11, %s5708_s28 }
 0xa14   : > { %2736 = vrot.lane.b32.xlu0 %v6643_v39, %s5708_s28 }
 0xa18   : > { %2718 = vrot.lane.b32.xlu0 %v6666_v48, %s5708_s28 }
 0xa58   : > { %v2095_v55 = vpop.f32.mrf.mxu1 }
 0xa59   : > { %v6679_v13 = vadd.f32 %v2095_v55, %v6456_v50  ;;  %v6687_v50 = vld [vmem:[%s7429_s3 + $0xc4] ss:$8 sps:$4 sm:$0xff]  }
 0xa5a   : > { %v2097_v1 = vpop.f32.mrf.mxu1  ;;  %5049 = vmatprep.subr.bf16.mxu1 %v6687_v50 }
 0xa5b   : > { %v6682_v15 = vadd.f32 %v2097_v1, %v6459_v47  ;;  %v6692_v47 = vld [vmem:[%s7429_s3 + $0x44] ss:$8 sps:$4 sm:$0xff]  }
 0xa5c   : > { %v2099_v2 = vpop.f32.mrf.mxu1  ;;  %5050 = vmatpush3.bf16.msra.mxu1 %v6692_v47  ;;  %2716 = vrot.lane.b32.xlu0 %v6692_v47, %s5708_s28 }
 0xa5d   : > { %5051 = vmatprep.subr.bf16.mxu1 %v6699_v42 }
 0xa5e   : > { %v2100_v17 = vpop.f32.mrf.mxu1 }
 0xa5f   : > { %v2310_v19 = vpop.xlane.xlu0 %2309 }
 0xa60   : > { %v2311_v63 = vsub.f32 %v2301_v3, %v2310_v19  ;;  %v2312_v24 = vsub.f32 %v2303_v37, %v2310_v19  ;;  %5052 = vmatpush3.bf16.msra.mxu1 %v6704_v43  ;;  %2714 = vrot.lane.b32.xlu0 %v6704_v43, %s5708_s28  ;;  %v5463_v37 = vld [vmem:[%s7432_s6 + $0x90] ss:$8 sps:$4 sm:$0xff]  }
 0xa61   : > { %5053 = vmatprep.subr.bf16.mxu1 %v6711_v4 }
 0xa62   : > { %v2313_v25 = vmul.f32 1.442695, %v2311_v63  ;;  %v2315_v26 = vmul.f32 1.442695, %v2312_v24 }
 0xa63   : > { %v2582_v55 = vpop.permute.xlu0 %2581 }
 0xa64   : > { %5655 = vpow2.f32 %v2313_v25  ;;  %5054 = vmatpush3.bf16.msra.mxu1 %v6718_v29  ;;  %2712 = vrot.lane.b32.xlu0 %v6718_v29, %s5708_s28 }
 0xa65   : > { %5657 = vpow2.f32 %v2315_v26  ;;  %5055 = vmatprep.subr.bf16.mxu1 %v6726_v36 }
 0xa67   : > { %v2580_v1 = vpop.permute.xlu0 %2579 }
 0xa68   : > { %5056 = vmatpush3.bf16.msra.mxu1 %v6734_v60  ;;  %2710 = vrot.lane.b32.xlu0 %v6734_v60, %s5708_s28 }
 0xa69   : > { %5057 = vmatprep.subr.bf16.mxu1 %v6742_v54 }
 0xa6b   : > { %v2578_v2 = vpop.permute.xlu0 %2577 }
 0xa6c   : > { %5058 = vmatpush3.bf16.msra.mxu1 %v6750_v8 }
 0xa6d   : > { %2533 = vmatprep.subr.bf16.mxu1 %v5465_v21  ;;  %v2624_v21 = vsel %vm852_vm0, %v2582_v55, 0 }
 0xa6f   : > { %v2576_v17 = vpop.permute.xlu0 %2575 }
 0xa71   : > { %v5656_v27 = vpop.eup %5655 }
 0xa72   : > { %v5658_v28 = vpop.eup %5657 }
 0xa73   : > { %v2317_v32 = vadd.f32 %v5658_v28, %v5656_v27  ;;  %v2574_v19 = vpop.permute.xlu0 %2573 }
 0xa74   : > { %v2612_v55 = vsel %vm852_vm0, %v2574_v19, 0 }
 0xa75   : > { %2318 = vadd.xlane.f32.xlu1 %v2317_v32 }
 0xa77   : > { %v2572_v63 = vpop.permute.xlu0 %2571 }
 0xa7b   : > { %v2570_v24 = vpop.permute.xlu0 %2569 }
 0xa7f   : > { %v2568_v26 = vpop.permute.xlu0 %2567 }
 0xa86   : > { %2597 = vrot.lane.b32.xlu1 %v6488_v58, %s5708_s28 }
 0xa8a   : > { %2595 = vrot.lane.b32.xlu1 %v6510_v30, %s5708_s28 }
 0xa8e   : > { %2593 = vrot.lane.b32.xlu1 %v6528_v40, %s5708_s28 }
 0xa92   : > { %2591 = vrot.lane.b32.xlu1 %v6542_v46, %s5708_s28 }
 0xa96   : > { %2589 = vrot.lane.b32.xlu1 %v6556_v41, %s5708_s28 }
 0xa9a   : > { %2587 = vrot.lane.b32.xlu1 %v6570_v5, %s5708_s28 }
 0xa9e   : > { %2585 = vrot.lane.b32.xlu1 %v6584_v35, %s5708_s28 }
 0xaa2   : > { %2583 = vrot.lane.b32.xlu1 %v6598_v52, %s5708_s28 }
 0xafe   : > { %v2319_v57 = vpop.xlane.xlu1 %2318 }
 0xaff   : > { %5659 = vrcp.f32 %v2319_v57 }
 0xb02   : > { %v2598_v10 = vpop.permute.xlu1 %2597 }
 0xb0c   : > { %v5660_v59 = vpop.eup %5659 }
 0xb0d   : > { %v2322_v61 = vmul.f32 %v5660_v59, %v5658_v28  ;;  %v2321_v22 = vmul.f32 %v5660_v59, %v5656_v27 }
 0xb0f   : > { %v2324_v23 = vpack.c.bf16 %v2322_v61, %v2322_v61  ;;  %v2323_v3 = vpack.c.bf16 %v2321_v22, %v2321_v22  ;;  %v2596_v61 = vpop.permute.xlu1 %2595  ;;  %v2566_v22 = vpop.permute.xlu0 %2565 }
 0xb11   : > { %2485 = vmatprep.mubr.bf16.mxu1 %v2324_v23  ;;  %v2621_v23 = vsel %vm852_vm0, %v2580_v1, 0  ;;  %v2609_v1 = vsel %vm852_vm0, %v2572_v63, 0 }
 0xb12   : > { %2486 = vmatmul.mubr.bf16.vlgmr.msra.gmra.mxu1 %v2323_v3 }
 0xb13   : > { %2534 = vmatpush1.bf16.msra.mxu1 %v5463_v37  ;;  %2553 = vmatprep.mubr.bf16.mxu1 %v5710_v18  ;;  %v2594_v3 = vpop.permute.xlu1 %2593  ;;  %v2618_v37 = vsel %vm852_vm0, %v2578_v2, 0  ;;  %v2606_v2 = vsel %vm852_vm0, %v2570_v24, 0 }
 0xb14   : > { %2535 = vmatprep.subr.bf16.mxu1 %v5468_v9 }
 0xb17   : > { %2536 = vmatpush1.bf16.msra.mxu1 %v5466_v51  ;;  %v2592_v9 = vpop.permute.xlu1 %2591  ;;  %v2615_v51 = vsel %vm852_vm0, %v2576_v17, 0  ;;  %v2603_v17 = vsel %vm852_vm0, %v2568_v26, 0 }
 0xb18   : > { %5291 = vmatprep.subr.msk.bf16.mxu1 %vm852_vm0, %v2598_v10 }
 0xb1b   : > { %v2590_v10 = vpop.permute.xlu1 %2589 }
 0xbd2   : > { %v5059_v25 = vpop.f32.mrf.mxu1 }
 0xbd4   : > { %v5060_v27 = vpop.f32.mrf.mxu1 }
 0xbd5   : > { %v5061_v28 = vadd.f32 %v5060_v27, %v5059_v25  ;;  %v2588_v25 = vpop.permute.xlu1 %2587 }
 0xbd6   : > { %v5062_v32 = vpop.f32.mrf.mxu1 }
 0xbd7   : > { %v2493_v57 = vpack.c.bf16 %v5061_v28, %v5061_v28 }
 0xbd8   : > { %v5063_v59 = vpop.f32.mrf.mxu1 }
 0xbd9   : > { %4728 = vmatmul.mubr.msk.bf16.vlgmr.msra.gmra.mxu1 %vm852_vm0, %v2493_v57  ;;  %v2586_v27 = vpop.permute.xlu1 %2585 }
 0xbda   : > { %5066 = vmatpush3.bf16.xpose.msra.mxu1 %v2624_v21  ;;  %5081 = vmatprep.mubr.msk.bf16.mxu1 %vm852_vm0, %v2566_v22 }
 0xbdb   : > { %5292 = vmatprep.subr.msk.bf16.mxu1 %vm852_vm0, %v2596_v61 }
 0xbdd   : > { %v2584_v28 = vpop.permute.xlu1 %2583 }
 0xbe2   : > { %5068 = vmatpush3.bf16.xpose.msra.mxu1 %v2621_v23 }
 0xbe3   : > { %5293 = vmatprep.subr.msk.bf16.mxu1 %vm852_vm0, %v2594_v3 }
 0xbea   : > { %5070 = vmatpush3.bf16.xpose.msra.mxu1 %v2618_v37 }
 0xbeb   : > { %5294 = vmatprep.subr.msk.bf16.mxu1 %vm852_vm0, %v2592_v9 }
 0xbf2   : > { %5072 = vmatpush3.bf16.xpose.msra.mxu1 %v2615_v51 }
 0xbf3   : > { %5295 = vmatprep.subr.msk.bf16.mxu1 %vm852_vm0, %v2590_v10 }
 0xbfa   : > { %5074 = vmatpush3.bf16.xpose.msra.mxu1 %v2612_v55 }
 0xbfb   : > { %5296 = vmatprep.subr.msk.bf16.mxu1 %vm852_vm0, %v2588_v25 }
 0xc02   : > { %5076 = vmatpush3.bf16.xpose.msra.mxu1 %v2609_v1 }
 0xc03   : > { %5297 = vmatprep.subr.msk.bf16.mxu1 %vm852_vm0, %v2586_v27 }
 0xc0a   : > { %5078 = vmatpush3.bf16.xpose.msra.mxu1 %v2606_v2 }
 0xc0b   : > { %5298 = vmatprep.subr.msk.bf16.mxu1 %vm852_vm0, %v2584_v28 }
 0xc12   : > { %5080 = vmatpush3.bf16.xpose.msra.mxu1 %v2603_v17 }
 0xc19   : > { %5082 = vmatmul.mubr.msk.bf16.vlgmr.msra.gmra.mxu1 %vm852_vm0, %v2566_v22 }
 0xc99   : > { %v2555_v19 = vpop.f32.mrf.mxu1 }
 0xc9a   : > { %v6801_v32 = vadd.f32 %v2555_v19, %v6679_v13  ;;  %v2739_v13 = vpop.permute.xlu0 %2738 }
 0xc9b   : > { %v2557_v63 = vpop.f32.mrf.mxu1  ;;  %5083 = vmatprep.subr.bf16.mxu0 %v2739_v13 }
 0xc9c   : > { %v6804_v21 = vadd.f32 %v2557_v63, %v6682_v15 }
 0xc9d   : > { %v2559_v57 = vpop.f32.mrf.mxu1 }
 0xc9e   : > { %v2737_v15 = vpop.permute.xlu0 %2736 }
 0xc9f   : > { %v2560_v59 = vpop.f32.mrf.mxu1 }
 0xca2   : > { %v2719_v55 = vpop.permute.xlu0 %2718 }
 0xca6   : > { %v2717_v27 = vpop.permute.xlu0 %2716 }
 0xcaa   : > { %v2715_v28 = vpop.permute.xlu0 %2714 }
 0xcd9   : > { %v2684_v24 = vpop.f32.mrf.mxu1 }
 0xcdb   : > { %v2686_v61 = vpop.f32.mrf.mxu1 }
 0xcdc   : > { %v2691_v23 = vmax.f32 %v2684_v24, %v2686_v61 }
 0xcdd   : > { %v2688_v3 = vpop.f32.mrf.mxu1 }
 0xcde   : > { %2692 = vmax.xlane.f32.xlu1 %v2691_v23 }
 0xcdf   : > { %v2689_v37 = vpop.f32.mrf.mxu1 }
 0xcef   : > { %2722 = vrot.lane.b32.xlu1 %v6638_v34, %s5708_s28 }
 0xcf3   : > { %2720 = vrot.lane.b32.xlu1 %v6652_v44, %s5708_s28 }
 0xcf7   : > { %2734 = vrot.lane.b32.xlu1 %v6658_v38, %s5708_s28 }
 0xcfb   : > { %2732 = vrot.lane.b32.xlu1 %v6687_v50, %s5708_s28 }
 0xcff   : > { %2730 = vrot.lane.b32.xlu1 %v6699_v42, %s5708_s28 }
 0xd03   : > { %2728 = vrot.lane.b32.xlu1 %v6711_v4, %s5708_s28 }
 0xd07   : > { %2726 = vrot.lane.b32.xlu1 %v6726_v36, %s5708_s28 }
 0xd0b   : > { %2724 = vrot.lane.b32.xlu1 %v6742_v54, %s5708_s28 }
 0xd0f   : > { %2883 = vrot.lane.b32.xlu1 %v6503_v20, %s5709_s24 }
 0xd13   : > { %2881 = vrot.lane.b32.xlu1 %v6521_v31, %s5709_s24 }
 0xd17   : > { %2879 = vrot.lane.b32.xlu1 %v6535_v33, %s5709_s24 }
 0xd1b   : > { %2877 = vrot.lane.b32.xlu1 %v6549_v49, %s5709_s24 }
 0xd1f   : > { %2875 = vrot.lane.b32.xlu1 %v6563_v45, %s5709_s24 }
 0xd23   : > { %2873 = vrot.lane.b32.xlu1 %v6577_v7, %s5709_s24 }
 0xd27   : > { %2871 = vrot.lane.b32.xlu1 %v6591_v12, %s5709_s24 }
 0xd2b   : > { %2869 = vrot.lane.b32.xlu1 %v6605_v53, %s5709_s24 }
 0xd2f   : > { %2867 = vrot.lane.b32.xlu1 %v6512_v6, %s5709_s24 }
 0xd33   : > { %3040 = vrot.lane.b32.xlu1 %v6633_v11, %s5709_s24 }
 0xd37   : > { %3038 = vrot.lane.b32.xlu1 %v6643_v39, %s5709_s24 }
 0xd3b   : > { %3020 = vrot.lane.b32.xlu1 %v6666_v48, %s5709_s24 }
 0xd3f   : > { %3018 = vrot.lane.b32.xlu1 %v6692_v47, %s5709_s24 }
 0xd43   : > { %3016 = vrot.lane.b32.xlu1 %v6704_v43, %s5709_s24 }
 0xd47   : > { %3014 = vrot.lane.b32.xlu1 %v6718_v29, %s5709_s24 }
 0xd4b   : > { %3012 = vrot.lane.b32.xlu1 %v6734_v60, %s5709_s24 }
 0xd67   : > { %v2693_v26 = vpop.xlane.xlu1 %2692 }
 0xd68   : > { %v2694_v22 = vsub.f32 %v2684_v24, %v2693_v26  ;;  %v2695_v9 = vsub.f32 %v2686_v61, %v2693_v26  ;;  %v2713_v24 = vpop.permute.xlu0 %2712 }
 0xd6a   : > { %v2696_v51 = vmul.f32 1.442695, %v2694_v22  ;;  %v2698_v10 = vmul.f32 1.442695, %v2695_v9 }
 0xd6b   : > { %v2723_v25 = vpop.permute.xlu1 %2722 }
 0xd6c   : > { %5661 = vpow2.f32 %v2696_v51  ;;  %5084 = vmatpush3.bf16.msra.mxu0 %v2723_v25  ;;  %v2711_v23 = vpop.permute.xlu0 %2710  ;;  %v5469_v25 = vld [vmem:[%s7432_s6 + $0xb0] ss:$8 sps:$4 sm:$0xff]  }
 0xd6d   : > { %5663 = vpow2.f32 %v2698_v10  ;;  %5085 = vmatprep.subr.bf16.mxu0 %v2737_v15  ;;  %v5471_v15 = vld [vmem:[%s7432_s6 + $0xb4] ss:$8 sps:$4 sm:$0xff]  }
 0xd6f   : > { %v2721_v1 = vpop.permute.xlu1 %2720 }
 0xd70   : > { %5086 = vmatpush3.bf16.msra.mxu0 %v2721_v1  ;;  %v5474_v1 = vld [vmem:[%s7432_s6 + $0xa4] ss:$8 sps:$4 sm:$0xff]  }
 0xd73   : > { %v2735_v2 = vpop.permute.xlu1 %2734 }
 0xd74   : > { %5087 = vmatprep.subr.bf16.mxu0 %v2735_v2 }
 0xd75   : > { %5088 = vmatpush3.bf16.msra.mxu0 %v2719_v55 }
 0xd77   : > { %v2733_v17 = vpop.permute.xlu1 %2732 }
 0xd78   : > { %5089 = vmatprep.subr.bf16.mxu0 %v2733_v17 }
 0xd79   : > { %v5662_v19 = vpop.eup %5661  ;;  %5090 = vmatpush3.bf16.msra.mxu0 %v2717_v27  ;;  %v5472_v27 = vld [vmem:[%s7432_s6 + $0xa0] ss:$8 sps:$4 sm:$0xff]  }
 0xd7a   : > { %v5664_v63 = vpop.eup %5663 }
 0xd7b   : > { %v2731_v57 = vpop.permute.xlu1 %2730  ;;  %v2700_v59 = vadd.f32 %v5664_v63, %v5662_v19 }
 0xd7c   : > { %5091 = vmatprep.subr.bf16.mxu0 %v2731_v57 }
 0xd7d   : > { %2701 = vadd.xlane.f32.xlu0 %v2700_v59  ;;  %5092 = vmatpush3.bf16.msra.mxu0 %v2715_v28 }
 0xd7f   : > { %v2729_v61 = vpop.permute.xlu1 %2728 }
 0xd80   : > { %5093 = vmatprep.subr.bf16.mxu0 %v2729_v61 }
 0xd81   : > { %5094 = vmatpush3.bf16.msra.mxu0 %v2713_v24 }
 0xd83   : > { %v2727_v3 = vpop.permute.xlu1 %2726 }
 0xd84   : > { %5095 = vmatprep.subr.bf16.mxu0 %v2727_v3 }
 0xd85   : > { %5096 = vmatpush3.bf16.msra.mxu0 %v2711_v23 }
 0xd87   : > { %v2725_v37 = vpop.permute.xlu1 %2724 }
 0xd88   : > { %5097 = vmatprep.subr.bf16.mxu0 %v2725_v37 }
 0xd8b   : > { %v2884_v28 = vpop.permute.xlu1 %2883 }
 0xd8f   : > { %v2882_v17 = vpop.permute.xlu1 %2881 }
 0xd93   : > { %2708 = vrot.lane.b32.xlu0 %v6750_v8, %s5708_s28 }
 0xd97   : > { %2899 = vrot.lane.b32.xlu0 %v6488_v58, %s5709_s24 }
 0xd9b   : > { %2897 = vrot.lane.b32.xlu0 %v6510_v30, %s5709_s24 }
 0xd9f   : > { %2895 = vrot.lane.b32.xlu0 %v6528_v40, %s5709_s24 }
 0xda3   : > { %2893 = vrot.lane.b32.xlu0 %v6542_v46, %s5709_s24 }
 0xda7   : > { %2891 = vrot.lane.b32.xlu0 %v6556_v41, %s5709_s24 }
 0xdab   : > { %2889 = vrot.lane.b32.xlu0 %v6570_v5, %s5709_s24 }
 0xdaf   : > { %2887 = vrot.lane.b32.xlu0 %v6584_v35, %s5709_s24 }
 0xdb3   : > { %2885 = vrot.lane.b32.xlu0 %v6598_v52, %s5709_s24 }
 0xe06   : > { %v2702_v13 = vpop.xlane.xlu0 %2701 }
 0xe07   : > { %5665 = vrcp.f32 %v2702_v13 }
 0xe0a   : > { %v2709_v26 = vpop.permute.xlu0 %2708 }
 0xe0b   : > { %5098 = vmatpush3.bf16.msra.mxu0 %v2709_v26 }
 0xe0c   : > { %2836 = vmatprep.subr.bf16.mxu0 %v5471_v15  ;;  %v2926_v15 = vsel %vm852_vm0, %v2884_v28, 0 }
 0xe0e   : > { %v2900_v2 = vpop.permute.xlu0 %2899 }
 0xe14   : > { %v5666_v22 = vpop.eup %5665 }
 0xe15   : > { %v2705_v9 = vmul.f32 %v5666_v22, %v5664_v63  ;;  %v2704_v51 = vmul.f32 %v5666_v22, %v5662_v19  ;;  %v2880_v19 = vpop.permute.xlu1 %2879 }
 0xe17   : > { %v2707_v10 = vpack.c.bf16 %v2705_v9, %v2705_v9  ;;  %v2706_v55 = vpack.c.bf16 %v2704_v51, %v2704_v51  ;;  %v2898_v9 = vpop.permute.xlu0 %2897 }
 0xe19   : > { %2788 = vmatprep.mubr.bf16.mxu0 %v2707_v10  ;;  %v2878_v63 = vpop.permute.xlu1 %2877  ;;  %v2923_v10 = vsel %vm852_vm0, %v2882_v17, 0 }
 0xe1a   : > { %2789 = vmatmul.mubr.bf16.vlgmr.msra.gmra.mxu0 %v2706_v55 }
 0xe1b   : > { %2837 = vmatpush1.bf16.msra.mxu0 %v5469_v25  ;;  %2856 = vmatprep.mubr.bf16.mxu0 %v5710_v18  ;;  %v2896_v55 = vpop.permute.xlu0 %2895  ;;  %v2920_v25 = vsel %vm852_vm0, %v2880_v19, 0 }
 0xe1c   : > { %2838 = vmatprep.subr.bf16.mxu0 %v5474_v1 }
 0xe1d   : > { %v2876_v57 = vpop.permute.xlu1 %2875 }
 0xe1e   : > { %v2914_v28 = vsel %vm852_vm0, %v2876_v57, 0 }
 0xe1f   : > { %2839 = vmatpush1.bf16.msra.mxu0 %v5472_v27  ;;  %v2894_v1 = vpop.permute.xlu0 %2893  ;;  %v2917_v27 = vsel %vm852_vm0, %v2878_v63, 0 }
 0xe20   : > { %5299 = vmatprep.subr.msk.bf16.mxu0 %vm852_vm0, %v2900_v2 }
 0xe21   : > { %v2874_v59 = vpop.permute.xlu1 %2873 }
 0xe22   : > { %v2911_v17 = vsel %vm852_vm0, %v2874_v59, 0 }
 0xe23   : > { %v2892_v2 = vpop.permute.xlu0 %2891 }
 0xe25   : > { %v2872_v24 = vpop.permute.xlu1 %2871 }
 0xe26   : > { %v2908_v19 = vsel %vm852_vm0, %v2872_v24, 0 }
 0xe29   : > { %v2870_v23 = vpop.permute.xlu1 %2869 }
 0xe2a   : > { %v2905_v63 = vsel %vm852_vm0, %v2870_v23, 0 }
 0xe2d   : > { %v2868_v51 = vpop.permute.xlu1 %2867 }
 0xeda   : > { %v5099_v61 = vpop.f32.mrf.mxu0 }
 0xedc   : > { %v5100_v3 = vpop.f32.mrf.mxu0 }
 0xedd   : > { %v5101_v37 = vadd.f32 %v5100_v3, %v5099_v61  ;;  %v2890_v61 = vpop.permute.xlu0 %2889 }
 0xede   : > { %v5102_v13 = vpop.f32.mrf.mxu0 }
 0xedf   : > { %v2796_v26 = vpack.c.bf16 %v5101_v37, %v5101_v37 }
 0xee0   : > { %v5103_v22 = vpop.f32.mrf.mxu0 }
 0xee1   : > { %4734 = vmatmul.mubr.msk.bf16.vlgmr.msra.gmra.mxu0 %vm852_vm0, %v2796_v26  ;;  %v2888_v3 = vpop.permute.xlu0 %2887 }
 0xee2   : > { %5106 = vmatpush3.bf16.xpose.msra.mxu0 %v2926_v15  ;;  %5121 = vmatprep.mubr.msk.bf16.mxu0 %vm852_vm0, %v2868_v51 }
 0xee3   : > { %5300 = vmatprep.subr.msk.bf16.mxu0 %vm852_vm0, %v2898_v9 }
 0xee5   : > { %v2886_v37 = vpop.permute.xlu0 %2885 }
 0xeea   : > { %5108 = vmatpush3.bf16.xpose.msra.mxu0 %v2923_v10 }
 0xeeb   : > { %5301 = vmatprep.subr.msk.bf16.mxu0 %vm852_vm0, %v2896_v55 }
 0xef2   : > { %5110 = vmatpush3.bf16.xpose.msra.mxu0 %v2920_v25 }
 0xef3   : > { %5302 = vmatprep.subr.msk.bf16.mxu0 %vm852_vm0, %v2894_v1 }
 0xefa   : > { %5112 = vmatpush3.bf16.xpose.msra.mxu0 %v2917_v27 }
 0xefb   : > { %5303 = vmatprep.subr.msk.bf16.mxu0 %vm852_vm0, %v2892_v2 }
 0xf02   : > { %5114 = vmatpush3.bf16.xpose.msra.mxu0 %v2914_v28 }
 0xf03   : > { %5304 = vmatprep.subr.msk.bf16.mxu0 %vm852_vm0, %v2890_v61 }
 0xf0a   : > { %5116 = vmatpush3.bf16.xpose.msra.mxu0 %v2911_v17  ;;  %v5478_v17 = vld [vmem:[%s7432_s6 + $0xc0] ss:$8 sps:$4 sm:$0xff]  }
 0xf0b   : > { %5305 = vmatprep.subr.msk.bf16.mxu0 %vm852_vm0, %v2888_v3 }
 0xf12   : > { %5118 = vmatpush3.bf16.xpose.msra.mxu0 %v2908_v19 }
 0xf13   : > { %5306 = vmatprep.subr.msk.bf16.mxu0 %vm852_vm0, %v2886_v37 }
 0xf1a   : > { %5120 = vmatpush3.bf16.xpose.msra.mxu0 %v2905_v63 }
 0xf21   : > { %5122 = vmatmul.mubr.msk.bf16.vlgmr.msra.gmra.mxu0 %vm852_vm0, %v2868_v51 }
 0xfa1   : > { %v2858_v57 = vpop.f32.mrf.mxu0 }
 0xfa2   : > { %v6905_v13 = vadd.f32 %v2858_v57, %v6801_v32  ;;  %v3041_v32 = vpop.permute.xlu1 %3040 }
 0xfa3   : > { %v2860_v59 = vpop.f32.mrf.mxu0  ;;  %5123 = vmatprep.subr.bf16.mxu1 %v3041_v32 }
 0xfa4   : > { %v6908_v15 = vadd.f32 %v2860_v59, %v6804_v21 }
 0xfa5   : > { %v2862_v26 = vpop.f32.mrf.mxu0 }
 0xfa7   : > { %v2863_v22 = vpop.f32.mrf.mxu0 }
 0xfe1   : > { %v2986_v24 = vpop.f32.mrf.mxu0 }
 0xfe3   : > { %v2988_v9 = vpop.f32.mrf.mxu0 }
 0xfe4   : > { %v2993_v10 = vmax.f32 %v2986_v24, %v2988_v9 }
 0xfe5   : > { %v2990_v55 = vpop.f32.mrf.mxu0 }
 0xfe6   : > { %2994 = vmax.xlane.f32.xlu0 %v2993_v10 }
 0xfe7   : > { %v2991_v25 = vpop.f32.mrf.mxu0 }
 0xffc   : > { %3024 = vrot.lane.b32.xlu0 %v6638_v34, %s5709_s24 }
0x1000   : > { %3022 = vrot.lane.b32.xlu0 %v6652_v44, %s5709_s24 }
0x1004   : > { %3036 = vrot.lane.b32.xlu0 %v6658_v38, %s5709_s24 }
0x1008   : > { %3034 = vrot.lane.b32.xlu0 %v6687_v50, %s5709_s24 }
0x100c   : > { %3032 = vrot.lane.b32.xlu0 %v6699_v42, %s5709_s24 }
0x1010   : > { %3030 = vrot.lane.b32.xlu0 %v6711_v4, %s5709_s24 }
0x1014   : > { %3028 = vrot.lane.b32.xlu0 %v6726_v36, %s5709_s24 }
0x1018   : > { %3026 = vrot.lane.b32.xlu0 %v6742_v54, %s5709_s24 }
0x101c   : > { %3185 = vrot.lane.b32.xlu0 %v6503_v20, %s5711_s16  ;;  %v3039_v20 = vpop.permute.xlu1 %3038 }
0x1020   : > { %3183 = vrot.lane.b32.xlu0 %v6521_v31, %s5711_s16 }
0x1024   : > { %3181 = vrot.lane.b32.xlu0 %v6535_v33, %s5711_s16 }
0x1028   : > { %3179 = vrot.lane.b32.xlu0 %v6549_v49, %s5711_s16 }
0x102c   : > { %3177 = vrot.lane.b32.xlu0 %v6563_v45, %s5711_s16 }
0x1030   : > { %3175 = vrot.lane.b32.xlu0 %v6577_v7, %s5711_s16  ;;  %v3021_v7 = vpop.permute.xlu1 %3020 }
0x1034   : > { %3173 = vrot.lane.b32.xlu0 %v6591_v12, %s5711_s16 }
0x1038   : > { %3171 = vrot.lane.b32.xlu0 %v6605_v53, %s5711_s16 }
0x103c   : > { %3169 = vrot.lane.b32.xlu0 %v6512_v6, %s5711_s16 }
0x1040   : > { %3342 = vrot.lane.b32.xlu0 %v6633_v11, %s5711_s16  ;;  %v3019_v11 = vpop.permute.xlu1 %3018 }
0x1044   : > { %3340 = vrot.lane.b32.xlu0 %v6643_v39, %s5711_s16 }
0x1048   : > { %3322 = vrot.lane.b32.xlu0 %v6666_v48, %s5711_s16  ;;  %v3017_v48 = vpop.permute.xlu1 %3016 }
0x104c   : > { %3320 = vrot.lane.b32.xlu0 %v6692_v47, %s5711_s16  ;;  %v3015_v23 = vpop.permute.xlu1 %3014 }
0x1050   : > { %3318 = vrot.lane.b32.xlu0 %v6704_v43, %s5711_s16  ;;  %v3013_v1 = vpop.permute.xlu1 %3012 }
0x1054   : > { %3316 = vrot.lane.b32.xlu0 %v6718_v29, %s5711_s16 }
0x1058   : > { %3314 = vrot.lane.b32.xlu0 %v6734_v60, %s5711_s16 }
0x106f   : > { %v2995_v6 = vpop.xlane.xlu0 %2994 }
0x1070   : > { %v2996_v31 = vsub.f32 %v2986_v24, %v2995_v6  ;;  %v2997_v33 = vsub.f32 %v2988_v9, %v2995_v6 }
0x1072   : > { %v2998_v49 = vmul.f32 1.442695, %v2996_v31  ;;  %v3000_v45 = vmul.f32 1.442695, %v2997_v33 }
0x1073   : > { %v3025_v12 = vpop.permute.xlu0 %3024 }
0x1074   : > { %5667 = vpow2.f32 %v2998_v49  ;;  %5124 = vmatpush3.bf16.msra.mxu1 %v3025_v12 }
0x1075   : > { %5669 = vpow2.f32 %v3000_v45  ;;  %5125 = vmatprep.subr.bf16.mxu1 %v3039_v20 }
0x1077   : > { %v3023_v53 = vpop.permute.xlu0 %3022 }
0x1078   : > { %5126 = vmatpush3.bf16.msra.mxu1 %v3023_v53 }
0x107b   : > { %v3037_v39 = vpop.permute.xlu0 %3036 }
0x107c   : > { %5127 = vmatprep.subr.bf16.mxu1 %v3037_v39 }
0x107d   : > { %5128 = vmatpush3.bf16.msra.mxu1 %v3021_v7 }
0x107f   : > { %v3035_v47 = vpop.permute.xlu0 %3034 }
0x1080   : > { %5129 = vmatprep.subr.bf16.mxu1 %v3035_v47 }
0x1081   : > { %v5668_v43 = vpop.eup %5667  ;;  %5130 = vmatpush3.bf16.msra.mxu1 %v3019_v11 }
0x1082   : > { %v5670_v29 = vpop.eup %5669 }
0x1083   : > { %v3033_v60 = vpop.permute.xlu0 %3032  ;;  %v3002_v21 = vadd.f32 %v5670_v29, %v5668_v43 }
0x1084   : > { %5131 = vmatprep.subr.bf16.mxu1 %v3033_v60 }
0x1085   : > { %3003 = vadd.xlane.f32.xlu1 %v3002_v21  ;;  %5132 = vmatpush3.bf16.msra.mxu1 %v3017_v48 }
0x1087   : > { %v3031_v51 = vpop.permute.xlu0 %3030 }
0x1088   : > { %5133 = vmatprep.subr.bf16.mxu1 %v3031_v51 }
0x1089   : > { %5134 = vmatpush3.bf16.msra.mxu1 %v3015_v23 }
0x108b   : > { %v3029_v27 = vpop.permute.xlu0 %3028 }
0x108c   : > { %5135 = vmatprep.subr.bf16.mxu1 %v3029_v27 }
0x108d   : > { %5136 = vmatpush3.bf16.msra.mxu1 %v3013_v1 }
0x108f   : > { %v3027_v2 = vpop.permute.xlu0 %3026 }
0x1090   : > { %5137 = vmatprep.subr.bf16.mxu1 %v3027_v2 }
0x1093   : > { %v3186_v19 = vpop.permute.xlu0 %3185 }
0x1094   : > { %v3228_v32 = vsel %vm852_vm0, %v3186_v19, 0 }
0x1096   : > { %3010 = vrot.lane.b32.xlu1 %v6750_v8, %s5709_s24 }
0x1097   : > { %v3184_v37 = vpop.permute.xlu0 %3183 }
0x1098   : > { %v3225_v49 = vsel %vm852_vm0, %v3184_v37, 0 }
0x109a   : > { %3201 = vrot.lane.b32.xlu1 %v6488_v58, %s5711_s16 }
0x109b   : > { %v3182_v63 = vpop.permute.xlu0 %3181 }
0x109c   : > { %v3222_v7 = vsel %vm852_vm0, %v3182_v63, 0 }
0x109e   : > { %3199 = vrot.lane.b32.xlu1 %v6510_v30, %s5711_s16  ;;  %v5477_v30 = vld [vmem:[%s7432_s6 + $0xd4] ss:$8 sps:$4 sm:$0xff]  }
0x109f   : > { %v3180_v57 = vpop.permute.xlu0 %3179 }
0x10a0   : > { %v3219_v53 = vsel %vm852_vm0, %v3180_v57, 0 }
0x10a2   : > { %3197 = vrot.lane.b32.xlu1 %v6528_v40, %s5711_s16 }
0x10a3   : > { %v3178_v59 = vpop.permute.xlu0 %3177 }
0x10a4   : > { %v3216_v39 = vsel %vm852_vm0, %v3178_v59, 0 }
0x10a6   : > { %3195 = vrot.lane.b32.xlu1 %v6542_v46, %s5711_s16 }
0x10a7   : > { %v3176_v26 = vpop.permute.xlu0 %3175 }
0x10a8   : > { %v3213_v47 = vsel %vm852_vm0, %v3176_v26, 0 }
0x10aa   : > { %3193 = vrot.lane.b32.xlu1 %v6556_v41, %s5711_s16 }
0x10ab   : > { %v3174_v22 = vpop.permute.xlu0 %3173 }
0x10ae   : > { %3191 = vrot.lane.b32.xlu1 %v6570_v5, %s5711_s16 }
0x10af   : > { %v3172_v9 = vpop.permute.xlu0 %3171 }
0x10b0   : > { %v3207_v21 = vsel %vm852_vm0, %v3172_v9, 0  ;;  %v5483_v9 = vld [vmem:[%s7432_s6 + $0xf4] ss:$8 sps:$4 sm:$0xff]  }
0x10b2   : > { %3189 = vrot.lane.b32.xlu1 %v6584_v35, %s5711_s16  ;;  %v5475_v35 = vld [vmem:[%s7432_s6 + $0xd0] ss:$8 sps:$4 sm:$0xff]  }
0x10b3   : > { %v3170_v33 = vpop.permute.xlu0 %3169 }
0x10b6   : > { %3187 = vrot.lane.b32.xlu1 %v6598_v52, %s5711_s16  ;;  %v5480_v52 = vld [vmem:[%s7432_s6 + $0xc4] ss:$8 sps:$4 sm:$0xff]  }
0x110e   : > { %v3004_v58 = vpop.xlane.xlu1 %3003 }
0x110f   : > { %5671 = vrcp.f32 %v3004_v58 }
0x1112   : > { %v3011_v40 = vpop.permute.xlu1 %3010 }
0x1113   : > { %5138 = vmatpush3.bf16.msra.mxu1 %v3011_v40 }
0x1114   : > { %3138 = vmatprep.subr.bf16.mxu1 %v5477_v30 }
0x1116   : > { %v3202_v3 = vpop.permute.xlu1 %3201 }
0x111a   : > { %v3200_v31 = vpop.permute.xlu1 %3199 }
0x111c   : > { %v5672_v46 = vpop.eup %5671 }
0x111d   : > { %v3007_v41 = vmul.f32 %v5672_v46, %v5670_v29  ;;  %v3006_v28 = vmul.f32 %v5672_v46, %v5668_v43  ;;  %v3210_v29 = vsel %vm852_vm0, %v3174_v22, 0 }
0x111e   : > { %v3198_v45 = vpop.permute.xlu1 %3197 }
0x111f   : > { %v3009_v61 = vpack.c.bf16 %v3007_v41, %v3007_v41  ;;  %v3008_v5 = vpack.c.bf16 %v3006_v28, %v3006_v28 }
0x1121   : > { %3090 = vmatprep.mubr.bf16.mxu1 %v3009_v61 }
0x1122   : > { %3091 = vmatmul.mubr.bf16.vlgmr.msra.gmra.mxu1 %v3008_v5  ;;  %v3196_v12 = vpop.permute.xlu1 %3195 }
0x1123   : > { %3139 = vmatpush1.bf16.msra.mxu1 %v5475_v35  ;;  %3158 = vmatprep.mubr.bf16.mxu1 %v5710_v18 }
0x1124   : > { %3140 = vmatprep.subr.bf16.mxu1 %v5480_v52 }
0x1126   : > { %v3194_v11 = vpop.permute.xlu1 %3193 }
0x1127   : > { %3141 = vmatpush1.bf16.msra.mxu1 %v5478_v17 }
0x1128   : > { %5307 = vmatprep.subr.msk.bf16.mxu1 %vm852_vm0, %v3202_v3 }
0x112a   : > { %v3192_v48 = vpop.permute.xlu1 %3191 }
0x112e   : > { %v3190_v43 = vpop.permute.xlu1 %3189 }
0x1132   : > { %v3188_v60 = vpop.permute.xlu1 %3187 }
0x11e2   : > { %v5139_v24 = vpop.f32.mrf.mxu1 }
0x11e4   : > { %v5140_v10 = vpop.f32.mrf.mxu1 }
0x11e5   : > { %v5141_v55 = vadd.f32 %v5140_v10, %v5139_v24 }
0x11e6   : > { %v5142_v25 = vpop.f32.mrf.mxu1 }
0x11e7   : > { %v3098_v20 = vpack.c.bf16 %v5141_v55, %v5141_v55 }
0x11e8   : > { %v5143_v6 = vpop.f32.mrf.mxu1 }
0x11e9   : > { %4740 = vmatmul.mubr.msk.bf16.vlgmr.msra.gmra.mxu1 %vm852_vm0, %v3098_v20 }
0x11ea   : > { %5146 = vmatpush3.bf16.xpose.msra.mxu1 %v3228_v32  ;;  %5161 = vmatprep.mubr.msk.bf16.mxu1 %vm852_vm0, %v3170_v33 }
0x11eb   : > { %5308 = vmatprep.subr.msk.bf16.mxu1 %vm852_vm0, %v3200_v31  ;;  %v5481_v31 = vld [vmem:[%s7432_s6 + $0xf0] ss:$8 sps:$4 sm:$0xff]  }
0x11f2   : > { %5148 = vmatpush3.bf16.xpose.msra.mxu1 %v3225_v49  ;;  %v5489_v49 = vld [vmem:[%s7434_s8 + $0x74] ss:$8 sps:$4 sm:$0xff]  }
0x11f3   : > { %5309 = vmatprep.subr.msk.bf16.mxu1 %vm852_vm0, %v3198_v45  ;;  %v3488_v45 = vld [vmem:[%s7052_s15 + $0x18] sm:$0xff] }
0x11fa   : > { %5150 = vmatpush3.bf16.xpose.msra.mxu1 %v3222_v7 }
0x11fb   : > { %5310 = vmatprep.subr.msk.bf16.mxu1 %vm852_vm0, %v3196_v12  ;;  %v3490_v12 = vld [vmem:[%s7052_s15 + $0x28] sm:$0xff] }
0x1202   : > { %5152 = vmatpush3.bf16.xpose.msra.mxu1 %v3219_v53 }
0x1203   : > { %5311 = vmatprep.subr.msk.bf16.mxu1 %vm852_vm0, %v3194_v11  ;;  %v3492_v11 = vld [vmem:[%s7052_s15 + $0x38] sm:$0xff] }
0x120a   : > { %5154 = vmatpush3.bf16.xpose.msra.mxu1 %v3216_v39 }
0x120b   : > { %5312 = vmatprep.subr.msk.bf16.mxu1 %vm852_vm0, %v3192_v48 }
0x1212   : > { %5156 = vmatpush3.bf16.xpose.msra.mxu1 %v3213_v47 }
0x1213   : > { %5313 = vmatprep.subr.msk.bf16.mxu1 %vm852_vm0, %v3190_v43 }
0x121a   : > { %5158 = vmatpush3.bf16.xpose.msra.mxu1 %v3210_v29 }
0x121b   : > { %5314 = vmatprep.subr.msk.bf16.mxu1 %vm852_vm0, %v3188_v60 }
0x1222   : > { %5160 = vmatpush3.bf16.xpose.msra.mxu1 %v3207_v21  ;;  %v5487_v21 = vld [vmem:[%s7434_s8 + $0x70] ss:$8 sps:$4 sm:$0xff]  }
0x1229   : > { %5162 = vmatmul.mubr.msk.bf16.vlgmr.msra.gmra.mxu1 %vm852_vm0, %v3170_v33  ;;  %v5484_v33 = vld [vmem:[%s7432_s6 + $0xe0] ss:$8 sps:$4 sm:$0xff]  }
0x12a9   : > { %v3160_v23 = vpop.f32.mrf.mxu1 }
0x12aa   : > { %v7009_v51 = vadd.f32 %v3160_v23, %v6905_v13 }
0x12ab   : > { %v3162_v1 = vpop.f32.mrf.mxu1 }
0x12ac   : > { %v7012_v27 = vadd.f32 %v3162_v1, %v6908_v15 }
0x12ad   : > { %v3164_v2 = vpop.f32.mrf.mxu1 }
0x12ae   : > { %v5492_v2 = vld [vmem:[%s7434_s8 + $0x64] ss:$8 sps:$4 sm:$0xff]  }
0x12af   : > { %v3165_v58 = vpop.f32.mrf.mxu1 }
0x12e9   : > { %v3288_v30 = vpop.f32.mrf.mxu1 }
0x12eb   : > { %v3290_v40 = vpop.f32.mrf.mxu1 }
0x12ec   : > { %v3295_v46 = vmax.f32 %v3288_v30, %v3290_v40 }
0x12ed   : > { %v3292_v41 = vpop.f32.mrf.mxu1 }
0x12ee   : > { %3296 = vmax.xlane.f32.xlu1 %v3295_v46  ;;  %v5493_v46 = vld [vmem:[%s7434_s8 + $0x50] ss:$8 sps:$4 sm:$0xff]   ;;  %v5498_v41 = vld [vmem:[%s7434_s8 + $0x44] ss:$8 sps:$4 sm:$0xff]  }
0x12ef   : > { %v3293_v28 = vpop.f32.mrf.mxu1 }
0x12f0   : > { %v5496_v28 = vld [vmem:[%s7434_s8 + $0x40] ss:$8 sps:$4 sm:$0xff]  }
0x12ff   : > { %3326 = vrot.lane.b32.xlu1 %v6638_v34, %s5711_s16  ;;  %v3343_v34 = vpop.permute.xlu0 %3342 }
0x1300   : > { %5163 = vmatprep.subr.bf16.mxu0 %v3343_v34  ;;  %v5501_v34 = vld [vmem:[%s7434_s8 + $0x34] ss:$8 sps:$4 sm:$0xff]  }
0x1303   : > { %3324 = vrot.lane.b32.xlu1 %v6652_v44, %s5711_s16  ;;  %v3341_v44 = vpop.permute.xlu0 %3340 }
0x1307   : > { %3338 = vrot.lane.b32.xlu1 %v6658_v38, %s5711_s16  ;;  %v3323_v5 = vpop.permute.xlu0 %3322 }
0x130b   : > { %3336 = vrot.lane.b32.xlu1 %v6687_v50, %s5711_s16 }
0x130f   : > { %3334 = vrot.lane.b32.xlu1 %v6699_v42, %s5711_s16 }
0x1313   : > { %3332 = vrot.lane.b32.xlu1 %v6711_v4, %s5711_s16  ;;  %v3321_v4 = vpop.permute.xlu0 %3320 }
0x1317   : > { %3330 = vrot.lane.b32.xlu1 %v6726_v36, %s5711_s16 }
0x131b   : > { %3328 = vrot.lane.b32.xlu1 %v6742_v54, %s5711_s16  ;;  %v3319_v54 = vpop.permute.xlu0 %3318 }
0x131f   : > { %v3317_v63 = vpop.permute.xlu0 %3316 }
0x1323   : > { %v3315_v59 = vpop.permute.xlu0 %3314 }
0x1377   : > { %v3297_v13 = vpop.xlane.xlu1 %3296 }
0x1378   : > { %v3298_v38 = vsub.f32 %v3288_v30, %v3297_v13  ;;  %v3299_v15 = vsub.f32 %v3290_v40, %v3297_v13  ;;  %v5490_v30 = vld [vmem:[%s7434_s8 + $0x60] ss:$8 sps:$4 sm:$0xff]   ;;  %v5495_v40 = vld [vmem:[%s7434_s8 + $0x54] ss:$8 sps:$4 sm:$0xff]   ;;  %v5504_v13 = vld [vmem:[%s7434_s8 + $0x24] ss:$8 sps:$4 sm:$0xff]  }
0x137a   : > { %v3300_v61 = vmul.f32 1.442695, %v3298_v38  ;;  %v3302_v50 = vmul.f32 1.442695, %v3299_v15  ;;  %v5502_v38 = vld [vmem:[%s7434_s8 + $0x20] ss:$8 sps:$4 sm:$0xff]  }
0x137b   : > { %v3327_v35 = vpop.permute.xlu1 %3326  ;;  %v5507_v15 = vld [vmem:[%s7434_s8 + $0x14] ss:$8 sps:$4 sm:$0xff]  }
0x137c   : > { %5673 = vpow2.f32 %v3300_v61  ;;  %5164 = vmatpush3.bf16.msra.mxu0 %v3327_v35  ;;  %v5505_v61 = vld [vmem:[%s7434_s8 + $0x10] ss:$8 sps:$4 sm:$0xff]   ;;  %v5513_v35 = vld [vmem:[%s7434_s8 + $0xf4] ss:$8 sps:$4 sm:$0xff]  }
0x137d   : > { %5675 = vpow2.f32 %v3302_v50  ;;  %5165 = vmatprep.subr.bf16.mxu0 %v3341_v44  ;;  %v5499_v44 = vld [vmem:[%s7434_s8 + $0x30] ss:$8 sps:$4 sm:$0xff]   ;;  %v5510_v50 = vld [vmem:[%s7434_s8 + $0x4] ss:$8 sps:$4 sm:$0xff]  }
0x137f   : > { %v3325_v42 = vpop.permute.xlu1 %3324 }
0x1380   : > { %5166 = vmatpush3.bf16.msra.mxu0 %v3325_v42  ;;  %v5511_v42 = vld [vmem:[%s7434_s8 + $0xf0] ss:$8 sps:$4 sm:$0xff]  }
0x1383   : > { %v3339_v36 = vpop.permute.xlu1 %3338 }
0x1384   : > { %5167 = vmatprep.subr.bf16.mxu0 %v3339_v36  ;;  %v5514_v36 = vld [vmem:[%s7434_s8 + $0xe0] ss:$8 sps:$4 sm:$0xff]  }
0x1385   : > { %5168 = vmatpush3.bf16.msra.mxu0 %v3323_v5  ;;  %v5508_v5 = vld [vmem:[%s7434_s8] ss:$8 sps:$4 sm:$0xff]  }
0x1387   : > { %v3337_v52 = vpop.permute.xlu1 %3336 }
0x1388   : > { %5169 = vmatprep.subr.bf16.mxu0 %v3337_v52  ;;  %v5517_v52 = vld [vmem:[%s7434_s8 + $0xd0] ss:$8 sps:$4 sm:$0xff]  }
0x1389   : > { %v5674_v17 = vpop.eup %5673  ;;  %5170 = vmatpush3.bf16.msra.mxu0 %v3321_v4  ;;  %v5516_v4 = vld [vmem:[%s7434_s8 + $0xe4] ss:$8 sps:$4 sm:$0xff]  }
0x138a   : > { %v5676_v3 = vpop.eup %5675 }
0x138b   : > { %v3304_v19 = vadd.f32 %v5676_v3, %v5674_v17  ;;  %v3335_v37 = vpop.permute.xlu1 %3334 }
0x138c   : > { %5171 = vmatprep.subr.bf16.mxu0 %v3335_v37  ;;  %v3487_v37 = vld [vmem:[%s7052_s15 + $0x10] sm:$0xff] }
0x138d   : > { %3305 = vadd.xlane.f32.xlu0 %v3304_v19  ;;  %5172 = vmatpush3.bf16.msra.mxu0 %v3319_v54  ;;  %v5519_v54 = vld [vmem:[%s7434_s8 + $0xd4] ss:$8 sps:$4 sm:$0xff]   ;;  %v3485_v19 = vld [vmem:[%s7052_s15] sm:$0xff] }
0x138f   : > { %v3333_v57 = vpop.permute.xlu1 %3332 }
0x1390   : > { %5173 = vmatprep.subr.bf16.mxu0 %v3333_v57  ;;  %v3493_v57 = vadd.f32 %v3487_v37, %v3485_v19  ;;  %v5589_v19 = vld [vmem:[%s7436_s10 + $0xb4] ss:$8 sps:$4 sm:$0xff]   ;;  %v5587_v37 = vld [vmem:[%s7436_s10 + $0xb0] ss:$8 sps:$4 sm:$0xff]  }
0x1391   : > { %5174 = vmatpush3.bf16.msra.mxu0 %v3317_v63  ;;  %v5525_v63 = vld [vmem:[%s7434_s8 + $0xb4] ss:$8 sps:$4 sm:$0xff]  }
0x1393   : > { %v3331_v26 = vpop.permute.xlu1 %3330 }
0x1394   : > { %5175 = vmatprep.subr.bf16.mxu0 %v3331_v26  ;;  %v3489_v26 = vld [vmem:[%s7052_s15 + $0x20] sm:$0xff] }
0x1395   : > { %5176 = vmatpush3.bf16.msra.mxu0 %v3315_v59  ;;  %v5523_v59 = vld [vmem:[%s7434_s8 + $0xb0] ss:$8 sps:$4 sm:$0xff]  }
0x1397   : > { %v3329_v22 = vpop.permute.xlu1 %3328 }
0x1398   : > { %5177 = vmatprep.subr.bf16.mxu0 %v3329_v22  ;;  %v5528_v22 = vld [vmem:[%s7434_s8 + $0xa4] ss:$8 sps:$4 sm:$0xff]  }
0x13a3   : > { %3312 = vrot.lane.b32.xlu0 %v6750_v8, %s5711_s16  ;;  %v5486_v8 = vld [vmem:[%s7432_s6 + $0xe4] ss:$8 sps:$4 sm:$0xff]  }
0x1416   : > { %v3306_v24 = vpop.xlane.xlu0 %3305 }
0x1417   : > { %5677 = vrcp.f32 %v3306_v24  ;;  %v3494_v24 = vadd.f32 %v3493_v57, %v3489_v26  ;;  %v5590_v57 = vld [vmem:[%s7436_s10 + $0xa0] ss:$8 sps:$4 sm:$0xff]   ;;  %v5593_v26 = vld [vmem:[%s7436_s10 + $0x90] ss:$8 sps:$4 sm:$0xff]  }
0x141a   : > { %v3313_v10 = vpop.permute.xlu0 %3312 }
0x141b   : > { %5178 = vmatpush3.bf16.msra.mxu0 %v3313_v10  ;;  %v3491_v10 = vld [vmem:[%s7052_s15 + $0x30] sm:$0xff] }
0x141c   : > { %3440 = vmatprep.subr.bf16.mxu0 %v5483_v9  ;;  %v5526_v9 = vld [vmem:[%s7434_s8 + $0xa0] ss:$8 sps:$4 sm:$0xff]  }
0x1424   : > { %v5678_v55 = vpop.eup %5677 }
0x1425   : > { %v3309_v25 = vmul.f32 %v5678_v55, %v5676_v3  ;;  %v3308_v32 = vmul.f32 %v5678_v55, %v5674_v17  ;;  %v5522_v17 = vld [vmem:[%s7434_s8 + $0xc4] ss:$8 sps:$4 sm:$0xff]   ;;  %v5520_v3 = vld [vmem:[%s7434_s8 + $0xc0] ss:$8 sps:$4 sm:$0xff]   ;;  %v5531_v55 = vld [vmem:[%s7434_s8 + $0x94] ss:$8 sps:$4 sm:$0xff]  }
0x1427   : > { %v3311_v20 = vpack.c.bf16 %v3309_v25, %v3309_v25  ;;  %v3310_v6 = vpack.c.bf16 %v3308_v32, %v3308_v32  ;;  %v3495_v25 = vadd.f32 %v3494_v24, %v3491_v10  ;;  %v5529_v32 = vld [vmem:[%s7434_s8 + $0x90] ss:$8 sps:$4 sm:$0xff]   ;;  %v5596_v24 = vld [vmem:[%s7436_s10 + $0x80] ss:$8 sps:$4 sm:$0xff]  }
0x1428   : > { %v3471_v10 = vld [vmem:[%s7433_s7] sm:$0x3] }
0x1429   : > { %3392 = vmatprep.mubr.bf16.mxu0 %v3311_v20  ;;  %v5534_v20 = vld [vmem:[%s7434_s8 + $0x84] ss:$8 sps:$4 sm:$0xff]  }
0x142a   : > { %3393 = vmatmul.mubr.bf16.vlgmr.msra.gmra.mxu0 %v3310_v6  ;;  %v3500_v6 = vmul.f32 0.25, %v3495_v25  ;;  %v3476_v25 = vrot.slane %v3471_v10, %v6028_v0 }
0x142b   : > { %3441 = vmatpush1.bf16.msra.mxu0 %v5481_v31  ;;  %3460 = vmatprep.mubr.bf16.mxu0 %v5710_v18  ;;  %v3486_v18 = vld [vmem:[%s7052_s15 + $0x8] sm:$0xff] }
0x142c   : > { %3442 = vmatprep.subr.bf16.mxu0 %v5486_v8  ;;  %v3496_v7 = vadd.f32 %v3488_v45, %v3486_v18  ;;  %v5532_v31 = vld [vmem:[%s7434_s8 + $0x80] ss:$8 sps:$4 sm:$0xff]   ;;  %v5535_v8 = vld [vmem:[%s7438_s12 + $0x78] sm:$0xff]   ;;  %v5537_v18 = vld [vmem:[%s7438_s12 + $0x70] sm:$0xff]  }
0x142d   : > { %v5538_v45 = vld [vmem:[%s7438_s12 + $0x30] sm:$0xff]  }
0x142e   : > { %v3497_v53 = vadd.f32 %v3496_v7, %v3490_v12  ;;  %v5539_v7 = vld [vmem:[%s7438_s12 + $0x68] sm:$0xff]  }
0x142f   : > { %3443 = vmatpush1.bf16.msra.mxu0 %v5484_v33  ;;  %v3502_v33 = vpack.c.bf16 %v3500_v6, %v3500_v6  ;;  %v5540_v12 = vld [vmem:[%s7438_s12 + $0x28] sm:$0xff]  }
0x1430   : > { %3708 = vmatprep.subr.bf16.mxu0 %v5489_v49  ;;  %v3498_v39 = vadd.f32 %v3497_v53, %v3492_v11  ;;  %v5536_v49 = vld [vmem:[%s7438_s12 + $0x38] sm:$0xff]   ;;  %v5541_v53 = vld [vmem:[%s7438_s12 + $0x60] sm:$0xff]  }
0x1431   : > { %v5551_v11 = vld [vmem:[%s7436_s10 + $0x70] ss:$8 sps:$4 sm:$0xff]  }
0x1432   : > { %v3501_v47 = vmul.f32 0.25, %v3498_v39  ;;  %v5553_v39 = vld [vmem:[%s7436_s10 + $0x74] ss:$8 sps:$4 sm:$0xff]  }
0x1433   : > { %3957 = vmatprep.subr.bf16.mxu1 %v5553_v39 }
0x1434   : > { %v3503_v23 = vpack.c.bf16 %v3501_v47, %v3501_v47  ;;  %v5543_v47 = vld [vmem:[%s7438_s12 + $0x58] sm:$0xff]   ;;  %3958 = vmatpush1.bf16.msra.mxu1 %v5551_v11 }
0x14ea   : > { %v5179_v48 = vpop.f32.mrf.mxu0 }
0x14ec   : > { %v5180_v43 = vpop.f32.mrf.mxu0 }
0x14ed   : > { %v5181_v29 = vadd.f32 %v5180_v43, %v5179_v48  ;;  %v5542_v48 = vld [vmem:[%s7438_s12 + $0x20] sm:$0xff]  }
0x14ee   : > { %v5182_v60 = vpop.f32.mrf.mxu0  ;;  %v5554_v43 = vld [vmem:[%s7436_s10 + $0x60] ss:$8 sps:$4 sm:$0xff]  }
0x14ef   : > { %v3400_v1 = vpack.c.bf16 %v5181_v29, %v5181_v29  ;;  %v5556_v29 = vld [vmem:[%s7436_s10 + $0x64] ss:$8 sps:$4 sm:$0xff]   ;;  %v5559_v60 = vld [vmem:[%s7436_s10 + $0x54] ss:$8 sps:$4 sm:$0xff]  }
0x14f0   : > { %v5183_v58 = vpop.f32.mrf.mxu0  ;;  %3959 = vmatprep.subr.bf16.mxu1 %v5556_v29 }
0x14f1   : > { %4746 = vmatmul.mubr.msk.bf16.vlgmr.msra.gmra.mxu0 %vm852_vm0, %v3400_v1  ;;  %3960 = vmatpush1.bf16.msra.mxu1 %v5554_v43  ;;  %v5557_v1 = vld [vmem:[%s7436_s10 + $0x50] ss:$8 sps:$4 sm:$0xff]  }
0x14f2   : > { %3709 = vmatpush1.bf16.msra.mxu0 %v5487_v21  ;;  %3740 = vmatprep.mubr.bf16.mxu0 %v3503_v23  ;;  %v5544_v21 = vld [vmem:[%s7438_s12 + $0x18] sm:$0xff]   ;;  %v5545_v23 = vld [vmem:[%s7438_s12 + $0x50] sm:$0xff]  }
0x14f3   : > { %3710 = vmatprep.subr.bf16.mxu0 %v5492_v2  ;;  %3961 = vmatprep.subr.bf16.mxu1 %v5559_v60  ;;  %v5562_v2 = vld [vmem:[%s7436_s10 + $0x44] ss:$8 sps:$4 sm:$0xff]   ;;  %v5546_v58 = vld [vmem:[%s7438_s12 + $0x10] sm:$0xff]  }
0x14f5   : > { %3962 = vmatpush1.bf16.msra.mxu1 %v5557_v1 }
0x14f6   : > { %3711 = vmatpush1.bf16.msra.mxu0 %v5490_v30  ;;  %v5547_v30 = vld [vmem:[%s7438_s12 + $0x48] sm:$0xff]   ;;  %3963 = vmatprep.subr.bf16.mxu1 %v5562_v2  ;;  %v5601_v2 = vld [vmem:[%s7438_s12 + $0xf0] sm:$0xff]  }
0x14f7   : > { %3712 = vmatprep.subr.bf16.mxu0 %v5495_v40  ;;  %v5560_v40 = vld [vmem:[%s7436_s10 + $0x40] ss:$8 sps:$4 sm:$0xff]  }
0x14f9   : > { %3964 = vmatpush1.bf16.msra.mxu1 %v5560_v40  ;;  %v5604_v40 = vld [vmem:[%s7438_s12 + $0xa8] sm:$0xff]  }
0x14fa   : > { %3713 = vmatpush1.bf16.msra.mxu0 %v5493_v46  ;;  %v5565_v46 = vld [vmem:[%s7436_s10 + $0x34] ss:$8 sps:$4 sm:$0xff]  }
0x14fb   : > { %3714 = vmatprep.subr.bf16.mxu0 %v5498_v41  ;;  %v5548_v41 = vld [vmem:[%s7438_s12 + $0x8] sm:$0xff]   ;;  %3965 = vmatprep.subr.bf16.mxu1 %v5565_v46  ;;  %v5605_v46 = vld [vmem:[%s7438_s12 + $0xe0] sm:$0xff]  }
0x14fe   : > { %3715 = vmatpush1.bf16.msra.mxu0 %v5496_v28  ;;  %v5549_v28 = vld [vmem:[%s7438_s12 + $0x40] sm:$0xff]  }
0x14ff   : > { %3716 = vmatprep.subr.bf16.mxu0 %v5501_v34  ;;  %v5563_v34 = vld [vmem:[%s7436_s10 + $0x30] ss:$8 sps:$4 sm:$0xff]  }
0x1500   : > { %3966 = vmatpush1.bf16.msra.mxu1 %v5563_v34  ;;  %v5606_v34 = vld [vmem:[%s7438_s12 + $0xa0] sm:$0xff]  }
0x1502   : > { %3717 = vmatpush1.bf16.msra.mxu0 %v5499_v44  ;;  %v5568_v44 = vld [vmem:[%s7436_s10 + $0x24] ss:$8 sps:$4 sm:$0xff]  }
0x1503   : > { %3718 = vmatprep.subr.bf16.mxu0 %v5504_v13  ;;  %v5550_v13 = vld [vmem:[%s7438_s12] sm:$0xff]   ;;  %3967 = vmatprep.subr.bf16.mxu1 %v5568_v44  ;;  %v5618_v44 = vld [vmem:[%s7438_s12 + $0x130] sm:$0xff]  }
0x1506   : > { %3719 = vmatpush1.bf16.msra.mxu0 %v5502_v38  ;;  %v5566_v38 = vld [vmem:[%s7436_s10 + $0x20] ss:$8 sps:$4 sm:$0xff]  }
0x1507   : > { %3720 = vmatprep.subr.bf16.mxu0 %v5507_v15  ;;  %v5571_v15 = vld [vmem:[%s7436_s10 + $0x14] ss:$8 sps:$4 sm:$0xff]   ;;  %3968 = vmatpush1.bf16.msra.mxu1 %v5566_v38  ;;  %v5619_v38 = vld [vmem:[%s7438_s12 + $0x168] sm:$0xff]  }
0x1508   : > { %3969 = vmatprep.subr.bf16.mxu1 %v5571_v15  ;;  %v5608_v15 = vld [vmem:[%s7438_s12 + $0x98] sm:$0xff]  }
0x150a   : > { %3721 = vmatpush1.bf16.msra.mxu0 %v5505_v61  ;;  %v5569_v61 = vld [vmem:[%s7436_s10 + $0x10] ss:$8 sps:$4 sm:$0xff]  }
0x150b   : > { %3722 = vmatprep.subr.bf16.mxu0 %v5510_v50  ;;  %v5574_v50 = vld [vmem:[%s7436_s10 + $0x4] ss:$8 sps:$4 sm:$0xff]   ;;  %3970 = vmatpush1.bf16.msra.mxu1 %v5569_v61 }
0x150c   : > { %3971 = vmatprep.subr.bf16.mxu1 %v5574_v50  ;;  %v5620_v61 = vld [vmem:[%s7438_s12 + $0x128] sm:$0xff]   ;;  %v5609_v50 = vld [vmem:[%s7438_s12 + $0xd0] sm:$0xff]  }
0x150e   : > { %3723 = vmatpush1.bf16.msra.mxu0 %v5508_v5  ;;  %v5572_v5 = vld [vmem:[%s7436_s10] ss:$8 sps:$4 sm:$0xff]  }
0x150f   : > { %3724 = vmatprep.subr.bf16.mxu0 %v5513_v35  ;;  %v5577_v35 = vld [vmem:[%s7436_s10 + $0xf4] ss:$8 sps:$4 sm:$0xff]   ;;  %3972 = vmatpush1.bf16.msra.mxu1 %v5572_v5  ;;  %v5621_v5 = vld [vmem:[%s7438_s12 + $0x160] sm:$0xff]  }
0x1510   : > { %3973 = vmatprep.subr.bf16.mxu1 %v5577_v35  ;;  %v5610_v35 = vld [vmem:[%s7438_s12 + $0x90] sm:$0xff]  }
0x1512   : > { %3725 = vmatpush2.bf16.msra.mxu0 %v5511_v42  ;;  %v5575_v42 = vld [vmem:[%s7436_s10 + $0xf0] ss:$8 sps:$4 sm:$0xff]  }
0x1513   : > { %3726 = vmatprep.subr.bf16.mxu0 %v5516_v4  ;;  %v5580_v4 = vld [vmem:[%s7436_s10 + $0xe4] ss:$8 sps:$4 sm:$0xff]   ;;  %3974 = vmatpush2.bf16.msra.mxu1 %v5575_v42 }
0x1514   : > { %3975 = vmatprep.subr.bf16.mxu1 %v5580_v4  ;;  %v5622_v42 = vld [vmem:[%s7438_s12 + $0x120] sm:$0xff]   ;;  %v5611_v4 = vld [vmem:[%s7438_s12 + $0xc8] sm:$0xff]  }
0x1516   : > { %3727 = vmatpush2.bf16.msra.mxu0 %v5514_v36  ;;  %v5578_v36 = vld [vmem:[%s7436_s10 + $0xe0] ss:$8 sps:$4 sm:$0xff]  }
0x1517   : > { %3728 = vmatprep.subr.bf16.mxu0 %v5519_v54  ;;  %v5583_v54 = vld [vmem:[%s7436_s10 + $0xd4] ss:$8 sps:$4 sm:$0xff]   ;;  %3976 = vmatpush2.bf16.msra.mxu1 %v5578_v36 }
0x1518   : > { %3977 = vmatprep.subr.bf16.mxu1 %v5583_v54  ;;  %v5623_v36 = vld [vmem:[%s7438_s12 + $0x158] sm:$0xff]   ;;  %v5612_v54 = vld [vmem:[%s7438_s12 + $0x88] sm:$0xff]  }
0x151a   : > { %3729 = vmatpush2.bf16.msra.mxu0 %v5517_v52  ;;  %v5581_v52 = vld [vmem:[%s7436_s10 + $0xd0] ss:$8 sps:$4 sm:$0xff]  }
0x151b   : > { %3730 = vmatprep.subr.bf16.mxu0 %v5522_v17  ;;  %v5586_v17 = vld [vmem:[%s7436_s10 + $0xc4] ss:$8 sps:$4 sm:$0xff]   ;;  %3978 = vmatpush2.bf16.msra.mxu1 %v5581_v52  ;;  %v5624_v52 = vld [vmem:[%s7438_s12 + $0x118] sm:$0xff]  }
0x151c   : > { %3979 = vmatprep.subr.bf16.mxu1 %v5586_v17  ;;  %v5613_v17 = vld [vmem:[%s7438_s12 + $0xc0] sm:$0xff]  }
0x151e   : > { %3731 = vmatpush2.bf16.msra.mxu0 %v5520_v3  ;;  %v5584_v3 = vld [vmem:[%s7436_s10 + $0xc0] ss:$8 sps:$4 sm:$0xff]  }
0x151f   : > { %3732 = vmatprep.subr.bf16.mxu0 %v5525_v63  ;;  %3980 = vmatpush2.bf16.msra.mxu1 %v5584_v3  ;;  %v5592_v63 = vld [vmem:[%s7436_s10 + $0xa4] ss:$8 sps:$4 sm:$0xff]   ;;  %v5625_v3 = vld [vmem:[%s7438_s12 + $0x150] sm:$0xff]  }
0x1520   : > { %3981 = vmatprep.subr.bf16.mxu1 %v5589_v19  ;;  %v5614_v19 = vld [vmem:[%s7438_s12 + $0x80] sm:$0xff]  }
0x1522   : > { %3733 = vmatpush2.bf16.msra.mxu0 %v5523_v59  ;;  %v5595_v59 = vld [vmem:[%s7436_s10 + $0x94] ss:$8 sps:$4 sm:$0xff]  }
0x1523   : > { %3734 = vmatprep.subr.bf16.mxu0 %v5528_v22  ;;  %3982 = vmatpush2.bf16.msra.mxu1 %v5587_v37  ;;  %v5598_v22 = vld [vmem:[%s7436_s10 + $0x84] ss:$8 sps:$4 sm:$0xff]   ;;  %v5626_v37 = vld [vmem:[%s7438_s12 + $0x110] sm:$0xff]  }
0x1524   : > { %3983 = vmatprep.subr.bf16.mxu1 %v5592_v63  ;;  %v5627_v63 = vld [vmem:[%s7438_s12 + $0x148] sm:$0xff]  }
0x1526   : > { %3735 = vmatpush2.bf16.msra.mxu0 %v5526_v9  ;;  %v5599_v9 = vld [vmem:[%s7438_s12 + $0xf8] sm:$0xff]  }
0x1527   : > { %3736 = vmatprep.subr.bf16.mxu0 %v5531_v55  ;;  %3984 = vmatpush2.bf16.msra.mxu1 %v5590_v57  ;;  %v5628_v57 = vld [vmem:[%s7438_s12 + $0x108] sm:$0xff]  }
0x1528   : > { %3985 = vmatprep.subr.bf16.mxu1 %v5595_v59  ;;  %v5629_v59 = vld [vmem:[%s7438_s12 + $0x140] sm:$0xff]  }
0x152a   : > { %3737 = vmatpush2.bf16.msra.mxu0 %v5529_v32 }
0x152b   : > { %3738 = vmatprep.subr.bf16.mxu0 %v5534_v20  ;;  %3986 = vmatpush2.bf16.msra.mxu1 %v5593_v26  ;;  %v3480_v20 = vrot.slane %v3471_v10, %v6491_v14  ;;  %v5630_v26 = vld [vmem:[%s7438_s12 + $0x100] sm:$0xff]  }
0x152c   : > { %3987 = vmatprep.subr.bf16.mxu1 %v5598_v22 }
0x152e   : > { %3739 = vmatpush2.bf16.msra.mxu0 %v5532_v31 }
0x152f   : > { %5185 = vmatprep.subr.bf16.mxu0 %v5535_v8  ;;  %3988 = vmatpush2.bf16.msra.mxu1 %v5596_v24 }
0x1530   : > { %5207 = vmatprep.subr.bf16.mxu1 %v5599_v9 }
0x1531   : > { %3741 = vmatmul.mubr.bf16.vlgmr.msra.gmra.mxu0 %v3502_v33 }
0x1532   : > { %5186 = vmatpush3.bf16.msra.mxu0 %v5536_v49 }
0x1533   : > { %5187 = vmatprep.subr.bf16.mxu0 %v5537_v18 }
0x1536   : > { %5188 = vmatpush3.bf16.msra.mxu0 %v5538_v45 }
0x1537   : > { %5189 = vmatprep.subr.bf16.mxu0 %v5539_v7 }
0x153a   : > { %5190 = vmatpush3.bf16.msra.mxu0 %v5540_v12  ;;  %v3536_v12 = vld [vmem:[%s7435_s9] sm:$0x3] }
0x153b   : > { %5191 = vmatprep.subr.bf16.mxu0 %v5541_v53  ;;  %v3541_v53 = vrot.slane %v3536_v12, %v6028_v0 }
0x153e   : > { %5192 = vmatpush3.bf16.msra.mxu0 %v5542_v48 }
0x153f   : > { %5193 = vmatprep.subr.bf16.mxu0 %v5543_v47 }
0x1542   : > { %5194 = vmatpush3.bf16.msra.mxu0 %v5544_v21 }
0x1543   : > { %5195 = vmatprep.subr.bf16.mxu0 %v5545_v23  ;;  %v5600_v23 = vld [vmem:[%s7438_s12 + $0xb8] sm:$0xff]  }
0x1546   : > { %5196 = vmatpush3.bf16.msra.mxu0 %v5546_v58  ;;  %v5602_v58 = vld [vmem:[%s7438_s12 + $0xb0] sm:$0xff]  }
0x1547   : > { %5197 = vmatprep.subr.bf16.mxu0 %v5547_v30  ;;  %v5603_v30 = vld [vmem:[%s7438_s12 + $0xe8] sm:$0xff]  }
0x154a   : > { %5198 = vmatpush3.bf16.msra.mxu0 %v5548_v41  ;;  %v5615_v41 = vld [vmem:[%s7438_s12 + $0x178] sm:$0xff]  }
0x154b   : > { %5199 = vmatprep.subr.bf16.mxu0 %v5549_v28  ;;  %v5617_v28 = vld [vmem:[%s7438_s12 + $0x170] sm:$0xff]  }
0x154e   : > { %5200 = vmatpush3.bf16.msra.mxu0 %v5550_v13  ;;  %v5607_v13 = vld [vmem:[%s7438_s12 + $0xd8] sm:$0xff]  }
0x154f   : > { %5229 = vmatprep.subr.bf16.mxu0 %v5615_v41 }
0x15b1   : > { %v3462_v55 = vpop.f32.mrf.mxu0 }
0x15b2   : > { %v3469_v32 = vadd.f32 %v3462_v55, %v7009_v51  ;;  %v3545_v51 = vrot.slane %v3536_v12, %v6491_v14  ;;  %v3785_v55 = vld [vmem:[%s7437_s11] sm:$0x3] }
0x15b3   : > { %v3464_v6 = vpop.f32.mrf.mxu0 }
0x15b4   : > { %v3470_v31 = vadd.f32 %v3464_v6, %v7012_v27  ;;  %v3483_v8 = vadd.f32 %v3476_v25, %v3469_v32  ;;  %v3790_v25 = vrot.slane %v3785_v55, %v6028_v0  ;;  %v3794_v32 = vrot.slane %v3785_v55, %v6491_v14 }
0x15b5   : > { %v3466_v33 = vpop.f32.mrf.mxu0 }
0x15b6   : > { %v3484_v49 = vadd.f32 %v3480_v20, %v3470_v31  ;;  %v4000_v7 = vpack.c.bf16 %v3483_v8, %v3483_v8 }
0x15b7   : > { %v3467_v18 = vpop.f32.mrf.mxu0 }
0x15b8   : > { %v4001_v45 = vpack.c.bf16 %v3484_v49, %v3484_v49 }
0x15ba   : > { %4427 = vmatprep.mubr.bf16.mxu0 %v4001_v45 }
0x15bb   : > { %4428 = vmatmul.mubr.bf16.vlgmr.msra.gmra.mxu0 %v4000_v7 }
0x15f1   : > { %v3742_v11 = vpop.f32.mrf.mxu0 }
0x15f2   : > { %v3743_v39 = vadd.f32 %v3742_v11, %v3541_v53  ;;  %v4811_v53 = vld [vmem:[%s7439_s13] ss:$0 sm:$0xff] }
0x15f3   : > { %v3744_v48 = vpop.f32.mrf.mxu0 }
0x15f4   : > { %v3745_v27 = vadd.f32 %v3744_v48, %v3545_v51  ;;  %v3749_v47 = vmax.f32 %v3743_v39, 0.0 }
0x15f5   : > { %v3746_v43 = vpop.f32.mrf.mxu0 }
0x15f6   : > { %v3750_v29 = vmax.f32 %v3745_v27, 0.0  ;;  %v3751_v1 = vpack.c.bf16 %v3749_v47, %v3749_v47 }
0x15f7   : > { %v3747_v60 = vpop.f32.mrf.mxu0 }
0x15f8   : > { %v3752_v21 = vpack.c.bf16 %v3750_v29, %v3750_v29 }
0x15fa   : > { %3989 = vmatprep.mubr.bf16.mxu1 %v3752_v21 }
0x15fb   : > { %3990 = vmatmul.mubr.bf16.vlgmr.msra.gmra.mxu1 %v3751_v1 }
0x15fc   : > { %5208 = vmatpush3.bf16.msra.mxu1 %v5600_v23  ;;  %4467 = vmatprep.mubr.bf16.mxu1 %v5849_v16  ;;  %v5616_v16 = vld [vmem:[%s7438_s12 + $0x138] sm:$0xff]  }
0x15fd   : > { %5209 = vmatprep.subr.bf16.mxu1 %v5601_v2  ;;  %5230 = vmatpush3.bf16.msra.mxu0 %v5616_v16 }
0x15fe   : > { %5231 = vmatprep.subr.bf16.mxu0 %v5617_v28 }
0x1600   : > { %5210 = vmatpush3.bf16.msra.mxu1 %v5602_v58 }
0x1601   : > { %5211 = vmatprep.subr.bf16.mxu1 %v5603_v30  ;;  %5232 = vmatpush3.bf16.msra.mxu0 %v5618_v44  ;;  %v4516_v30 = vand.u32 127, %v525_v62 }
0x1602   : > { %5233 = vmatprep.subr.bf16.mxu0 %v5619_v38 }
0x1603   : > { %vm4517_vm1 = vcmp.ge.s32.totalorder %v4516_v30, 19  ;;  %vm4518_vm2 = vcmp.lt.s32.totalorder %v4516_v30, 23 }
0x1604   : > { %5212 = vmatpush3.bf16.msra.mxu1 %v5604_v40  ;;  %vm4519_vm3 = vmand %vm4517_vm1, %vm4518_vm2 }
0x1605   : > { %5213 = vmatprep.subr.bf16.mxu1 %v5605_v46  ;;  %5234 = vmatpush3.bf16.msra.mxu0 %v5620_v61 }
0x1606   : > { %5235 = vmatprep.subr.bf16.mxu0 %v5621_v5 }
0x1608   : > { %5214 = vmatpush3.bf16.msra.mxu1 %v5606_v34 }
0x1609   : > { %5215 = vmatprep.subr.bf16.mxu1 %v5607_v13  ;;  %5236 = vmatpush3.bf16.msra.mxu0 %v5622_v42 }
0x160a   : > { %5237 = vmatprep.subr.bf16.mxu0 %v5623_v36 }
0x160c   : > { %5216 = vmatpush3.bf16.msra.mxu1 %v5608_v15 }
0x160d   : > { %5217 = vmatprep.subr.bf16.mxu1 %v5609_v50  ;;  %5238 = vmatpush3.bf16.msra.mxu0 %v5624_v52 }
0x160e   : > { %5239 = vmatprep.subr.bf16.mxu0 %v5625_v3 }
0x1610   : > { %5218 = vmatpush3.bf16.msra.mxu1 %v5610_v35 }
0x1611   : > { %5219 = vmatprep.subr.bf16.mxu1 %v5611_v4  ;;  %5240 = vmatpush3.bf16.msra.mxu0 %v5626_v37 }
0x1612   : > { %5241 = vmatprep.subr.bf16.mxu0 %v5627_v63 }
0x1614   : > { %5220 = vmatpush3.bf16.msra.mxu1 %v5612_v54 }
0x1615   : > { %5221 = vmatprep.subr.bf16.mxu1 %v5613_v17  ;;  %5242 = vmatpush3.bf16.msra.mxu0 %v5628_v57 }
0x1616   : > { %5243 = vmatprep.subr.bf16.mxu0 %v5629_v59 }
0x1618   : > { %5222 = vmatpush3.bf16.msra.mxu1 %v5614_v19 }
0x1619   : > { %5244 = vmatpush3.bf16.msra.mxu0 %v5630_v26 }
0x161b   : > { %4468 = vmatmul.mubr.bf16.vlgmr.msra.gmra.mxu1 %v6010_v56 }
0x167b   : > { %v5201_v56 = vpop.f32.mrf.mxu0 }
0x167d   : > { %v5202_v22 = vpop.f32.mrf.mxu0 }
0x167e   : > { %v5203_v24 = vadd.f32 %v5202_v22, %v5201_v56 }
0x167f   : > { %v5204_v9 = vpop.f32.mrf.mxu0 }
0x1680   : > { %v4430_v11 = vadd.f32 %v5203_v24, %v4811_v53 }
0x1681   : > { %v5205_v10 = vpop.f32.mrf.mxu0 }
0x16bb   : > { %v3991_v20 = vpop.f32.mrf.mxu1 }
0x16bc   : > { %v3992_v6 = vadd.f32 %v3991_v20, %v3790_v25 }
0x16bd   : > { %v3993_v31 = vpop.f32.mrf.mxu1 }
0x16be   : > { %v3994_v8 = vadd.f32 %v3993_v31, %v3794_v32  ;;  %v3998_v33 = vmax.f32 %v3992_v6, 0.0 }
0x16bf   : > { %v3995_v49 = vpop.f32.mrf.mxu1 }
0x16c0   : > { %v3999_v18 = vmax.f32 %v3994_v8, 0.0  ;;  %v4002_v12 = vpack.c.bf16 %v3998_v33, %v3998_v33 }
0x16c1   : > { %v3996_v45 = vpop.f32.mrf.mxu1 }
0x16c2   : > { %v4003_v7 = vpack.c.bf16 %v3999_v18, %v3999_v18 }
0x16c4   : > { %4507 = vmatprep.mubr.bf16.mxu0 %v4003_v7 }
0x16c5   : > { %4508 = vmatmul.mubr.bf16.vlgmr.msra.gmra.mxu0 %v4002_v12 }
0x16db   : > { %v5223_v51 = vpop.f32.mrf.mxu1 }
0x16dd   : > { %v5224_v0 = vpop.f32.mrf.mxu1 }
0x16de   : > { %v5225_v14 = vadd.f32 %v5224_v0, %v5223_v51 }
0x16df   : > { %v5226_v39 = vpop.f32.mrf.mxu1 }
0x16e0   : > { %v4470_v48 = vadd.f32 %v5225_v14, %v4430_v11 }
0x16e1   : > { %v5227_v27 = vpop.f32.mrf.mxu1 }
0x1785   : > { %v5245_v47 = vpop.f32.mrf.mxu0 }
0x1787   : > { %v5246_v43 = vpop.f32.mrf.mxu0 }
0x1788   : > { %v5247_v29 = vadd.f32 %v5246_v43, %v5245_v47 }
0x1789   : > { %v5248_v60 = vpop.f32.mrf.mxu0 }
0x178a   : > { %v4510_v21 = vadd.f32 %v5247_v29, %v4470_v48 }
0x178b   : > { %v5249_v23 = vpop.f32.mrf.mxu0 }
0x178c   : > { %v4860_v1 = vmul.f32 -1.442695, %v4510_v21 }
0x178e   : > { %5679 = vpow2.f32 %v4860_v1 }
0x179b   : > { %v5680_v2 = vpop.eup %5679 }
0x179c   : > { %v4523_v58 = vadd.f32 1.0, %v5680_v2 }
0x179e   : > { %5681 = vrcp.f32 %v4523_v58 }
0x17ab   : > { %v5682_v40 = vpop.eup %5681 }
0x17ac   : > { %v4526_v46 = vsel %vm4519_vm3, %v5682_v40, %v4510_v21 }
0x17ad   : > { %4527 = vst [vmem:[%s485_s26] sm:$0xff] %v4526_v46 }
0x17ae PF: > { %s24_s29 = sadd.s32 1, %s5706_s29  }
0x17af   : > { %p21_p4 = scmp.ge.s32.totalorder %s24_s29, 4  }
0x17b1   :  { %23 = sbr.rel (!%p21_p4) target bundleno = 1 (0x1), region = 109 }

</bundles_post_ra>
